<compile_context>
chip_gen: v7x
topology: tpu7x:2x2x1
jax: 0.10.0
libtpu: 0.0.40
codegen_flags: <defaults>
</compile_context>

<pallas_src>
import jax
import jax.numpy as jnp
from jax import lax
from jax.experimental import pallas as pl
from jax.experimental.pallas import tpu as pltpu


def gcn_kernel(a_ref, x_ref, w_ref, b_ref, out_ref):
    f32, bf16 = jnp.float32, jnp.bfloat16
    GB, N, F = x_ref.shape          # graphs per step, nodes per graph, padded width (128)
    R = GB * N                      # fused row count fed to the MXU (256)

    a = a_ref[...].astype(bf16)     # [GB, N, N] normalized adjacencies

    def dense(h2, k, relu=True):
        # Every weight block is a zero-padded (F, F) bf16 tile; biases are
        # zero-padded (1, F) f32 rows, so padded lanes stay exactly 0.
        w = w_ref[k * F:(k + 1) * F, :]
        y = jnp.dot(h2.astype(bf16), w, preferred_element_type=f32)
        y = y + b_ref[k:k + 1, :]
        return jnp.maximum(y, 0.0) if relu else y

    def graph_conv(h2, k, relu=True):
        # GraphConv(norm='both'):  A_hat @ h @ W + b   (per graph)
        h3 = h2.reshape(GB, N, F).astype(bf16)
        agg = jnp.einsum('gij,gjf->gif', a, h3, preferred_element_type=f32)
        return dense(agg.reshape(R, F), k, relu)

    h = x_ref[...].reshape(R, F)            # [R, 128] (features zero-padded past 8)
    h = graph_conv(h, 0)                    # conv1 (8->16)  + relu
    h = graph_conv(h, 1)                    # conv2 (16->32) + relu
    # TODO(synk): nn.Dropout(0.4) treated as identity (eval-mode semantics).
    h = graph_conv(h, 2, relu=False)        # conv3 (32->128)

    # MaxPool1d(2) over the 128-wide feature axis: even/odd one-hot selectors
    # generated in-kernel (no HBM selector matrices / extra DMAs).
    ri = lax.broadcasted_iota(jnp.int32, (F, F), 0)
    ci = lax.broadcasted_iota(jnp.int32, (F, F), 1)
    sel_e = (ri == 2 * ci).astype(bf16)         # col k picks lane 2k   (k < 64, else 0)
    sel_o = (ri == 2 * ci + 1).astype(bf16)     # col k picks lane 2k+1 (k < 64, else 0)
    hb = h.astype(bf16)
    pooled = jnp.maximum(
        jnp.dot(hb, sel_e, preferred_element_type=f32),
        jnp.dot(hb, sel_o, preferred_element_type=f32))   # [R, 128], lanes 64: are 0

    # Flatten(start_dim=1) on a 2D tensor is the identity.
    h = dense(pooled, 3)                    # fc1 (64->128) + relu
    h = dense(h, 4)                         # fc2 (128->64) + relu
    h = dense(h, 5)                         # fc3 (64->32)  + relu
    h = dense(h, 6, relu=False)             # fc4 (32->10), lanes 10: are 0

    # dgl.mean_nodes: per-graph mean over nodes (lane-dense store).
    out_ref[...] = jnp.mean(h.reshape(GB, N, F), axis=1)   # [GB, 128]


def gcn_forward(a_hat, x_pad, wslab, bslab, *, graphs_per_step=16):
    B, N, F = x_pad.shape
    GB = graphs_per_step
    assert B % GB == 0
    out = pl.pallas_call(
        gcn_kernel,
        out_shape=jax.ShapeDtypeStruct((B, F), jnp.float32),
        grid=(B // GB,),
        in_specs=[
            pl.BlockSpec((GB, N, N), lambda i: (i, 0, 0)),   # per-step graph block
            pl.BlockSpec((GB, N, F), lambda i: (i, 0, 0)),   # per-step node features
            pl.BlockSpec(wslab.shape, lambda i: (0, 0)),     # packed weights (resident)
            pl.BlockSpec(bslab.shape, lambda i: (0, 0)),     # packed biases  (resident)
        ],
        out_specs=pl.BlockSpec((GB, F), lambda i: (i, 0)),
        compiler_params=pltpu.CompilerParams(
            dimension_semantics=("parallel",)),              # both TCs on v7x
    )(a_hat, x_pad, wslab, bslab)
    return out[:, :10]


def _linear_params(key, fan_in, fan_out):
    kw, kb = jax.random.split(key)
    bound = 1.0 / jnp.sqrt(float(fan_in))
    w = jax.random.uniform(kw, (fan_in, fan_out), jnp.float32, -bound, bound)
    b = jax.random.uniform(kb, (fan_out,), jnp.float32, -bound, bound)
    return w, b


def gcn_reference(a_hat, x, p):
    """Pure-JAX f32 reference of the module's forward (eval mode)."""
    (w1, b1, w2, b2, w3, b3, fw1, fb1, fw2, fb2, fw3, fb3, fw4, fb4) = p
    relu = lambda v: jnp.maximum(v, 0.0)
    gconv = lambda h, w, b: jnp.einsum('gij,gjf->gif', a_hat, h) @ w + b
    h = relu(gconv(x, w1, b1))
    h = relu(gconv(h, w2, b2))
    h = gconv(h, w3, b3)                                  # [B, N, 128]
    h = jnp.maximum(h[..., 0::2], h[..., 1::2])           # MaxPool1d(2) -> [B, N, 64]
    h = relu(h @ fw1 + fb1)
    h = relu(h @ fw2 + fb2)
    h = relu(h @ fw3 + fb3)
    h = h @ fw4 + fb4                                     # [B, N, 10]
    return jnp.mean(h, axis=1)                            # [B, 10]


if __name__ == "__main__":
    key = jax.random.PRNGKey(0)
    B, N, F_IN, F = 32, 16, 8, 128        # 32 graphs of 16 nodes, 8 input feats
    keys = jax.random.split(key, 10)
    k_adj, k_x = keys[0], keys[1]

    # Deterministic random undirected graphs with self-loops (no zero degree),
    # symmetrically normalized:  A_hat = D^{-1/2} A D^{-1/2}.
    logits = jax.random.uniform(k_adj, (B, N, N))
    A = (logits > 0.7).astype(jnp.float32)
    A = jnp.maximum(A, jnp.swapaxes(A, -1, -2))
    A = jnp.maximum(A, jnp.eye(N, dtype=jnp.float32)[None])
    dis = 1.0 / jnp.sqrt(A.sum(axis=-1))
    a_hat = A * dis[..., :, None] * dis[..., None, :]      # [B, N, N]

    x = jax.random.normal(k_x, (B, N, F_IN), jnp.float32)  # [B, N, 8]

    # Parameters (deterministic synthetic init, shapes match the module).
    w1, b1 = _linear_params(keys[2], 8, 16)       # GraphConv(8, 16)
    w2, b2 = _linear_params(keys[3], 16, 32)      # GraphConv(16, 32)
    w3, b3 = _linear_params(keys[4], 32, 128)     # GraphConv(32, 128)
    fw1, fb1 = _linear_params(keys[5], 64, 128)   # fc1
    fw2, fb2 = _linear_params(keys[6], 128, 64)   # fc2
    fw3, fb3 = _linear_params(keys[7], 64, 32)    # fc3
    fw4, fb4 = _linear_params(keys[8], 32, 10)    # fc4
    params = (w1, b1, w2, b2, w3, b3, fw1, fb1, fw2, fb2, fw3, fb3, fw4, fb4)

    # Host-side packing: zero-pad every weight to a uniform (128,128) bf16 tile
    # and every bias to a (128,) f32 row, concatenated into two slabs.
    def pad_w(w):
        return jnp.zeros((F, F), jnp.float32).at[:w.shape[0], :w.shape[1]].set(w)

    def pad_b(b):
        return jnp.zeros((F,), jnp.float32).at[:b.shape[0]].set(b)

    wslab = jnp.concatenate(
        [pad_w(w) for w in (w1, w2, w3, fw1, fw2, fw3, fw4)], axis=0
    ).astype(jnp.bfloat16)                                    # (896, 128) bf16
    bslab = jnp.stack(
        [pad_b(b) for b in (b1, b2, b3, fb1, fb2, fb3, fb4)]
        + [jnp.zeros((F,), jnp.float32)], axis=0)             # (8, 128) f32
    x_pad = jnp.zeros((B, N, F), jnp.float32).at[..., :F_IN].set(x)

    out = gcn_forward(a_hat, x_pad, wslab, bslab, graphs_per_step=16)
    out = jax.block_until_ready(out)
    assert out.shape == (B, 10) and out.dtype == jnp.float32
    assert bool(jnp.all(jnp.isfinite(out)))

    # Validate against the pure-JAX f32 reference (bf16 MXU inputs, f32 accum).
    ref = gcn_reference(a_hat, x, params)
    max_err = float(jnp.max(jnp.abs(out - ref)))
    assert max_err < 5e-2, f"mismatch vs reference: {max_err}"

    print("KERNEL_OK")
</pallas_src>

<mosaic_0001>
module attributes {stable_mosaic.version = 11 : i64} {
  func.func @gcn_kernel(%arg0: i32, %arg1: memref<16x16x16xf32, #tpu.memory_space<vmem>>, %arg2: memref<16x16x128xf32, #tpu.memory_space<vmem>>, %arg3: memref<896x128xbf16, #tpu.memory_space<vmem>>, %arg4: memref<8x128xf32, #tpu.memory_space<vmem>>, %arg5: memref<16x128xf32, #tpu.memory_space<vmem>>) attributes {dimension_semantics = [#tpu.dimension_semantics<parallel>], iteration_bounds = array<i64: 2>, scalar_prefetch = 0 : i64, scratch_operands = 0 : i64, tpu.core_type = #tpu.core_type<tc>, window_params = [{transform_indices = @transform_0, window_bounds = array<i64: 16, 16, 16>}, {transform_indices = @transform_1, window_bounds = array<i64: 16, 16, 128>}, {pipeline_mode = #tpu.pipeline_mode<synchronous>, transform_indices = @transform_2, window_bounds = array<i64: 896, 128>}, {pipeline_mode = #tpu.pipeline_mode<synchronous>, transform_indices = @transform_3, window_bounds = array<i64: 8, 128>}, {transform_indices = @transform_4, window_bounds = array<i64: 16, 128>}]} {
    %c0 = arith.constant 0 : index
    %c0_0 = arith.constant 0 : index
    %c0_1 = arith.constant 0 : index
    %0 = vector.load %arg1[%c0, %c0_0, %c0_1] : memref<16x16x16xf32, #tpu.memory_space<vmem>>, vector<16x16x16xf32>
    %1 = arith.truncf %0 : vector<16x16x16xf32> to vector<16x16x16xbf16>
    %c0_2 = arith.constant 0 : index
    %c0_3 = arith.constant 0 : index
    %c0_4 = arith.constant 0 : index
    %2 = vector.load %arg2[%c0_2, %c0_3, %c0_4] : memref<16x16x128xf32, #tpu.memory_space<vmem>>, vector<16x16x128xf32>
    %3 = vector.shape_cast %2 : vector<16x16x128xf32> to vector<256x128xf32>
    %4 = vector.shape_cast %3 : vector<256x128xf32> to vector<16x16x128xf32>
    %5 = arith.truncf %4 : vector<16x16x128xf32> to vector<16x16x128xbf16>
    "tpu.trace_start"() <{level = 10 : i32, message = "gij,gjf->gif"}> : () -> ()
    %cst = arith.constant dense<0.000000e+00> : vector<16x16x128xf32>
    %6 = tpu.matmul %1, %5, %cst {dimension_numbers = #tpu.dot_dimension_numbers<[2], [1], [1], [2], [0, 0, 0, 1, 1, 2], [0], [0]>} : vector<16x16x16xbf16>, vector<16x16x128xbf16>, vector<16x16x128xf32> -> vector<16x16x128xf32>
    "tpu.trace_stop"() : () -> ()
    %7 = vector.shape_cast %6 : vector<16x16x128xf32> to vector<256x128xf32>
    %c0_5 = arith.constant 0 : index
    %c0_6 = arith.constant 0 : index
    %8 = vector.load %arg3[%c0_5, %c0_6] : memref<896x128xbf16, #tpu.memory_space<vmem>>, vector<128x128xbf16>
    %9 = arith.truncf %7 : vector<256x128xf32> to vector<256x128xbf16>
    %cst_7 = arith.constant dense<0.000000e+00> : vector<256x128xf32>
    %10 = tpu.matmul %9, %8, %cst_7 {dimension_numbers = #tpu.dot_dimension_numbers<[1], [0], [0], [1], [0, 0, 1, 1], [], []>} : vector<256x128xbf16>, vector<128x128xbf16>, vector<256x128xf32> -> vector<256x128xf32>
    %c0_8 = arith.constant 0 : index
    %c0_9 = arith.constant 0 : index
    %11 = vector.load %arg4[%c0_8, %c0_9] : memref<8x128xf32, #tpu.memory_space<vmem>>, vector<1x128xf32>
    %12 = vector.broadcast %11 : vector<1x128xf32> to vector<256x128xf32>
    %13 = arith.addf %10, %12 : vector<256x128xf32>
    %cst_10 = arith.constant 0.000000e+00 : f32
    %14 = vector.broadcast %cst_10 : f32 to vector<256x128xf32>
    %15 = arith.maximumf %13, %14 : vector<256x128xf32>
    %16 = vector.shape_cast %15 : vector<256x128xf32> to vector<16x16x128xf32>
    %17 = arith.truncf %16 : vector<16x16x128xf32> to vector<16x16x128xbf16>
    "tpu.trace_start"() <{level = 10 : i32, message = "gij,gjf->gif"}> : () -> ()
    %cst_11 = arith.constant dense<0.000000e+00> : vector<16x16x128xf32>
    %18 = tpu.matmul %1, %17, %cst_11 {dimension_numbers = #tpu.dot_dimension_numbers<[2], [1], [1], [2], [0, 0, 0, 1, 1, 2], [0], [0]>} : vector<16x16x16xbf16>, vector<16x16x128xbf16>, vector<16x16x128xf32> -> vector<16x16x128xf32>
    "tpu.trace_stop"() : () -> ()
    %19 = vector.shape_cast %18 : vector<16x16x128xf32> to vector<256x128xf32>
    %c128 = arith.constant 128 : index
    %c0_12 = arith.constant 0 : index
    %20 = vector.load %arg3[%c128, %c0_12] : memref<896x128xbf16, #tpu.memory_space<vmem>>, vector<128x128xbf16>
    %21 = arith.truncf %19 : vector<256x128xf32> to vector<256x128xbf16>
    %cst_13 = arith.constant dense<0.000000e+00> : vector<256x128xf32>
    %22 = tpu.matmul %21, %20, %cst_13 {dimension_numbers = #tpu.dot_dimension_numbers<[1], [0], [0], [1], [0, 0, 1, 1], [], []>} : vector<256x128xbf16>, vector<128x128xbf16>, vector<256x128xf32> -> vector<256x128xf32>
    %c1 = arith.constant 1 : index
    %c0_14 = arith.constant 0 : index
    %23 = vector.load %arg4[%c1, %c0_14] : memref<8x128xf32, #tpu.memory_space<vmem>>, vector<1x128xf32>
    %24 = vector.broadcast %23 : vector<1x128xf32> to vector<256x128xf32>
    %25 = arith.addf %22, %24 : vector<256x128xf32>
    %cst_15 = arith.constant 0.000000e+00 : f32
    %26 = vector.broadcast %cst_15 : f32 to vector<256x128xf32>
    %27 = arith.maximumf %25, %26 : vector<256x128xf32>
    %28 = vector.shape_cast %27 : vector<256x128xf32> to vector<16x16x128xf32>
    %29 = arith.truncf %28 : vector<16x16x128xf32> to vector<16x16x128xbf16>
    "tpu.trace_start"() <{level = 10 : i32, message = "gij,gjf->gif"}> : () -> ()
    %cst_16 = arith.constant dense<0.000000e+00> : vector<16x16x128xf32>
    %30 = tpu.matmul %1, %29, %cst_16 {dimension_numbers = #tpu.dot_dimension_numbers<[2], [1], [1], [2], [0, 0, 0, 1, 1, 2], [0], [0]>} : vector<16x16x16xbf16>, vector<16x16x128xbf16>, vector<16x16x128xf32> -> vector<16x16x128xf32>
    "tpu.trace_stop"() : () -> ()
    %31 = vector.shape_cast %30 : vector<16x16x128xf32> to vector<256x128xf32>
    %c256 = arith.constant 256 : index
    %c0_17 = arith.constant 0 : index
    %32 = vector.load %arg3[%c256, %c0_17] : memref<896x128xbf16, #tpu.memory_space<vmem>>, vector<128x128xbf16>
    %33 = arith.truncf %31 : vector<256x128xf32> to vector<256x128xbf16>
    %cst_18 = arith.constant dense<0.000000e+00> : vector<256x128xf32>
    %34 = tpu.matmul %33, %32, %cst_18 {dimension_numbers = #tpu.dot_dimension_numbers<[1], [0], [0], [1], [0, 0, 1, 1], [], []>} : vector<256x128xbf16>, vector<128x128xbf16>, vector<256x128xf32> -> vector<256x128xf32>
    %c2 = arith.constant 2 : index
    %c0_19 = arith.constant 0 : index
    %35 = vector.load %arg4[%c2, %c0_19] : memref<8x128xf32, #tpu.memory_space<vmem>>, vector<1x128xf32>
    %36 = vector.broadcast %35 : vector<1x128xf32> to vector<256x128xf32>
    %37 = arith.addf %34, %36 : vector<256x128xf32>
    %38 = tpu.iota {dimensions = array<i32: 0>} : vector<128x128xi32>
    %39 = tpu.iota {dimensions = array<i32: 1>} : vector<128x128xi32>
    %c2_i32 = arith.constant 2 : i32
    %40 = vector.broadcast %c2_i32 : i32 to vector<128x128xi32>
    %41 = arith.muli %40, %39 : vector<128x128xi32>
    %42 = arith.cmpi eq, %38, %41 : vector<128x128xi32>
    %43 = arith.extui %42 : vector<128x128xi1> to vector<128x128xi32>
    %44 = arith.sitofp %43 : vector<128x128xi32> to vector<128x128xf32>
    %45 = arith.truncf %44 : vector<128x128xf32> to vector<128x128xbf16>
    %c2_i32_20 = arith.constant 2 : i32
    %46 = vector.broadcast %c2_i32_20 : i32 to vector<128x128xi32>
    %47 = arith.muli %46, %39 : vector<128x128xi32>
    %c1_i32 = arith.constant 1 : i32
    %48 = vector.broadcast %c1_i32 : i32 to vector<128x128xi32>
    %49 = arith.addi %47, %48 : vector<128x128xi32>
    %50 = arith.cmpi eq, %38, %49 : vector<128x128xi32>
    %51 = arith.extui %50 : vector<128x128xi1> to vector<128x128xi32>
    %52 = arith.sitofp %51 : vector<128x128xi32> to vector<128x128xf32>
    %53 = arith.truncf %52 : vector<128x128xf32> to vector<128x128xbf16>
    %54 = arith.truncf %37 : vector<256x128xf32> to vector<256x128xbf16>
    %cst_21 = arith.constant dense<0.000000e+00> : vector<256x128xf32>
    %55 = tpu.matmul %54, %45, %cst_21 {dimension_numbers = #tpu.dot_dimension_numbers<[1], [0], [0], [1], [0, 0, 1, 1], [], []>} : vector<256x128xbf16>, vector<128x128xbf16>, vector<256x128xf32> -> vector<256x128xf32>
    %cst_22 = arith.constant dense<0.000000e+00> : vector<256x128xf32>
    %56 = tpu.matmul %54, %53, %cst_22 {dimension_numbers = #tpu.dot_dimension_numbers<[1], [0], [0], [1], [0, 0, 1, 1], [], []>} : vector<256x128xbf16>, vector<128x128xbf16>, vector<256x128xf32> -> vector<256x128xf32>
    %57 = arith.maximumf %55, %56 : vector<256x128xf32>
    %c384 = arith.constant 384 : index
    %c0_23 = arith.constant 0 : index
    %58 = vector.load %arg3[%c384, %c0_23] : memref<896x128xbf16, #tpu.memory_space<vmem>>, vector<128x128xbf16>
    %59 = arith.truncf %57 : vector<256x128xf32> to vector<256x128xbf16>
    %cst_24 = arith.constant dense<0.000000e+00> : vector<256x128xf32>
    %60 = tpu.matmul %59, %58, %cst_24 {dimension_numbers = #tpu.dot_dimension_numbers<[1], [0], [0], [1], [0, 0, 1, 1], [], []>} : vector<256x128xbf16>, vector<128x128xbf16>, vector<256x128xf32> -> vector<256x128xf32>
    %c3 = arith.constant 3 : index
    %c0_25 = arith.constant 0 : index
    %61 = vector.load %arg4[%c3, %c0_25] : memref<8x128xf32, #tpu.memory_space<vmem>>, vector<1x128xf32>
    %62 = vector.broadcast %61 : vector<1x128xf32> to vector<256x128xf32>
    %63 = arith.addf %60, %62 : vector<256x128xf32>
    %cst_26 = arith.constant 0.000000e+00 : f32
    %64 = vector.broadcast %cst_26 : f32 to vector<256x128xf32>
    %65 = arith.maximumf %63, %64 : vector<256x128xf32>
    %c512 = arith.constant 512 : index
    %c0_27 = arith.constant 0 : index
    %66 = vector.load %arg3[%c512, %c0_27] : memref<896x128xbf16, #tpu.memory_space<vmem>>, vector<128x128xbf16>
    %67 = arith.truncf %65 : vector<256x128xf32> to vector<256x128xbf16>
    %cst_28 = arith.constant dense<0.000000e+00> : vector<256x128xf32>
    %68 = tpu.matmul %67, %66, %cst_28 {dimension_numbers = #tpu.dot_dimension_numbers<[1], [0], [0], [1], [0, 0, 1, 1], [], []>} : vector<256x128xbf16>, vector<128x128xbf16>, vector<256x128xf32> -> vector<256x128xf32>
    %c4 = arith.constant 4 : index
    %c0_29 = arith.constant 0 : index
    %69 = vector.load %arg4[%c4, %c0_29] : memref<8x128xf32, #tpu.memory_space<vmem>>, vector<1x128xf32>
    %70 = vector.broadcast %69 : vector<1x128xf32> to vector<256x128xf32>
    %71 = arith.addf %68, %70 : vector<256x128xf32>
    %cst_30 = arith.constant 0.000000e+00 : f32
    %72 = vector.broadcast %cst_30 : f32 to vector<256x128xf32>
    %73 = arith.maximumf %71, %72 : vector<256x128xf32>
    %c640 = arith.constant 640 : index
    %c0_31 = arith.constant 0 : index
    %74 = vector.load %arg3[%c640, %c0_31] : memref<896x128xbf16, #tpu.memory_space<vmem>>, vector<128x128xbf16>
    %75 = arith.truncf %73 : vector<256x128xf32> to vector<256x128xbf16>
    %cst_32 = arith.constant dense<0.000000e+00> : vector<256x128xf32>
    %76 = tpu.matmul %75, %74, %cst_32 {dimension_numbers = #tpu.dot_dimension_numbers<[1], [0], [0], [1], [0, 0, 1, 1], [], []>} : vector<256x128xbf16>, vector<128x128xbf16>, vector<256x128xf32> -> vector<256x128xf32>
    %c5 = arith.constant 5 : index
    %c0_33 = arith.constant 0 : index
    %77 = vector.load %arg4[%c5, %c0_33] : memref<8x128xf32, #tpu.memory_space<vmem>>, vector<1x128xf32>
    %78 = vector.broadcast %77 : vector<1x128xf32> to vector<256x128xf32>
    %79 = arith.addf %76, %78 : vector<256x128xf32>
    %cst_34 = arith.constant 0.000000e+00 : f32
    %80 = vector.broadcast %cst_34 : f32 to vector<256x128xf32>
    %81 = arith.maximumf %79, %80 : vector<256x128xf32>
    %c768 = arith.constant 768 : index
    %c0_35 = arith.constant 0 : index
    %82 = vector.load %arg3[%c768, %c0_35] : memref<896x128xbf16, #tpu.memory_space<vmem>>, vector<128x128xbf16>
    %83 = arith.truncf %81 : vector<256x128xf32> to vector<256x128xbf16>
    %cst_36 = arith.constant dense<0.000000e+00> : vector<256x128xf32>
    %84 = tpu.matmul %83, %82, %cst_36 {dimension_numbers = #tpu.dot_dimension_numbers<[1], [0], [0], [1], [0, 0, 1, 1], [], []>} : vector<256x128xbf16>, vector<128x128xbf16>, vector<256x128xf32> -> vector<256x128xf32>
    %c6 = arith.constant 6 : index
    %c0_37 = arith.constant 0 : index
    %85 = vector.load %arg4[%c6, %c0_37] : memref<8x128xf32, #tpu.memory_space<vmem>>, vector<1x128xf32>
    %86 = vector.broadcast %85 : vector<1x128xf32> to vector<256x128xf32>
    %87 = arith.addf %84, %86 : vector<256x128xf32>
    %88 = vector.shape_cast %87 : vector<256x128xf32> to vector<16x16x128xf32>
    %cst_38 = arith.constant dense<0.000000e+00> : vector<16x128xf32>
    %89 = vector.multi_reduction <add>, %88, %cst_38 [1] : vector<16x16x128xf32> to vector<16x128xf32>
    %cst_39 = arith.constant 1.600000e+01 : f32
    %90 = vector.broadcast %cst_39 : f32 to vector<16x128xf32>
    %91 = arith.divf %89, %90 : vector<16x128xf32>
    %c0_40 = arith.constant 0 : index
    %c0_41 = arith.constant 0 : index
    %92 = vector.load %arg5[%c0_40, %c0_41] : memref<16x128xf32, #tpu.memory_space<vmem>>, vector<16x128xf32>
    tpu.vector_store %arg5[%c0_40, %c0_41], %91 {strides = array<i32>} : memref<16x128xf32, #tpu.memory_space<vmem>>, vector<16x128xf32>,
    return
  }
  func.func @transform_0(%arg0: i32) -> (i32, i32, i32) {
    %c0_i32 = arith.constant 0 : i32
    %c0_i32_0 = arith.constant 0 : i32
    %c0_i32_1 = arith.constant 0 : i32
    return %arg0, %c0_i32, %c0_i32_0 : i32, i32, i32
  }
  func.func @transform_1(%arg0: i32) -> (i32, i32, i32) {
    %c0_i32 = arith.constant 0 : i32
    %c0_i32_0 = arith.constant 0 : i32
    %c0_i32_1 = arith.constant 0 : i32
    return %arg0, %c0_i32, %c0_i32_0 : i32, i32, i32
  }
  func.func @transform_2(%arg0: i32) -> (i32, i32) {
    %c0_i32 = arith.constant 0 : i32
    %c0_i32_0 = arith.constant 0 : i32
    %c0_i32_1 = arith.constant 0 : i32
    return %c0_i32, %c0_i32_0 : i32, i32
  }
  func.func @transform_3(%arg0: i32) -> (i32, i32) {
    %c0_i32 = arith.constant 0 : i32
    %c0_i32_0 = arith.constant 0 : i32
    %c0_i32_1 = arith.constant 0 : i32
    return %c0_i32, %c0_i32_0 : i32, i32
  }
  func.func @transform_4(%arg0: i32) -> (i32, i32) {
    %c0_i32 = arith.constant 0 : i32
    %c0_i32_0 = arith.constant 0 : i32
    return %arg0, %c0_i32 : i32, i32
  }
}

</mosaic_0001>

<bundles_post_ra>
// kernel: tpu_custom_call.1
= control target key start
LH: loop header
LB: loop body
LE: loop exit
PB: predicated region body
PF: predicated region fallthrough
CT: control target
= control target key end

     0   :  { %9 = vsyncpa [#allocation3], 0  ;;  %s7453_s0 = inlined_call_operand.vmem [shape: f32[32,16,16], index: 0, kind: input, shape index: {}]   ;;  %s7454_s1 = inlined_call_operand.vmem [shape: f32[32,16,128], index: 1, kind: input, shape index: {}]   ;;  %s7455_s2 = inlined_call_operand.hbm [shape: bf16[896,128], index: 2, kind: input, shape index: {}]   ;;  %s7456_s3 = inlined_call_operand.vmem [shape: f32[8,128], index: 3, kind: input, shape index: {}]   ;;  %s7457_s4 = inlined_call_operand.hbm [shape: f32[32,128], index: 4, kind: output, shape index: {}]  }
   0x1   :  { %10 = vsyncpa [#allocation4], 0 }
   0x2   :  { %12 = vsyncpa [#allocation4 + $0x1], 0  ;;  %s6530_s15 = smov 0   ;;  %s6532_s16 = smov 0  }
   0x3   :  { %s6534_s17 = smov 0   ;;  %s6536_s18 = smov 0  }
   0x4 LB: > { %s6551_s19 = sadd.s32 4294967295, %s6494_s18   ;;  %s5043_s20 = sadd.s32 4294967294, %s6494_s18   ;;  %s6494_s18 = sphi %s6536_s18, %s7489_s18   ;;  %s6490_s17 = sphi %s6534_s17, %s7488_s17   ;;  %s6486_s16 = sphi %s6532_s16, %s7487_s16   ;;  %s6482_s15 = sphi %s6530_s15, %s7486_s15  }
   0x5   : > { %s6555_s21 = sadd.s32 1, %s6494_s18   ;;  %s119_s22 = sadd.s32 1, %s6490_s17 }
   0x6   : > { %s116_s23 = ssub.s32 %s6494_s18, %s6555_s21  ;;  %p129_p0 = scmp.ne.s32.totalorder %s6490_s17, %s6486_s16 }
   0x7   : > { %p117_p1 = scmp.eq.s32.totalorder %s116_s23, 0  ;;  %p130_p2 = scmp.eq.s32.totalorder %s6551_s19, 1 }
   0x8   : > { %p135_p3 = scmp.ne.s32.totalorder %s6486_s16, %s6482_s15  ;;  %p136_p4 = scmp.eq.s32.totalorder %s5043_s20, 1 }
   0x9   : > { %s6566_s24 = scalar_select %p117_p1, %s6490_s17, %s119_s22  }
   0xa   : > { %p6568_p5 = por %p130_p2, %p129_p0  ;;  %p6572_p6 = por %p136_p4, %p135_p3 }
   0xb   : > { %p5044_p7 = scmp.ge.s32.totalorder %s6494_s18, 1  ;;  %p143_p8 = scmp.lt.s32.totalorder %s6494_s18, 3 }
   0xc   : > { %s7461_s25 = scalar_select %p6568_p5, 1, 0 }
   0xd   : > { %s7462_s26 = scalar_select %p6572_p6, 1, 0 }
   0xe   : > { %p7458_p9 = scmp.eq.s32.totalorder %s6551_s19, 0  ;;  %p6579_p10 = pnand %p5044_p7, %p143_p8 }
   0xf   : > { %s6496_s28 = smov [#allocation2]   ;;  %s6400_s7 = scalar_lea.hbm %s7455_s2, 7168 }
  0x10   : > { %s7463_s27 = scalar_select %p6579_p10, 1, 0 }
  0x11   : > { %s155_s29 = sshll.u32 %s6496_s28, 4  ;;  %p6293_p11 = pneg %p6579_p10  ;;  %s156_s29 = int_to_ptr.vmem [resolvable:$true] %s155_s29 }
  0x12   : > { %p6401_p13 = scmp.ne.s32.totalorder %s7455_s2, %s6400_s7  ;;  %p6407_p3 = scmp.lt.u32.totalorder %s6400_s7, %s7455_s2 }
  0x13   : > { %p6587_p12 = pnand %p7458_p9, %p6293_p11 }
  0x15   : > { %p6402_p0 = pneg %p6587_p12 }
  0x17   : > { %p6403_p1 = pnand %p6402_p0, %p6401_p13 }
  0x19   : > { %p6404_p2 = pneg %p6403_p1 }
  0x1b   : > { %p6409_p4 = pnand %p6407_p3, %p6404_p2 }
  0x1d   : > { %6412 = shalt.err (!%p6409_p4)
}
  0x1e   : > { %s6413_s12 = scalar_lea.vmem %s156_s29, 7168  ;;  %p6421_p9 = scmp.lt.s32.totalorder %s156_s29, %s156_s29 }
  0x1f   : > { %p6414_p7 = scmp.ne.s32.totalorder %s156_s29, %s6413_s12  ;;  %p6422_p6 = scmp.lt.s32.totalorder %s6413_s12, %s6413_s12 }
  0x21   : > { %p6416_p8 = pnand %p6414_p7, %p6402_p0  ;;  %p6423_p5 = por %p6422_p6, %p6421_p9 }
  0x23   : > { %p6417_p11 = pneg %p6416_p8 }
  0x25   : > { %p6424_p10 = pnand %p6423_p5, %p6417_p11 }
  0x27   : > { %6427 = shalt.err (!%p6424_p10)
}
  0x28   : > { %s6497_s13 = smov 64   ;;  %s6498_s14 = smov 4  }
  0x29   : > { %6296 = dma.hbm_to_vmem [thread:$0]  (!%p6587_p12), %s7455_s2, 7168, %s156_s29, [#allocation3], %s6497_s13, %s6497_s13, %s6498_s14  }
  0x2a   : > { %p7465_p13 = scmp.ne.s32.totalorder %s7463_s27, 0 }
  0x2b   : > { %p7466_p1 = scmp.eq.s32.totalorder (!%p7465_p13), %s6551_s19, 0 }
  0x2c   : > { %194 = sbr.rel (%p7465_p13) target bundleno = 2622 (0xa3e), region = 36 }
  0x33   : > { %6473 = dma.done.wait (%p7466_p1), [#allocation3], 7168   ;;  %p7467_p0 = pmov %p7466_p1 }
  0x34   : > { %s5050_s23 = sshll.u32 %s6551_s19, 4  ;;  %v6499_v0 = vmov 0.0   ;;  %vm6500_vm0 = vmmov 0   ;;  %vm339_vm1 = vcmask 130048   ;;  %s224_s5 = sand.u32 1, %s6486_s16  }
  0x35   : > { %6475 = vsyncadd (%p7467_p0), [#allocation3], 4294960128  ;;  %5551 = vmatprep.subr.bf16.mxu0 %v6499_v0  ;;  %5557 = vmatprep.subr.bf16.mxu1 %v6499_v0  ;;  %p228_p5 = scmp.lt.s32.totalorder %s5050_s23, 31  ;;  %s5049_s6 = sshll.u32 %s224_s5, 4 }
  0x36   : > { %5553 = vmatprep.mubr.msk.bf16.mxu0 %vm6500_vm0, %v6499_v0  ;;  %5559 = vmatprep.mubr.msk.bf16.mxu1 %vm6500_vm0, %v6499_v0  ;;  %s5238_s8 = sshll.u32 %s6551_s19, 8  ;;  %s7412_s19 = scalar_lea.sflag [#allocation4], %s224_s5 }
  0x37   : > { %s7491_s23 = smov (!%p228_p5, %s5050_s23), 31  ;;  %s7403_s12 = scalar_lea.hbm %s7457_s4, %s5238_s8 }
  0x38   : > { %s5236_s27 = sshll.u32 %s7491_s23, 4  ;;  %p7484_p9 = scmp.ne.s32.totalorder %s7461_s25, 0 }
  0x39   : > { %s6623_s30 = scalar_lea.vmem %s7453_s0, %s5236_s27  ;;  %s6628_s7 = scalar_lea.vmem %s7454_s1, %s5236_s27 }
  0x3a   : > { %v291_v1 = vld [vmem:[%s6628_s7] sm:$0xff]  ;;  %v292_v2 = vld [vmem:[%s6628_s7 + $0x8] sm:$0xff]  ;;  %v293_v3 = vld [vmem:[%s6628_s7 + $0x10] sm:$0xff]  ;;  %s6502_s14 = smov [#allocation5]  }
  0x3b   : > { %v323_v4 = vpack.c.bf16 %v292_v2, %v291_v1  ;;  %v294_v5 = vld [vmem:[%s6628_s7 + $0x18] sm:$0xff]  ;;  %v243_v6 = vld [vmem:[%s6623_s30] sm:$0xff]  ;;  %v244_v7 = vld [vmem:[%s6623_s30 + $0x8] sm:$0xff]  ;;  %s6432_s20 = sshll.u32 %s6502_s14, 4  ;;  %s6433_s20 = int_to_ptr.vmem [resolvable:$false] %s6432_s20 }
  0x3c   : > { %v324_v8 = vpack.c.bf16 %v294_v5, %v293_v3  ;;  %v6636_v9 = vpack.c.bf16 %v244_v7, %v243_v6  ;;  %v245_v10 = vld [vmem:[%s6623_s30 + $0x10] sm:$0xff]  ;;  %v246_v11 = vld [vmem:[%s6623_s30 + $0x18] sm:$0xff]  ;;  %v295_v12 = vld [vmem:[%s6628_s7 + $0x20] sm:$0xff]  ;;  %s6434_s22 = scalar_lea.vmem %s6433_s20, 512 }
  0x3d   : > { %5552 = vmatpush3.bf16.msra.mxu0 %v323_v4  ;;  %v6641_v13 = vpack.c.bf16 %v246_v11, %v245_v10  ;;  %v296_v14 = vld [vmem:[%s6628_s7 + $0x28] sm:$0xff]  ;;  %v297_v15 = vld [vmem:[%s6628_s7 + $0x30] sm:$0xff]  ;;  %v298_v16 = vld [vmem:[%s6628_s7 + $0x38] sm:$0xff] }
  0x3e   : > { %5558 = vmatpush3.bf16.msra.mxu1 %v324_v8  ;;  %5563 = vmatprep.subr.bf16.mxu0 %v6499_v0  ;;  %v325_v17 = vpack.c.bf16 %v296_v14, %v295_v12  ;;  %v326_v18 = vpack.c.bf16 %v298_v16, %v297_v15  ;;  %v247_v19 = vld [vmem:[%s6623_s30 + $0x20] sm:$0xff]  ;;  %v248_v20 = vld [vmem:[%s6623_s30 + $0x28] sm:$0xff]  ;;  %v249_v21 = vld [vmem:[%s6623_s30 + $0x30] sm:$0xff] }
  0x3f   : > { %5569 = vmatprep.subr.bf16.mxu1 %v6499_v0  ;;  %v250_v22 = vld [vmem:[%s6623_s30 + $0x38] sm:$0xff]  ;;  %v299_v23 = vld [vmem:[%s6628_s7 + $0x40] sm:$0xff]  ;;  %v300_v24 = vld [vmem:[%s6628_s7 + $0x48] sm:$0xff]  ;;  %v6665_v27 = vpack.c.bf16 %v248_v20, %v247_v19 }
  0x40   : > { %5554 = vmatmul.mubr.msk.bf16.vlgmr.msra.gmra.mrb[0].mxu0 %vm339_vm1, %v6636_v9  ;;  %v301_v25 = vld [vmem:[%s6628_s7 + $0x50] sm:$0xff]  ;;  %v302_v26 = vld [vmem:[%s6628_s7 + $0x58] sm:$0xff]  ;;  %v6668_v28 = vpack.c.bf16 %v250_v22, %v249_v21  ;;  %v327_v29 = vpack.c.bf16 %v300_v24, %v299_v23  ;;  %v251_v31 = vld [vmem:[%s6623_s30 + $0x40] sm:$0xff] }
  0x41   : > { %5560 = vmatmul.mubr.msk.bf16.vlgmr.msra.gmra.mrb[0].mxu1 %vm339_vm1, %v6641_v13  ;;  %5564 = vmatpush3.bf16.msra.mxu0 %v325_v17  ;;  %v328_v30 = vpack.c.bf16 %v302_v26, %v301_v25  ;;  %v252_v32 = vld [vmem:[%s6623_s30 + $0x48] sm:$0xff]  ;;  %v253_v33 = vld [vmem:[%s6623_s30 + $0x50] sm:$0xff]  ;;  %v254_v34 = vld [vmem:[%s6623_s30 + $0x58] sm:$0xff] }
  0x42   : > { %5570 = vmatpush3.bf16.msra.mxu1 %v326_v18  ;;  %5565 = vmatprep.mubr.msk.bf16.mxu0 %vm6500_vm0, %v6499_v0  ;;  %v303_v35 = vld [vmem:[%s6628_s7 + $0x60] sm:$0xff]  ;;  %v304_v36 = vld [vmem:[%s6628_s7 + $0x68] sm:$0xff]  ;;  %v305_v37 = vld [vmem:[%s6628_s7 + $0x70] sm:$0xff]  ;;  %v6687_v39 = vpack.c.bf16 %v252_v32, %v251_v31  ;;  %v6690_v40 = vpack.c.bf16 %v254_v34, %v253_v33 }
  0x43   : > { %5571 = vmatprep.mubr.msk.bf16.mxu1 %vm6500_vm0, %v6499_v0  ;;  %5575 = vmatprep.subr.bf16.mxu0 %v6499_v0  ;;  %v306_v38 = vld [vmem:[%s6628_s7 + $0x78] sm:$0xff]  ;;  %v329_v41 = vpack.c.bf16 %v304_v36, %v303_v35  ;;  %v255_v43 = vld [vmem:[%s6623_s30 + $0x60] sm:$0xff]  ;;  %v256_v44 = vld [vmem:[%s6623_s30 + $0x68] sm:$0xff] }
  0x44   : > { %5581 = vmatprep.subr.bf16.mxu1 %v6499_v0  ;;  %v330_v42 = vpack.c.bf16 %v306_v38, %v305_v37  ;;  %v257_v45 = vld [vmem:[%s6623_s30 + $0x70] sm:$0xff]  ;;  %v258_v46 = vld [vmem:[%s6623_s30 + $0x78] sm:$0xff]  ;;  %v307_v47 = vld [vmem:[%s6628_s7 + $0x80] sm:$0xff]  ;;  %v6709_v51 = vpack.c.bf16 %v256_v44, %v255_v43 }
  0x45   : > { %v308_v48 = vld [vmem:[%s6628_s7 + $0x88] sm:$0xff]  ;;  %v309_v49 = vld [vmem:[%s6628_s7 + $0x90] sm:$0xff]  ;;  %v310_v50 = vld [vmem:[%s6628_s7 + $0x98] sm:$0xff]  ;;  %v6712_v52 = vpack.c.bf16 %v258_v46, %v257_v45 }
  0x46   : > { %v331_v53 = vpack.c.bf16 %v308_v48, %v307_v47  ;;  %v332_v54 = vpack.c.bf16 %v310_v50, %v309_v49  ;;  %v259_v55 = vld [vmem:[%s6623_s30 + $0x80] sm:$0xff]  ;;  %v260_v56 = vld [vmem:[%s6623_s30 + $0x88] sm:$0xff]  ;;  %v261_v57 = vld [vmem:[%s6623_s30 + $0x90] sm:$0xff] }
  0x47   : > { %v262_v58 = vld [vmem:[%s6623_s30 + $0x98] sm:$0xff]  ;;  %v311_v59 = vld [vmem:[%s6628_s7 + $0xa0] sm:$0xff]  ;;  %v312_v60 = vld [vmem:[%s6628_s7 + $0xa8] sm:$0xff]  ;;  %v6731_v63 = vpack.c.bf16 %v260_v56, %v259_v55 }
  0x48   : > { %5566 = vmatmul.mubr.msk.bf16.vlgmr.msra.gmra.mrb[4].mxu0 %vm339_vm1, %v6665_v27  ;;  %v313_v61 = vld [vmem:[%s6628_s7 + $0xb0] sm:$0xff]  ;;  %v314_v62 = vld [vmem:[%s6628_s7 + $0xb8] sm:$0xff]  ;;  %v6734_v1 = vpack.c.bf16 %v262_v58, %v261_v57  ;;  %v333_v2 = vpack.c.bf16 %v312_v60, %v311_v59  ;;  %v263_v4 = vld [vmem:[%s6623_s30 + $0xa0] sm:$0xff] }
  0x49   : > { %5572 = vmatmul.mubr.msk.bf16.vlgmr.msra.gmra.mrb[4].mxu1 %vm339_vm1, %v6668_v28  ;;  %5576 = vmatpush3.bf16.msra.mxu0 %v327_v29  ;;  %v334_v3 = vpack.c.bf16 %v314_v62, %v313_v61  ;;  %v264_v5 = vld [vmem:[%s6623_s30 + $0xa8] sm:$0xff]  ;;  %v265_v6 = vld [vmem:[%s6623_s30 + $0xb0] sm:$0xff]  ;;  %v266_v7 = vld [vmem:[%s6623_s30 + $0xb8] sm:$0xff] }
  0x4a   : > { %5582 = vmatpush3.bf16.msra.mxu1 %v328_v30  ;;  %5577 = vmatprep.mubr.msk.bf16.mxu0 %vm6500_vm0, %v6499_v0  ;;  %v315_v8 = vld [vmem:[%s6628_s7 + $0xc0] sm:$0xff]  ;;  %v316_v10 = vld [vmem:[%s6628_s7 + $0xc8] sm:$0xff]  ;;  %v317_v11 = vld [vmem:[%s6628_s7 + $0xd0] sm:$0xff]  ;;  %v6753_v14 = vpack.c.bf16 %v264_v5, %v263_v4  ;;  %v6756_v15 = vpack.c.bf16 %v266_v7, %v265_v6 }
  0x4b   : > { %5583 = vmatprep.mubr.msk.bf16.mxu1 %vm6500_vm0, %v6499_v0  ;;  %5587 = vmatprep.subr.bf16.mxu0 %v6499_v0  ;;  %v318_v12 = vld [vmem:[%s6628_s7 + $0xd8] sm:$0xff]  ;;  %v335_v16 = vpack.c.bf16 %v316_v10, %v315_v8  ;;  %v267_v18 = vld [vmem:[%s6623_s30 + $0xc0] sm:$0xff]  ;;  %v268_v19 = vld [vmem:[%s6623_s30 + $0xc8] sm:$0xff] }
  0x4c   : > { %5593 = vmatprep.subr.bf16.mxu1 %v6499_v0  ;;  %v336_v17 = vpack.c.bf16 %v318_v12, %v317_v11  ;;  %v269_v20 = vld [vmem:[%s6623_s30 + $0xd0] sm:$0xff]  ;;  %v270_v21 = vld [vmem:[%s6623_s30 + $0xd8] sm:$0xff]  ;;  %v319_v22 = vld [vmem:[%s6628_s7 + $0xe0] sm:$0xff]  ;;  %v6775_v26 = vpack.c.bf16 %v268_v19, %v267_v18 }
  0x4d   : > { %v320_v23 = vld [vmem:[%s6628_s7 + $0xe8] sm:$0xff]  ;;  %v321_v24 = vld [vmem:[%s6628_s7 + $0xf0] sm:$0xff]  ;;  %v322_v25 = vld [vmem:[%s6628_s7 + $0xf8] sm:$0xff]  ;;  %v6778_v29 = vpack.c.bf16 %v270_v21, %v269_v20  ;;  %s7378_s7 = scalar_lea.vmem [#allocation5], %s5049_s6 }
  0x4e   : > { %v337_v30 = vpack.c.bf16 %v320_v23, %v319_v22  ;;  %v6344_v31 = vld [vmem:[#allocation2] sm:$0xff]   ;;  %v338_v32 = vpack.c.bf16 %v322_v25, %v321_v24  ;;  %v272_v34 = vld [vmem:[%s6623_s30 + $0xe8] sm:$0xff]  ;;  %v273_v35 = vld [vmem:[%s6623_s30 + $0xf0] sm:$0xff]  ;;  %s4957_s9 = sshll.u32 %s7378_s7, 4  ;;  %s7405_s9 = int_to_ptr.vmem [resolvable:$true] %s4957_s9 }
  0x4f   : > { %v271_v33 = vld [vmem:[%s6623_s30 + $0xe0] sm:$0xff]  ;;  %v274_v36 = vld [vmem:[%s6623_s30 + $0xf8] sm:$0xff]  ;;  %v6345_v38 = vld [vmem:[#allocation2 + $0x8] sm:$0xff]   ;;  %s6428_s13 = scalar_lea.vmem %s7405_s9, 256  ;;  %p6435_p2 = scmp.lt.s32.totalorder %s7405_s9, %s6433_s20 }
  0x50   : > { %5578 = vmatmul.mubr.msk.bf16.vlgmr.msra.gmra.mrb[8].mxu0 %vm339_vm1, %v6687_v39  ;;  %v6792_v37 = vpack.c.bf16 %v272_v34, %v271_v33  ;;  %v6347_v43 = vld [vmem:[#allocation2 + $0x18] sm:$0xff]   ;;  %v6348_v44 = vld [vmem:[#allocation2 + $0x20] sm:$0xff]   ;;  %v6349_v45 = vld [vmem:[#allocation2 + $0x28] sm:$0xff]   ;;  %p6429_p6 = scmp.ne.s32.totalorder %s7405_s9, %s6428_s13  ;;  %p6436_p3 = scmp.lt.s32.totalorder %s6434_s22, %s6428_s13 }
  0x51   : > { %5584 = vmatmul.mubr.msk.bf16.vlgmr.msra.gmra.mrb[8].mxu1 %vm339_vm1, %v6690_v40  ;;  %5588 = vmatpush3.bf16.msra.mxu0 %v329_v41  ;;  %v6795_v41 = vpack.c.bf16 %v274_v36, %v273_v35  ;;  %v6350_v46 = vld [vmem:[#allocation2 + $0x30] sm:$0xff]   ;;  %v6351_v47 = vld [vmem:[#allocation2 + $0x38] sm:$0xff]  }
  0x52   : > { %5594 = vmatpush3.bf16.msra.mxu1 %v330_v42  ;;  %5589 = vmatprep.mubr.msk.bf16.mxu0 %vm6500_vm0, %v6499_v0  ;;  %v6346_v42 = vld [vmem:[#allocation2 + $0x10] sm:$0xff]   ;;  %p6430_p10 = pnand %p6429_p6, %p7484_p9  ;;  %p6437_p4 = por %p6436_p3, %p6435_p2 }
  0x53   : > { %5595 = vmatprep.mubr.msk.bf16.mxu1 %vm6500_vm0, %v6499_v0  ;;  %5599 = vmatprep.subr.bf16.mxu0 %v6499_v0 }
  0x54   : > { %5605 = vmatprep.subr.bf16.mxu1 %v6499_v0  ;;  %p6431_p12 = pneg %p6430_p10 }
  0x56   : > { %p6438_p7 = pnand %p6437_p4, %p6431_p12 }
  0x58   : > { %5590 = vmatmul.mubr.msk.bf16.vlgmr.msra.gmra.mrb[12].mxu0 %vm339_vm1, %v6709_v51 }
  0x59   : > { %5596 = vmatmul.mubr.msk.bf16.vlgmr.msra.gmra.mrb[12].mxu1 %vm339_vm1, %v6712_v52  ;;  %5600 = vmatpush3.bf16.msra.mxu0 %v331_v53 }
  0x5a   : > { %5606 = vmatpush3.bf16.msra.mxu1 %v332_v54  ;;  %5601 = vmatprep.mubr.msk.bf16.mxu0 %vm6500_vm0, %v6499_v0 }
  0x5b   : > { %5607 = vmatprep.mubr.msk.bf16.mxu1 %vm6500_vm0, %v6499_v0  ;;  %5611 = vmatprep.subr.bf16.mxu0 %v6499_v0 }
  0x5c   : > { %5617 = vmatprep.subr.bf16.mxu1 %v6499_v0 }
  0x60   : > { %5602 = vmatmul.mubr.msk.bf16.vlgmr.msra.gmra.mrb[16].mxu0 %vm339_vm1, %v6731_v63 }
  0x61   : > { %5608 = vmatmul.mubr.msk.bf16.vlgmr.msra.gmra.mrb[16].mxu1 %vm339_vm1, %v6734_v1  ;;  %5612 = vmatpush3.bf16.msra.mxu0 %v333_v2 }
  0x62   : > { %5618 = vmatpush3.bf16.msra.mxu1 %v334_v3  ;;  %5613 = vmatprep.mubr.msk.bf16.mxu0 %vm6500_vm0, %v6499_v0 }
  0x63   : > { %5619 = vmatprep.mubr.msk.bf16.mxu1 %vm6500_vm0, %v6499_v0  ;;  %5623 = vmatprep.subr.bf16.mxu0 %v6499_v0 }
  0x64   : > { %5629 = vmatprep.subr.bf16.mxu1 %v6499_v0 }
  0x68   : > { %5614 = vmatmul.mubr.msk.bf16.vlgmr.msra.gmra.mrb[20].mxu0 %vm339_vm1, %v6753_v14 }
  0x69   : > { %5620 = vmatmul.mubr.msk.bf16.vlgmr.msra.gmra.mrb[20].mxu1 %vm339_vm1, %v6756_v15  ;;  %5624 = vmatpush3.bf16.msra.mxu0 %v335_v16 }
  0x6a   : > { %5630 = vmatpush3.bf16.msra.mxu1 %v336_v17  ;;  %5625 = vmatprep.mubr.msk.bf16.mxu0 %vm6500_vm0, %v6499_v0 }
  0x6b   : > { %5631 = vmatprep.mubr.msk.bf16.mxu1 %vm6500_vm0, %v6499_v0  ;;  %5635 = vmatprep.subr.bf16.mxu0 %v6499_v0 }
  0x6c   : > { %5641 = vmatprep.subr.bf16.mxu1 %v6499_v0 }
  0x70   : > { %5626 = vmatmul.mubr.msk.bf16.vlgmr.msra.gmra.mrb[24].mxu0 %vm339_vm1, %v6775_v26 }
  0x71   : > { %5632 = vmatmul.mubr.msk.bf16.vlgmr.msra.gmra.mrb[24].mxu1 %vm339_vm1, %v6778_v29  ;;  %5636 = vmatpush3.bf16.msra.mxu0 %v337_v30 }
  0x72   : > { %5642 = vmatpush3.bf16.msra.mxu1 %v338_v32  ;;  %5637 = vmatprep.mubr.msk.bf16.mxu0 %vm6500_vm0, %v6499_v0 }
  0x73   : > { %5643 = vmatprep.mubr.msk.bf16.mxu1 %vm6500_vm0, %v6499_v0  ;;  %5647 = vmatprep.subr.bf16.mxu0 %v6344_v31 }
  0x74   : > { %5695 = vmatprep.subr.bf16.mxu1 %v6499_v0 }
  0x78   : > { %5638 = vmatmul.mubr.msk.bf16.vlgmr.msra.gmra.mrb[28].mxu0 %vm339_vm1, %v6792_v37 }
  0x79   : > { %5644 = vmatmul.mubr.msk.bf16.vlgmr.msra.gmra.mrb[28].mxu1 %vm339_vm1, %v6795_v41  ;;  %5648 = vmatpush3.bf16.msra.mxu0 %v6344_v31 }
  0x7a   : > { %5649 = vmatprep.subr.bf16.mxu0 %v6345_v38  ;;  %5697 = vmatprep.mubr.msk.bf16.mxu1 %vm6500_vm0, %v6499_v0 }
  0x7d   : > { %5650 = vmatpush3.bf16.msra.mxu0 %v6345_v38 }
  0x7e   : > { %5651 = vmatprep.subr.bf16.mxu0 %v6346_v42 }
  0x81   : > { %5652 = vmatpush3.bf16.msra.mxu0 %v6346_v42 }
  0x82   : > { %5653 = vmatprep.subr.bf16.mxu0 %v6347_v43 }
  0x85   : > { %5654 = vmatpush3.bf16.msra.mxu0 %v6347_v43 }
  0x86   : > { %5655 = vmatprep.subr.bf16.mxu0 %v6348_v44 }
  0x89   : > { %5656 = vmatpush3.bf16.msra.mxu0 %v6348_v44 }
  0x8a   : > { %5657 = vmatprep.subr.bf16.mxu0 %v6349_v45 }
  0x8d   : > { %5658 = vmatpush3.bf16.msra.mxu0 %v6349_v45 }
  0x8e   : > { %5659 = vmatprep.subr.bf16.mxu0 %v6350_v46 }
  0x91   : > { %5660 = vmatpush3.bf16.msra.mxu0 %v6350_v46 }
  0x92   : > { %5661 = vmatprep.subr.bf16.mxu0 %v6351_v47 }
  0x95   : > { %5662 = vmatpush3.bf16.msra.mxu0 %v6351_v47 }
  0x96   : > { %5761 = vmatprep.subr.bf16.mxu0 %v6499_v0 }
 0x113   : > { %v377_v48 = vpop.f32.mrb[0].mxu0 }
 0x114   : > { %v421_v49 = vpop.f32.mrb[0].mxu1  ;;  %v5555_v50 = vpop.f32.mrb[1].mxu0 }
 0x115   : > { %v5561_v53 = vpop.f32.mrb[1].mxu1  ;;  %v380_v54 = vpop.f32.mrb[2].mxu0 }
 0x116   : > { %v1060_v55 = vpack.c.bf16 %v380_v54, %v377_v48  ;;  %v424_v56 = vpop.f32.mrb[2].mxu1  ;;  %v5556_v57 = vpop.f32.mrb[3].mxu0 }
 0x117   : > { %v1061_v58 = vpack.c.bf16 %v424_v56, %v421_v49  ;;  %v5562_v59 = vpop.f32.mrb[3].mxu1 }
 0x118   : > { %5663 = vmatprep.mubr.bf16.mxu0 %v1060_v55 }
 0x119   : > { %5664 = vmatmul.mubr.bf16.vlgmr.msra.gmra.mrb[32].mxu0 %v1061_v58 }
 0x11b   : > { %v465_v60 = vpop.f32.mrb[4].mxu0 }
 0x11c   : > { %v5567_v61 = vpop.f32.mrb[5].mxu0  ;;  %v509_v62 = vpop.f32.mrb[4].mxu1 }
 0x11d   : > { %v468_v2 = vpop.f32.mrb[6].mxu0  ;;  %v5573_v3 = vpop.f32.mrb[5].mxu1 }
 0x11e   : > { %v1062_v4 = vpack.c.bf16 %v468_v2, %v465_v60  ;;  %v512_v5 = vpop.f32.mrb[6].mxu1  ;;  %v5568_v6 = vpop.f32.mrb[7].mxu0 }
 0x11f   : > { %v1063_v7 = vpack.c.bf16 %v512_v5, %v509_v62  ;;  %v5574_v8 = vpop.f32.mrb[7].mxu1 }
 0x120   : > { %5667 = vmatprep.mubr.bf16.mxu0 %v1062_v4 }
 0x121   : > { %5668 = vmatmul.mubr.bf16.gmra.mrb[36].mxu0 %v1063_v7 }
 0x123   : > { %v553_v10 = vpop.f32.mrb[8].mxu0 }
 0x124   : > { %v5579_v11 = vpop.f32.mrb[9].mxu0  ;;  %v597_v12 = vpop.f32.mrb[8].mxu1 }
 0x125   : > { %v556_v16 = vpop.f32.mrb[10].mxu0  ;;  %v5585_v17 = vpop.f32.mrb[9].mxu1 }
 0x126   : > { %v1064_v18 = vpack.c.bf16 %v556_v16, %v553_v10  ;;  %v600_v19 = vpop.f32.mrb[10].mxu1  ;;  %v5580_v20 = vpop.f32.mrb[11].mxu0 }
 0x127   : > { %v1065_v21 = vpack.c.bf16 %v600_v19, %v597_v12  ;;  %v5586_v22 = vpop.f32.mrb[11].mxu1 }
 0x128   : > { %5671 = vmatprep.mubr.bf16.mxu0 %v1064_v18 }
 0x129   : > { %5672 = vmatmul.mubr.bf16.gmra.mrb[40].mxu0 %v1065_v21 }
 0x12b   : > { %v641_v23 = vpop.f32.mrb[12].mxu0 }
 0x12c   : > { %v5591_v24 = vpop.f32.mrb[13].mxu0  ;;  %v685_v25 = vpop.f32.mrb[12].mxu1 }
 0x12d   : > { %v644_v30 = vpop.f32.mrb[14].mxu0  ;;  %v5597_v31 = vpop.f32.mrb[13].mxu1 }
 0x12e   : > { %v1066_v32 = vpack.c.bf16 %v644_v30, %v641_v23  ;;  %v688_v33 = vpop.f32.mrb[14].mxu1  ;;  %v5592_v34 = vpop.f32.mrb[15].mxu0  ;;  %v6809_v30 = vld [vmem:[%s7456_s3] ss:$0 sm:$0xff] }
 0x12f   : > { %v1067_v35 = vpack.c.bf16 %v688_v33, %v685_v25  ;;  %v5598_v36 = vpop.f32.mrb[15].mxu1 }
 0x130   : > { %5675 = vmatprep.mubr.bf16.mxu0 %v1066_v32 }
 0x131   : > { %5676 = vmatmul.mubr.bf16.gmra.mrb[44].mxu0 %v1067_v35 }
 0x133   : > { %v729_v38 = vpop.f32.mrb[16].mxu0 }
 0x134   : > { %v5603_v42 = vpop.f32.mrb[17].mxu0  ;;  %v773_v43 = vpop.f32.mrb[16].mxu1 }
 0x135   : > { %v732_v44 = vpop.f32.mrb[18].mxu0  ;;  %v5609_v45 = vpop.f32.mrb[17].mxu1 }
 0x136   : > { %v1068_v46 = vpack.c.bf16 %v732_v44, %v729_v38  ;;  %v776_v47 = vpop.f32.mrb[18].mxu1  ;;  %v5604_v48 = vpop.f32.mrb[19].mxu0 }
 0x137   : > { %v1069_v49 = vpack.c.bf16 %v776_v47, %v773_v43  ;;  %v5610_v50 = vpop.f32.mrb[19].mxu1 }
 0x138   : > { %5679 = vmatprep.mubr.bf16.mxu0 %v1068_v46 }
 0x139   : > { %5680 = vmatmul.mubr.bf16.gmra.mrb[48].mxu0 %v1069_v49 }
 0x13b   : > { %v817_v53 = vpop.f32.mrb[20].mxu0 }
 0x13c   : > { %v5615_v54 = vpop.f32.mrb[21].mxu0  ;;  %v861_v55 = vpop.f32.mrb[20].mxu1 }
 0x13d   : > { %v820_v56 = vpop.f32.mrb[22].mxu0  ;;  %v5621_v57 = vpop.f32.mrb[21].mxu1 }
 0x13e   : > { %v1070_v58 = vpack.c.bf16 %v820_v56, %v817_v53  ;;  %v864_v59 = vpop.f32.mrb[22].mxu1  ;;  %v5616_v60 = vpop.f32.mrb[23].mxu0 }
 0x13f   : > { %v1071_v61 = vpack.c.bf16 %v864_v59, %v861_v55  ;;  %v5622_v62 = vpop.f32.mrb[23].mxu1 }
 0x140   : > { %5683 = vmatprep.mubr.bf16.mxu0 %v1070_v58 }
 0x141   : > { %5684 = vmatmul.mubr.bf16.gmra.mrb[52].mxu0 %v1071_v61 }
 0x143   : > { %v905_v2 = vpop.f32.mrb[24].mxu0 }
 0x144   : > { %v5627_v3 = vpop.f32.mrb[25].mxu0  ;;  %v949_v4 = vpop.f32.mrb[24].mxu1 }
 0x145   : > { %v908_v5 = vpop.f32.mrb[26].mxu0  ;;  %v5633_v6 = vpop.f32.mrb[25].mxu1 }
 0x146   : > { %v1072_v7 = vpack.c.bf16 %v908_v5, %v905_v2  ;;  %v952_v8 = vpop.f32.mrb[26].mxu1  ;;  %v5628_v10 = vpop.f32.mrb[27].mxu0 }
 0x147   : > { %v1073_v11 = vpack.c.bf16 %v952_v8, %v949_v4  ;;  %v5634_v12 = vpop.f32.mrb[27].mxu1 }
 0x148   : > { %5687 = vmatprep.mubr.bf16.mxu0 %v1072_v7 }
 0x149   : > { %5688 = vmatmul.mubr.bf16.gmra.mrb[56].mxu0 %v1073_v11 }
 0x14b   : > { %v993_v16 = vpop.f32.mrb[28].mxu0 }
 0x14c   : > { %v5639_v17 = vpop.f32.mrb[29].mxu0  ;;  %v1037_v18 = vpop.f32.mrb[28].mxu1 }
 0x14d   : > { %v996_v19 = vpop.f32.mrb[30].mxu0  ;;  %v5645_v20 = vpop.f32.mrb[29].mxu1 }
 0x14e   : > { %v1074_v21 = vpack.c.bf16 %v996_v19, %v993_v16  ;;  %v1040_v22 = vpop.f32.mrb[30].mxu1  ;;  %v5640_v23 = vpop.f32.mrb[31].mxu0 }
 0x14f   : > { %v1075_v24 = vpack.c.bf16 %v1040_v22, %v1037_v18  ;;  %v5646_v25 = vpop.f32.mrb[31].mxu1 }
 0x150   : > { %5691 = vmatprep.mubr.bf16.mxu0 %v1074_v21 }
 0x151   : > { %5692 = vmatmul.mubr.bf16.gmra.mrb[60].mxu0 %v1075_v24 }
 0x152   : > { %5763 = vmatprep.mubr.msk.bf16.mxu0 %vm6500_vm0, %v6499_v0 }
 0x1ec   : > { %v5665_v31 = vpop.f32.mrb[32].mxu0 }
 0x1ed   : > { %v1172_v32 = vadd.f32 %v5665_v31, %v6809_v30  ;;  %v1163_v33 = vpop.f32.mrb[33].mxu0 }
 0x1ee   : > { %v1164_v34 = vadd.f32 %v6809_v30, %v1163_v33  ;;  %v5666_v35 = vpop.f32.mrb[34].mxu0 }
 0x1ef   : > { %v1175_v36 = vadd.f32 %v5666_v35, %v6809_v30  ;;  %v1166_v38 = vpop.f32.mrb[35].mxu0  ;;  %v1292_v43 = vmax.f32 %v1172_v32, 0.0 }
 0x1f0   : > { %v1167_v42 = vadd.f32 %v6809_v30, %v1166_v38  ;;  %v1290_v45 = vmax.f32 %v1164_v34, 0.0 }
 0x1f1   : > { %v1293_v44 = vmax.f32 %v1175_v36, 0.0 }
 0x1f2   : > { %v1291_v46 = vmax.f32 %v1167_v42, 0.0 }
 0x1f3   : > { %v1323_v47 = vpack.c.bf16 %v1293_v44, %v1292_v43 }
 0x1f4   : > { %v1322_v48 = vpack.c.bf16 %v1291_v46, %v1290_v45  ;;  %v5669_v49 = vpop.f32.mrb[36].mxu0 }
 0x1f5   : > { %v1188_v50 = vadd.f32 %v5669_v49, %v6809_v30  ;;  %v1179_v53 = vpop.f32.mrb[37].mxu0 }
 0x1f6   : > { %5696 = vmatpush3.bf16.msra.mxu1 %v1322_v48  ;;  %v1180_v54 = vadd.f32 %v6809_v30, %v1179_v53  ;;  %v5670_v55 = vpop.f32.mrb[38].mxu0 }
 0x1f7   : > { %v1296_v56 = vmax.f32 %v1188_v50, 0.0  ;;  %v1191_v57 = vadd.f32 %v5670_v55, %v6809_v30  ;;  %5701 = vmatprep.subr.bf16.mxu1 %v6499_v0  ;;  %v1182_v58 = vpop.f32.mrb[39].mxu0 }
 0x1f8   : > { %v1294_v59 = vmax.f32 %v1180_v54, 0.0  ;;  %v1183_v60 = vadd.f32 %v6809_v30, %v1182_v58 }
 0x1f9   : > { %v1297_v61 = vmax.f32 %v1191_v57, 0.0  ;;  %5698 = vmatmul.mubr.msk.bf16.vlgmr.msra.gmra.mrb[32].mxu1 %vm339_vm1, %v6636_v9 }
 0x1fa   : > { %v1295_v62 = vmax.f32 %v1183_v60, 0.0  ;;  %5702 = vmatpush3.bf16.msra.mxu1 %v1323_v47  ;;  %5703 = vmatprep.mubr.msk.bf16.mxu1 %vm6500_vm0, %v6499_v0 }
 0x1fb   : > { %v1325_v2 = vpack.c.bf16 %v1297_v61, %v1296_v56  ;;  %5707 = vmatprep.subr.bf16.mxu1 %v6499_v0 }
 0x1fc   : > { %v1324_v3 = vpack.c.bf16 %v1295_v62, %v1294_v59  ;;  %v5673_v4 = vpop.f32.mrb[40].mxu0 }
 0x1fd   : > { %v1204_v5 = vadd.f32 %v5673_v4, %v6809_v30  ;;  %v1195_v6 = vpop.f32.mrb[41].mxu0 }
 0x1fe   : > { %v1196_v7 = vadd.f32 %v6809_v30, %v1195_v6  ;;  %v5674_v8 = vpop.f32.mrb[42].mxu0 }
 0x1ff   : > { %v1300_v10 = vmax.f32 %v1204_v5, 0.0  ;;  %v1207_v11 = vadd.f32 %v5674_v8, %v6809_v30  ;;  %v1198_v12 = vpop.f32.mrb[43].mxu0 }
 0x200   : > { %v1298_v16 = vmax.f32 %v1196_v7, 0.0  ;;  %v1199_v17 = vadd.f32 %v6809_v30, %v1198_v12 }
 0x201   : > { %5704 = vmatmul.mubr.msk.bf16.vlgmr.msra.gmra.mrb[36].mxu1 %vm339_vm1, %v6641_v13  ;;  %v1301_v18 = vmax.f32 %v1207_v11, 0.0 }
 0x202   : > { %5708 = vmatpush3.bf16.msra.mxu1 %v1324_v3  ;;  %5709 = vmatprep.mubr.msk.bf16.mxu1 %vm6500_vm0, %v6499_v0  ;;  %v1299_v19 = vmax.f32 %v1199_v17, 0.0 }
 0x203   : > { %5713 = vmatprep.subr.bf16.mxu1 %v6499_v0  ;;  %v1327_v20 = vpack.c.bf16 %v1301_v18, %v1300_v10 }
 0x204   : > { %v1326_v21 = vpack.c.bf16 %v1299_v19, %v1298_v16  ;;  %v5677_v22 = vpop.f32.mrb[44].mxu0 }
 0x205   : > { %v1220_v23 = vadd.f32 %v5677_v22, %v6809_v30  ;;  %v1211_v24 = vpop.f32.mrb[45].mxu0 }
 0x206   : > { %v1212_v25 = vadd.f32 %v6809_v30, %v1211_v24  ;;  %v5678_v31 = vpop.f32.mrb[46].mxu0 }
 0x207   : > { %v1304_v32 = vmax.f32 %v1220_v23, 0.0  ;;  %v1223_v33 = vadd.f32 %v5678_v31, %v6809_v30  ;;  %v1214_v34 = vpop.f32.mrb[47].mxu0 }
 0x208   : > { %v1302_v35 = vmax.f32 %v1212_v25, 0.0  ;;  %v1215_v36 = vadd.f32 %v6809_v30, %v1214_v34 }
 0x209   : > { %5710 = vmatmul.mubr.msk.bf16.vlgmr.msra.gmra.mrb[40].mxu1 %vm339_vm1, %v6665_v27  ;;  %v1305_v38 = vmax.f32 %v1223_v33, 0.0 }
 0x20a   : > { %5714 = vmatpush3.bf16.msra.mxu1 %v1325_v2  ;;  %5715 = vmatprep.mubr.msk.bf16.mxu1 %vm6500_vm0, %v6499_v0  ;;  %v1303_v42 = vmax.f32 %v1215_v36, 0.0 }
 0x20b   : > { %5719 = vmatprep.subr.bf16.mxu1 %v6499_v0  ;;  %v6843_v43 = vpack.c.bf16 %v1305_v38, %v1304_v32 }
 0x20c   : > { %v1328_v44 = vpack.c.bf16 %v1303_v42, %v1302_v35  ;;  %v5681_v45 = vpop.f32.mrb[48].mxu0 }
 0x20d   : > { %v1236_v46 = vadd.f32 %v5681_v45, %v6809_v30  ;;  %v1227_v47 = vpop.f32.mrb[49].mxu0 }
 0x20e   : > { %v1228_v48 = vadd.f32 %v6809_v30, %v1227_v47  ;;  %v5682_v49 = vpop.f32.mrb[50].mxu0 }
 0x20f   : > { %v1308_v50 = vmax.f32 %v1236_v46, 0.0  ;;  %v1239_v53 = vadd.f32 %v5682_v49, %v6809_v30  ;;  %v1230_v54 = vpop.f32.mrb[51].mxu0 }
 0x210   : > { %v1306_v55 = vmax.f32 %v1228_v48, 0.0  ;;  %v1231_v56 = vadd.f32 %v6809_v30, %v1230_v54 }
 0x211   : > { %5716 = vmatmul.mubr.msk.bf16.vlgmr.msra.gmra.mrb[44].mxu1 %vm339_vm1, %v6668_v28  ;;  %v1309_v57 = vmax.f32 %v1239_v53, 0.0 }
 0x212   : > { %5720 = vmatpush3.bf16.msra.mxu1 %v1326_v21  ;;  %5721 = vmatprep.mubr.msk.bf16.mxu1 %vm6500_vm0, %v6499_v0  ;;  %v1307_v58 = vmax.f32 %v1231_v56, 0.0 }
 0x213   : > { %5725 = vmatprep.subr.bf16.mxu1 %v6499_v0  ;;  %v6854_v59 = vpack.c.bf16 %v1309_v57, %v1308_v50  ;;  %v6353_v57 = vld [vmem:[#allocation2 + $0x48] sm:$0xff]  }
 0x214   : > { %v6856_v60 = vpack.c.bf16 %v1307_v58, %v1306_v55  ;;  %v5685_v61 = vpop.f32.mrb[52].mxu0  ;;  %v6354_v58 = vld [vmem:[#allocation2 + $0x50] sm:$0xff]  }
 0x215   : > { %v1252_v62 = vadd.f32 %v5685_v61, %v6809_v30  ;;  %v1243_v2 = vpop.f32.mrb[53].mxu0  ;;  %v6357_v61 = vld [vmem:[#allocation2 + $0x68] sm:$0xff]  }
 0x216   : > { %v1244_v3 = vadd.f32 %v6809_v30, %v1243_v2  ;;  %v5686_v4 = vpop.f32.mrb[54].mxu0  ;;  %v6359_v2 = vld [vmem:[#allocation2 + $0x78] sm:$0xff]  }
 0x217   : > { %v1312_v5 = vmax.f32 %v1252_v62, 0.0  ;;  %v1255_v6 = vadd.f32 %v5686_v4, %v6809_v30  ;;  %v1246_v7 = vpop.f32.mrb[55].mxu0  ;;  %v6358_v62 = vld [vmem:[#allocation2 + $0x70] sm:$0xff]  }
 0x218   : > { %v1310_v8 = vmax.f32 %v1244_v3, 0.0  ;;  %v1247_v10 = vadd.f32 %v6809_v30, %v1246_v7 }
 0x219   : > { %5722 = vmatmul.mubr.msk.bf16.vlgmr.msra.gmra.mrb[48].mxu1 %vm339_vm1, %v6687_v39  ;;  %v1313_v11 = vmax.f32 %v1255_v6, 0.0 }
 0x21a   : > { %5726 = vmatpush3.bf16.msra.mxu1 %v1327_v20  ;;  %5727 = vmatprep.mubr.msk.bf16.mxu1 %vm6500_vm0, %v6499_v0  ;;  %v1311_v12 = vmax.f32 %v1247_v10, 0.0 }
 0x21b   : > { %5731 = vmatprep.subr.bf16.mxu1 %v6499_v0  ;;  %v1333_v16 = vpack.c.bf16 %v1313_v11, %v1312_v5 }
 0x21c   : > { %v1332_v17 = vpack.c.bf16 %v1311_v12, %v1310_v8  ;;  %v5689_v18 = vpop.f32.mrb[56].mxu0 }
 0x21d   : > { %5762 = vmatpush3.bf16.msra.mxu0 %v1333_v16  ;;  %v1268_v19 = vadd.f32 %v5689_v18, %v6809_v30  ;;  %v1259_v21 = vpop.f32.mrb[57].mxu0 }
 0x21e   : > { %v1260_v22 = vadd.f32 %v6809_v30, %v1259_v21  ;;  %v5690_v23 = vpop.f32.mrb[58].mxu0  ;;  %5773 = vmatprep.subr.bf16.mxu0 %v6499_v0 }
 0x21f   : > { %v1316_v24 = vmax.f32 %v1268_v19, 0.0  ;;  %v1271_v20 = vadd.f32 %v5690_v23, %v6809_v30  ;;  %v1262_v25 = vpop.f32.mrb[59].mxu0 }
 0x220   : > { %5764 = vmatmul.mubr.msk.bf16.vlgmr.msra.gmra.mrb[64].mxu0 %vm339_vm1, %v6756_v15  ;;  %v1314_v31 = vmax.f32 %v1260_v22, 0.0  ;;  %v1263_v32 = vadd.f32 %v6809_v30, %v1262_v25 }
 0x221   : > { %5728 = vmatmul.mubr.msk.bf16.vlgmr.msra.gmra.mrb[52].mxu1 %vm339_vm1, %v6690_v40  ;;  %v1317_v33 = vmax.f32 %v1271_v20, 0.0  ;;  %5775 = vmatprep.mubr.msk.bf16.mxu0 %vm6500_vm0, %v6499_v0 }
 0x222   : > { %5732 = vmatpush3.bf16.msra.mxu1 %v1328_v44  ;;  %5733 = vmatprep.mubr.msk.bf16.mxu1 %vm6500_vm0, %v6499_v0  ;;  %v1315_v34 = vmax.f32 %v1263_v32, 0.0 }
 0x223   : > { %5737 = vmatprep.subr.bf16.mxu1 %v6499_v0  ;;  %v1335_v35 = vpack.c.bf16 %v1317_v33, %v1316_v24 }
 0x224   : > { %v1334_v36 = vpack.c.bf16 %v1315_v34, %v1314_v31  ;;  %v5693_v38 = vpop.f32.mrb[60].mxu0 }
 0x225   : > { %v1284_v42 = vadd.f32 %v5693_v38, %v6809_v30  ;;  %v1275_v45 = vpop.f32.mrb[61].mxu0  ;;  %5774 = vmatpush3.bf16.msra.mxu0 %v1335_v35 }
 0x226   : > { %v1276_v46 = vadd.f32 %v6809_v30, %v1275_v45  ;;  %v5694_v47 = vpop.f32.mrb[62].mxu0  ;;  %5785 = vmatprep.subr.bf16.mxu0 %v6499_v0 }
 0x227   : > { %v1320_v48 = vmax.f32 %v1284_v42, 0.0  ;;  %v1287_v44 = vadd.f32 %v5694_v47, %v6809_v30  ;;  %v1278_v49 = vpop.f32.mrb[63].mxu0 }
 0x228   : > { %v1318_v50 = vmax.f32 %v1276_v46, 0.0  ;;  %v1279_v53 = vadd.f32 %v6809_v30, %v1278_v49  ;;  %5776 = vmatmul.mubr.msk.bf16.vlgmr.msra.gmra.mrb[68].mxu0 %vm339_vm1, %v6778_v29 }
 0x229   : > { %5734 = vmatmul.mubr.msk.bf16.vlgmr.msra.gmra.mrb[56].mxu1 %vm339_vm1, %v6709_v51  ;;  %v1321_v54 = vmax.f32 %v1287_v44, 0.0  ;;  %5787 = vmatprep.mubr.msk.bf16.mxu0 %vm6500_vm0, %v6499_v0 }
 0x22a   : > { %5738 = vmatpush3.bf16.msra.mxu1 %v6843_v43  ;;  %5739 = vmatprep.mubr.msk.bf16.mxu1 %vm6500_vm0, %v6499_v0  ;;  %v1319_v55 = vmax.f32 %v1279_v53, 0.0  ;;  %v6352_v43 = vld [vmem:[#allocation2 + $0x40] sm:$0xff]  }
 0x22b   : > { %5743 = vmatprep.subr.bf16.mxu1 %v6499_v0  ;;  %v1337_v56 = vpack.c.bf16 %v1321_v54, %v1320_v48 }
 0x22c   : > { %v1336_v30 = vpack.c.bf16 %v1319_v55, %v1318_v50 }
 0x22d   : > { %5786 = vmatpush3.bf16.msra.mxu0 %v1337_v56 }
 0x22e   : > { %5839 = vmatprep.subr.bf16.mxu0 %v6499_v0 }
 0x230   : > { %5788 = vmatmul.mubr.msk.bf16.vlgmr.msra.gmra.mrb[72].mxu0 %vm339_vm1, %v6795_v41 }
 0x231   : > { %5740 = vmatmul.mubr.msk.bf16.vlgmr.msra.gmra.mrb[60].mxu1 %vm339_vm1, %v6712_v52  ;;  %5841 = vmatprep.mubr.msk.bf16.mxu0 %vm6500_vm0, %v6499_v0 }
 0x232   : > { %5744 = vmatpush3.bf16.msra.mxu1 %v6856_v60  ;;  %5745 = vmatprep.mubr.msk.bf16.mxu1 %vm6500_vm0, %v6499_v0  ;;  %v6356_v60 = vld [vmem:[#allocation2 + $0x60] sm:$0xff]  }
 0x233   : > { %5749 = vmatprep.subr.bf16.mxu1 %v6499_v0 }
 0x239   : > { %5746 = vmatmul.mubr.msk.bf16.vlgmr.msra.gmra.mrb[64].mxu1 %vm339_vm1, %v6731_v63 }
 0x23a   : > { %5750 = vmatpush3.bf16.msra.mxu1 %v6854_v59  ;;  %5751 = vmatprep.mubr.msk.bf16.mxu1 %vm6500_vm0, %v6499_v0  ;;  %v6355_v59 = vld [vmem:[#allocation2 + $0x58] sm:$0xff]  }
 0x23b   : > { %5755 = vmatprep.subr.bf16.mxu1 %v6499_v0 }
 0x241   : > { %5752 = vmatmul.mubr.msk.bf16.vlgmr.msra.gmra.mrb[68].mxu1 %vm339_vm1, %v6734_v1 }
 0x242   : > { %5756 = vmatpush3.bf16.msra.mxu1 %v1332_v17  ;;  %5757 = vmatprep.mubr.msk.bf16.mxu1 %vm6500_vm0, %v6499_v0 }
 0x243   : > { %5767 = vmatprep.subr.bf16.mxu1 %v6499_v0 }
 0x249   : > { %5758 = vmatmul.mubr.msk.bf16.vlgmr.msra.gmra.mrb[72].mxu1 %vm339_vm1, %v6753_v14 }
 0x24a   : > { %5768 = vmatpush3.bf16.msra.mxu1 %v1334_v36  ;;  %5769 = vmatprep.mubr.msk.bf16.mxu1 %vm6500_vm0, %v6499_v0 }
 0x24b   : > { %5779 = vmatprep.subr.bf16.mxu1 %v6499_v0 }
 0x251   : > { %5770 = vmatmul.mubr.msk.bf16.vlgmr.msra.gmra.mrb[76].mxu1 %vm339_vm1, %v6775_v26 }
 0x252   : > { %5780 = vmatpush3.bf16.msra.mxu1 %v1336_v30  ;;  %5781 = vmatprep.mubr.msk.bf16.mxu1 %vm6500_vm0, %v6499_v0 }
 0x253   : > { %5791 = vmatprep.subr.bf16.mxu1 %v6352_v43 }
 0x259   : > { %5782 = vmatmul.mubr.msk.bf16.vlgmr.msra.gmra.mrb[80].mxu1 %vm339_vm1, %v6792_v37 }
 0x25a   : > { %5792 = vmatpush3.bf16.msra.mxu1 %v6352_v43 }
 0x25b   : > { %5793 = vmatprep.subr.bf16.mxu1 %v6353_v57 }
 0x25e   : > { %5794 = vmatpush3.bf16.msra.mxu1 %v6353_v57 }
 0x25f   : > { %5795 = vmatprep.subr.bf16.mxu1 %v6354_v58 }
 0x262   : > { %5796 = vmatpush3.bf16.msra.mxu1 %v6354_v58 }
 0x263   : > { %5797 = vmatprep.subr.bf16.mxu1 %v6355_v59 }
 0x266   : > { %5798 = vmatpush3.bf16.msra.mxu1 %v6355_v59 }
 0x267   : > { %5799 = vmatprep.subr.bf16.mxu1 %v6356_v60 }
 0x26a   : > { %5800 = vmatpush3.bf16.msra.mxu1 %v6356_v60 }
 0x26b   : > { %5801 = vmatprep.subr.bf16.mxu1 %v6357_v61 }
 0x26e   : > { %5802 = vmatpush3.bf16.msra.mxu1 %v6357_v61 }
 0x26f   : > { %5803 = vmatprep.subr.bf16.mxu1 %v6358_v62 }
 0x272   : > { %5804 = vmatpush3.bf16.msra.mxu1 %v6358_v62 }
 0x273   : > { %5805 = vmatprep.subr.bf16.mxu1 %v6359_v2 }
 0x276   : > { %5806 = vmatpush3.bf16.msra.mxu1 %v6359_v2 }
 0x277   : > { %5905 = vmatprep.subr.bf16.mxu1 %v6499_v0 }
 0x2cc   : > { %v1372_v3 = vpop.f32.mrb[32].mxu1 }
 0x2cd   : > { %v5699_v4 = vpop.f32.mrb[33].mxu1 }
 0x2ce   : > { %v1375_v5 = vpop.f32.mrb[34].mxu1 }
 0x2cf   : > { %v2010_v6 = vpack.c.bf16 %v1375_v5, %v1372_v3  ;;  %v5700_v7 = vpop.f32.mrb[35].mxu1 }
 0x2d1   : > { %5807 = vmatprep.mubr.bf16.mxu1 %v2010_v6 }
 0x2d4   : > { %v1413_v8 = vpop.f32.mrb[36].mxu1 }
 0x2d5   : > { %v5705_v10 = vpop.f32.mrb[37].mxu1 }
 0x2d6   : > { %v1416_v11 = vpop.f32.mrb[38].mxu1 }
 0x2d7   : > { %v2011_v12 = vpack.c.bf16 %v1416_v11, %v1413_v8  ;;  %v5706_v16 = vpop.f32.mrb[39].mxu1 }
 0x2d9   : > { %5808 = vmatmul.mubr.bf16.vlgmr.msra.gmra.mrb[84].mxu1 %v2011_v12 }
 0x2dc   : > { %v1454_v17 = vpop.f32.mrb[40].mxu1 }
 0x2dd   : > { %v5711_v18 = vpop.f32.mrb[41].mxu1 }
 0x2de   : > { %v1457_v19 = vpop.f32.mrb[42].mxu1 }
 0x2df   : > { %v2012_v21 = vpack.c.bf16 %v1457_v19, %v1454_v17  ;;  %v5712_v22 = vpop.f32.mrb[43].mxu1 }
 0x2e1   : > { %5811 = vmatprep.mubr.bf16.mxu1 %v2012_v21 }
 0x2e4   : > { %v1495_v23 = vpop.f32.mrb[44].mxu1 }
 0x2e5   : > { %v5717_v24 = vpop.f32.mrb[45].mxu1 }
 0x2e6   : > { %v1498_v20 = vpop.f32.mrb[46].mxu1 }
 0x2e7   : > { %v2013_v25 = vpack.c.bf16 %v1498_v20, %v1495_v23  ;;  %v5718_v31 = vpop.f32.mrb[47].mxu1 }
 0x2e9   : > { %5812 = vmatmul.mubr.bf16.gmra.mrb[88].mxu1 %v2013_v25 }
 0x2ec   : > { %v1536_v32 = vpop.f32.mrb[48].mxu1 }
 0x2ed   : > { %v5723_v33 = vpop.f32.mrb[49].mxu1 }
 0x2ee   : > { %v1539_v34 = vpop.f32.mrb[50].mxu1 }
 0x2ef   : > { %v2014_v35 = vpack.c.bf16 %v1539_v34, %v1536_v32  ;;  %v5724_v36 = vpop.f32.mrb[51].mxu1 }
 0x2f1   : > { %5815 = vmatprep.mubr.bf16.mxu1 %v2014_v35 }
 0x2f3   : > { %v1823_v38 = vpop.f32.mrb[64].mxu0 }
 0x2f4   : > { %v1577_v42 = vpop.f32.mrb[52].mxu1  ;;  %v5765_v45 = vpop.f32.mrb[65].mxu0 }
 0x2f5   : > { %v5729_v46 = vpop.f32.mrb[53].mxu1  ;;  %v1826_v47 = vpop.f32.mrb[66].mxu0 }
 0x2f6   : > { %v1580_v48 = vpop.f32.mrb[54].mxu1  ;;  %v2021_v44 = vpack.c.bf16 %v1826_v47, %v1823_v38  ;;  %v5766_v49 = vpop.f32.mrb[67].mxu0 }
 0x2f7   : > { %v2015_v50 = vpack.c.bf16 %v1580_v48, %v1577_v42  ;;  %v5730_v53 = vpop.f32.mrb[55].mxu1 }
 0x2f9   : > { %5816 = vmatmul.mubr.bf16.gmra.mrb[92].mxu1 %v2015_v50 }
 0x2fb   : > { %v1905_v54 = vpop.f32.mrb[68].mxu0 }
 0x2fc   : > { %v1618_v55 = vpop.f32.mrb[56].mxu1  ;;  %v5777_v56 = vpop.f32.mrb[69].mxu0 }
 0x2fd   : > { %v5735_v30 = vpop.f32.mrb[57].mxu1  ;;  %v1908_v43 = vpop.f32.mrb[70].mxu0 }
 0x2fe   : > { %v1621_v57 = vpop.f32.mrb[58].mxu1  ;;  %v2023_v58 = vpack.c.bf16 %v1908_v43, %v1905_v54  ;;  %v5778_v59 = vpop.f32.mrb[71].mxu0 }
 0x2ff   : > { %v2016_v60 = vpack.c.bf16 %v1621_v57, %v1618_v55  ;;  %v5736_v61 = vpop.f32.mrb[59].mxu1 }
 0x301   : > { %5819 = vmatprep.mubr.bf16.mxu1 %v2016_v60 }
 0x303   : > { %v1987_v62 = vpop.f32.mrb[72].mxu0 }
 0x304   : > { %v1659_v2 = vpop.f32.mrb[60].mxu1  ;;  %v5789_v3 = vpop.f32.mrb[73].mxu0 }
 0x305   : > { %v5741_v4 = vpop.f32.mrb[61].mxu1  ;;  %v1990_v5 = vpop.f32.mrb[74].mxu0 }
 0x306   : > { %v1662_v6 = vpop.f32.mrb[62].mxu1  ;;  %v2025_v7 = vpack.c.bf16 %v1990_v5, %v1987_v62  ;;  %v5790_v8 = vpop.f32.mrb[75].mxu0 }
 0x307   : > { %v2017_v10 = vpack.c.bf16 %v1662_v6, %v1659_v2  ;;  %v5742_v11 = vpop.f32.mrb[63].mxu1 }
 0x309   : > { %5820 = vmatmul.mubr.bf16.gmra.mrb[96].mxu1 %v2017_v10 }
 0x30c   : > { %v1700_v12 = vpop.f32.mrb[64].mxu1 }
 0x30d   : > { %v5747_v16 = vpop.f32.mrb[65].mxu1 }
 0x30e   : > { %v1703_v17 = vpop.f32.mrb[66].mxu1 }
 0x30f   : > { %v2018_v18 = vpack.c.bf16 %v1703_v17, %v1700_v12  ;;  %v5748_v19 = vpop.f32.mrb[67].mxu1 }
 0x311   : > { %5823 = vmatprep.mubr.bf16.mxu1 %v2018_v18 }
 0x314   : > { %v1741_v21 = vpop.f32.mrb[68].mxu1 }
 0x315   : > { %v5753_v22 = vpop.f32.mrb[69].mxu1 }
 0x316   : > { %v1744_v23 = vpop.f32.mrb[70].mxu1 }
 0x317   : > { %v2019_v24 = vpack.c.bf16 %v1744_v23, %v1741_v21  ;;  %v5754_v20 = vpop.f32.mrb[71].mxu1 }
 0x319   : > { %5824 = vmatmul.mubr.bf16.gmra.mrb[100].mxu1 %v2019_v24 }
 0x31c   : > { %v1782_v25 = vpop.f32.mrb[72].mxu1 }
 0x31d   : > { %v5759_v31 = vpop.f32.mrb[73].mxu1 }
 0x31e   : > { %v1785_v32 = vpop.f32.mrb[74].mxu1 }
 0x31f   : > { %v2020_v33 = vpack.c.bf16 %v1785_v32, %v1782_v25  ;;  %v5760_v34 = vpop.f32.mrb[75].mxu1 }
 0x321   : > { %5827 = vmatprep.mubr.bf16.mxu1 %v2020_v33 }
 0x322   : > { %5828 = vmatmul.mubr.bf16.gmra.mrb[104].mxu1 %v2021_v44  ;;  %v6935_v44 = vld [vmem:[%s7456_s3 + $0x1] ss:$0 sm:$0xff] }
 0x324   : > { %v1864_v35 = vpop.f32.mrb[76].mxu1 }
 0x325   : > { %v5771_v36 = vpop.f32.mrb[77].mxu1 }
 0x326   : > { %v1867_v38 = vpop.f32.mrb[78].mxu1 }
 0x327   : > { %v2022_v42 = vpack.c.bf16 %v1867_v38, %v1864_v35  ;;  %v5772_v45 = vpop.f32.mrb[79].mxu1 }
 0x329   : > { %5831 = vmatprep.mubr.bf16.mxu1 %v2022_v42 }
 0x32a   : > { %5832 = vmatmul.mubr.bf16.gmra.mrb[108].mxu1 %v2023_v58 }
 0x32c   : > { %v1946_v46 = vpop.f32.mrb[80].mxu1 }
 0x32d   : > { %v5783_v47 = vpop.f32.mrb[81].mxu1 }
 0x32e   : > { %v1949_v48 = vpop.f32.mrb[82].mxu1 }
 0x32f   : > { %v2024_v49 = vpack.c.bf16 %v1949_v48, %v1946_v46  ;;  %v5784_v50 = vpop.f32.mrb[83].mxu1 }
 0x331   : > { %5835 = vmatprep.mubr.bf16.mxu1 %v2024_v49 }
 0x332   : > { %5836 = vmatmul.mubr.bf16.gmra.mrb[112].mxu1 %v2025_v7 }
 0x333   : > { %5907 = vmatprep.mubr.msk.bf16.mxu1 %vm6500_vm0, %v6499_v0 }
 0x3ac   : > { %v5809_v53 = vpop.f32.mrb[84].mxu1 }
 0x3ad   : > { %v2122_v54 = vadd.f32 %v5809_v53, %v6935_v44  ;;  %v2113_v55 = vpop.f32.mrb[85].mxu1 }
 0x3ae   : > { %v2114_v56 = vadd.f32 %v6935_v44, %v2113_v55  ;;  %v5810_v30 = vpop.f32.mrb[86].mxu1 }
 0x3af   : > { %v2125_v43 = vadd.f32 %v5810_v30, %v6935_v44  ;;  %v2116_v57 = vpop.f32.mrb[87].mxu1  ;;  %v2242_v59 = vmax.f32 %v2122_v54, 0.0 }
 0x3b0   : > { %v2117_v58 = vadd.f32 %v6935_v44, %v2116_v57  ;;  %v2240_v61 = vmax.f32 %v2114_v56, 0.0 }
 0x3b1   : > { %v2243_v60 = vmax.f32 %v2125_v43, 0.0 }
 0x3b2   : > { %v2241_v62 = vmax.f32 %v2117_v58, 0.0 }
 0x3b3   : > { %v2273_v2 = vpack.c.bf16 %v2243_v60, %v2242_v59 }
 0x3b4   : > { %v2272_v3 = vpack.c.bf16 %v2241_v62, %v2240_v61 }
 0x3b6   : > { %5840 = vmatpush3.bf16.msra.mxu0 %v2272_v3 }
 0x3b7   : > { %5845 = vmatprep.subr.bf16.mxu0 %v6499_v0 }
 0x3b9   : > { %5842 = vmatmul.mubr.msk.bf16.vlgmr.msra.gmra.mrb[76].mxu0 %vm339_vm1, %v6636_v9 }
 0x3ba   : > { %5846 = vmatpush3.bf16.msra.mxu0 %v2273_v2  ;;  %5847 = vmatprep.mubr.msk.bf16.mxu0 %vm6500_vm0, %v6499_v0 }
 0x3bb   : > { %5851 = vmatprep.subr.bf16.mxu0 %v6499_v0 }
 0x3bc   : > { %v5813_v4 = vpop.f32.mrb[88].mxu1 }
 0x3bd   : > { %v2138_v5 = vadd.f32 %v5813_v4, %v6935_v44  ;;  %v2129_v6 = vpop.f32.mrb[89].mxu1 }
 0x3be   : > { %v2130_v7 = vadd.f32 %v6935_v44, %v2129_v6  ;;  %v5814_v8 = vpop.f32.mrb[90].mxu1 }
 0x3bf   : > { %v2141_v10 = vadd.f32 %v5814_v8, %v6935_v44  ;;  %v2132_v11 = vpop.f32.mrb[91].mxu1  ;;  %v2246_v16 = vmax.f32 %v2138_v5, 0.0 }
 0x3c0   : > { %v2133_v12 = vadd.f32 %v6935_v44, %v2132_v11  ;;  %v2244_v17 = vmax.f32 %v2130_v7, 0.0 }
 0x3c1   : > { %v2247_v9 = vmax.f32 %v2141_v10, 0.0  ;;  %5848 = vmatmul.mubr.msk.bf16.vlgmr.msra.gmra.mrb[80].mxu0 %vm339_vm1, %v6641_v13 }
 0x3c2   : > { %v2245_v18 = vmax.f32 %v2133_v12, 0.0  ;;  %5853 = vmatprep.mubr.msk.bf16.mxu0 %vm6500_vm0, %v6499_v0 }
 0x3c3   : > { %v2275_v19 = vpack.c.bf16 %v2247_v9, %v2246_v16 }
 0x3c4   : > { %v2274_v21 = vpack.c.bf16 %v2245_v18, %v2244_v17 }
 0x3c6   : > { %5852 = vmatpush3.bf16.msra.mxu0 %v2274_v21 }
 0x3c7   : > { %5857 = vmatprep.subr.bf16.mxu0 %v6499_v0 }
 0x3c9   : > { %5854 = vmatmul.mubr.msk.bf16.vlgmr.msra.gmra.mrb[84].mxu0 %vm339_vm1, %v6665_v27 }
 0x3ca   : > { %5858 = vmatpush3.bf16.msra.mxu0 %v2275_v19  ;;  %5859 = vmatprep.mubr.msk.bf16.mxu0 %vm6500_vm0, %v6499_v0 }
 0x3cb   : > { %5863 = vmatprep.subr.bf16.mxu0 %v6499_v0 }
 0x3cc   : > { %v5817_v13 = vpop.f32.mrb[92].mxu1 }
 0x3cd   : > { %v2154_v22 = vadd.f32 %v5817_v13, %v6935_v44  ;;  %v2145_v23 = vpop.f32.mrb[93].mxu1 }
 0x3ce   : > { %v2146_v24 = vadd.f32 %v6935_v44, %v2145_v23  ;;  %v5818_v20 = vpop.f32.mrb[94].mxu1 }
 0x3cf   : > { %v2157_v25 = vadd.f32 %v5818_v20, %v6935_v44  ;;  %v2148_v31 = vpop.f32.mrb[95].mxu1  ;;  %v2250_v33 = vmax.f32 %v2154_v22, 0.0 }
 0x3d0   : > { %v2149_v32 = vadd.f32 %v6935_v44, %v2148_v31  ;;  %v2248_v34 = vmax.f32 %v2146_v24, 0.0 }
 0x3d1   : > { %v2251_v27 = vmax.f32 %v2157_v25, 0.0  ;;  %5860 = vmatmul.mubr.msk.bf16.vlgmr.msra.gmra.mrb[88].mxu0 %vm339_vm1, %v6668_v28 }
 0x3d2   : > { %v2249_v35 = vmax.f32 %v2149_v32, 0.0  ;;  %5865 = vmatprep.mubr.msk.bf16.mxu0 %vm6500_vm0, %v6499_v0 }
 0x3d3   : > { %v2277_v36 = vpack.c.bf16 %v2251_v27, %v2250_v33 }
 0x3d4   : > { %v2276_v38 = vpack.c.bf16 %v2249_v35, %v2248_v34 }
 0x3d6   : > { %5864 = vmatpush3.bf16.msra.mxu0 %v2276_v38 }
 0x3d7   : > { %5869 = vmatprep.subr.bf16.mxu0 %v6499_v0 }
 0x3d9   : > { %5866 = vmatmul.mubr.msk.bf16.vlgmr.msra.gmra.mrb[92].mxu0 %vm339_vm1, %v6687_v39 }
 0x3da   : > { %5870 = vmatpush3.bf16.msra.mxu0 %v2277_v36  ;;  %5871 = vmatprep.mubr.msk.bf16.mxu0 %vm6500_vm0, %v6499_v0 }
 0x3db   : > { %5875 = vmatprep.subr.bf16.mxu0 %v6499_v0 }
 0x3dc   : > { %v5821_v28 = vpop.f32.mrb[96].mxu1 }
 0x3dd   : > { %v2170_v42 = vadd.f32 %v5821_v28, %v6935_v44  ;;  %v2161_v45 = vpop.f32.mrb[97].mxu1 }
 0x3de   : > { %v2162_v46 = vadd.f32 %v6935_v44, %v2161_v45  ;;  %v5822_v47 = vpop.f32.mrb[98].mxu1 }
 0x3df   : > { %v2173_v48 = vadd.f32 %v5822_v47, %v6935_v44  ;;  %v2164_v49 = vpop.f32.mrb[99].mxu1  ;;  %v2254_v53 = vmax.f32 %v2170_v42, 0.0 }
 0x3e0   : > { %v2165_v50 = vadd.f32 %v6935_v44, %v2164_v49  ;;  %v2252_v54 = vmax.f32 %v2162_v46, 0.0 }
 0x3e1   : > { %v2255_v39 = vmax.f32 %v2173_v48, 0.0  ;;  %5872 = vmatmul.mubr.msk.bf16.vlgmr.msra.gmra.mrb[96].mxu0 %vm339_vm1, %v6690_v40 }
 0x3e2   : > { %v2253_v55 = vmax.f32 %v2165_v50, 0.0  ;;  %5877 = vmatprep.mubr.msk.bf16.mxu0 %vm6500_vm0, %v6499_v0 }
 0x3e3   : > { %v2279_v56 = vpack.c.bf16 %v2255_v39, %v2254_v53 }
 0x3e4   : > { %v2278_v30 = vpack.c.bf16 %v2253_v55, %v2252_v54 }
 0x3e6   : > { %5876 = vmatpush3.bf16.msra.mxu0 %v2278_v30  ;;  %v6363_v30 = vld [vmem:[#allocation2 + $0x98] sm:$0xff]  }
 0x3e7   : > { %5881 = vmatprep.subr.bf16.mxu0 %v6499_v0 }
 0x3e9   : > { %5878 = vmatmul.mubr.msk.bf16.vlgmr.msra.gmra.mrb[100].mxu0 %vm339_vm1, %v6709_v51 }
 0x3ea   : > { %5882 = vmatpush3.bf16.msra.mxu0 %v2279_v56  ;;  %5883 = vmatprep.mubr.msk.bf16.mxu0 %vm6500_vm0, %v6499_v0 }
 0x3eb   : > { %5887 = vmatprep.subr.bf16.mxu0 %v6499_v0 }
 0x3ec   : > { %v5825_v40 = vpop.f32.mrb[100].mxu1 }
 0x3ed   : > { %v2186_v43 = vadd.f32 %v5825_v40, %v6935_v44  ;;  %v2177_v57 = vpop.f32.mrb[101].mxu1  ;;  %v3190_v40 = vlaneseq }
 0x3ee   : > { %v2178_v58 = vadd.f32 %v6935_v44, %v2177_v57  ;;  %v5826_v59 = vpop.f32.mrb[102].mxu1 }
 0x3ef   : > { %v2189_v60 = vadd.f32 %v5826_v59, %v6935_v44  ;;  %v2180_v61 = vpop.f32.mrb[103].mxu1  ;;  %v2258_v2 = vmax.f32 %v2186_v43, 0.0  ;;  %v7043_v43 = vshrl.u32 %v3190_v40, 7  ;;  %v3208_v57 = vand.u32 127, %v3190_v40 }
 0x3f0   : > { %v2181_v62 = vadd.f32 %v6935_v44, %v2180_v61  ;;  %v2256_v3 = vmax.f32 %v2178_v58, 0.0 }
 0x3f1   : > { %v2259_v51 = vmax.f32 %v2189_v60, 0.0  ;;  %5884 = vmatmul.mubr.msk.bf16.vlgmr.msra.gmra.mrb[104].mxu0 %vm339_vm1, %v6712_v52  ;;  %v3192_v58 = vadd.s32 8, %v7043_v43  ;;  %v7046_v59 = vmul.u32 2, %v3208_v57  ;;  %v3193_v60 = vadd.s32 16, %v7043_v43 }
 0x3f2   : > { %v2257_v4 = vmax.f32 %v2181_v62, 0.0  ;;  %5889 = vmatprep.mubr.msk.bf16.mxu0 %vm6500_vm0, %v6499_v0  ;;  %v3194_v61 = vadd.s32 24, %v7043_v43  ;;  %v3195_v62 = vadd.s32 32, %v7043_v43 }
 0x3f3   : > { %v2281_v5 = vpack.c.bf16 %v2259_v51, %v2258_v2  ;;  %v3196_v2 = vadd.s32 40, %v7043_v43  ;;  %v3197_v51 = vadd.s32 48, %v7043_v43  ;;  %vm3210_vm2 = vcmp.eq.s32.totalorder %v7043_v43, %v7046_v59 }
 0x3f4   : > { %v2280_v6 = vpack.c.bf16 %v2257_v4, %v2256_v3  ;;  %v3198_v3 = vadd.s32 56, %v7043_v43  ;;  %vm3211_vm3 = vcmp.eq.s32.totalorder %v3192_v58, %v7046_v59  ;;  %v7058_v4 = vadd.s32 1, %v7046_v59 }
 0x3f5   : > { %v5829_v7 = vpop.f32.mrb[104].mxu1  ;;  %vm3212_vm4 = vcmp.eq.s32.totalorder %v3193_v60, %v7046_v59  ;;  %vm7061_vm5 = vmpackc.low %vm3211_vm3, %vm3210_vm2  ;;  %vm3213_vm6 = vcmp.eq.s32.totalorder %v3194_v61, %v7046_v59  ;;  %vm3214_vm10 = vcmp.eq.s32.totalorder %v3195_v62, %v7046_v59  ;;  %vm3215_vm11 = vcmp.eq.s32.totalorder %v3196_v2, %v7046_v59 }
 0x3f6   : > { %v2202_v8 = vadd.f32 %v5829_v7, %v6935_v44  ;;  %v2193_v10 = vpop.f32.mrb[105].mxu1  ;;  %5888 = vmatpush3.bf16.msra.mxu0 %v2280_v6  ;;  %v6501_v6 = vmov 1.0|1.0   ;;  %vm3267_vm7 = vcmp.eq.s32.totalorder %v7043_v43, %v7058_v4  ;;  %vm3268_vm8 = vcmp.eq.s32.totalorder %v3192_v58, %v7058_v4  ;;  %vm7072_vm9 = vmpackc.low %vm3213_vm6, %vm3212_vm4 }
 0x3f7   : > { %v2194_v11 = vadd.f32 %v6935_v44, %v2193_v10  ;;  %v5830_v12 = vpop.f32.mrb[106].mxu1  ;;  %5893 = vmatprep.subr.bf16.mxu0 %v6499_v0  ;;  %vm7078_vm12 = vmpackc.low %vm3268_vm8, %vm3267_vm7  ;;  %vm3216_vm13 = vcmp.eq.s32.totalorder %v3197_v51, %v7046_v59  ;;  %vm3217_vm14 = vcmp.eq.s32.totalorder %v3198_v3, %v7046_v59  ;;  %v3199_v10 = vadd.s32 64, %v7043_v43 }
 0x3f8   : > { %v2262_v16 = vmax.f32 %v2202_v8, 0.0  ;;  %v2205_v52 = vadd.f32 %v5830_v12, %v6935_v44  ;;  %v2196_v9 = vpop.f32.mrb[107].mxu1  ;;  %v3201_v12 = vadd.s32 80, %v7043_v43  ;;  %vm7090_vm15 = vmpackc.low %vm3215_vm11, %vm3214_vm10  ;;  %vm3269_vm8 = vcmp.eq.s32.totalorder %v3193_v60, %v7058_v4 }
 0x3f9   : > { %v2260_v17 = vmax.f32 %v2194_v11, 0.0  ;;  %v2197_v18 = vadd.f32 %v6935_v44, %v2196_v9  ;;  %5890 = vmatmul.mubr.msk.bf16.vlgmr.msra.gmra.mrb[108].mxu0 %vm339_vm1, %v6731_v63  ;;  %v3200_v11 = vadd.s32 72, %v7043_v43  ;;  %vm7097_vm2 = vmpackc.low %vm3217_vm14, %vm3216_vm13  ;;  %vm3270_vm10 = vcmp.eq.s32.totalorder %v3194_v61, %v7058_v4 }
 0x3fa   : > { %v2263_v19 = vmax.f32 %v2205_v52, 0.0  ;;  %5894 = vmatpush3.bf16.msra.mxu0 %v2281_v5  ;;  %5895 = vmatprep.mubr.msk.bf16.mxu0 %vm6500_vm0, %v6499_v0  ;;  %v3202_v52 = vadd.s32 88, %v7043_v43  ;;  %vm3220_vm3 = vcmp.eq.s32.totalorder %v3201_v12, %v7046_v59  ;;  %vm5181_vm11 = vmpackc.low %vm3270_vm10, %vm3269_vm8  ;;  %vm3271_vm13 = vcmp.eq.s32.totalorder %v3195_v62, %v7058_v4 }
 0x3fb   : > { %v2261_v21 = vmax.f32 %v2197_v18, 0.0  ;;  %5899 = vmatprep.subr.bf16.mxu0 %v6499_v0  ;;  %vm3272_vm14 = vcmp.eq.s32.totalorder %v3196_v2, %v7058_v4  ;;  %vm3276_vm8 = vcmp.eq.s32.totalorder %v3200_v11, %v7058_v4 }
 0x3fc   : > { %v2283_v13 = vpack.c.bf16 %v2263_v19, %v2262_v16  ;;  %vm3221_vm4 = vcmp.eq.s32.totalorder %v3202_v52, %v7046_v59  ;;  %v3203_v16 = vadd.s32 96, %v7043_v43 }
 0x3fd   : > { %v2282_v22 = vpack.c.bf16 %v2261_v21, %v2260_v17  ;;  %v5833_v23 = vpop.f32.mrb[108].mxu1  ;;  %vm7107_vm7 = vmpackc.low %vm3221_vm4, %vm3220_vm3  ;;  %vm3274_vm3 = vcmp.eq.s32.totalorder %v3198_v3, %v7058_v4 }
 0x3fe   : > { %5906 = vmatpush3.bf16.msra.mxu1 %v2283_v13  ;;  %v2218_v24 = vadd.f32 %v5833_v23, %v6935_v44  ;;  %v2209_v20 = vpop.f32.mrb[109].mxu1 }
 0x3ff   : > { %v2210_v25 = vadd.f32 %v6935_v44, %v2209_v20  ;;  %v5834_v31 = vpop.f32.mrb[110].mxu1  ;;  %5917 = vmatprep.subr.bf16.mxu1 %v6499_v0 }
 0x400   : > { %v2266_v63 = vmax.f32 %v2218_v24, 0.0  ;;  %v2221_v32 = vadd.f32 %v5834_v31, %v6935_v44  ;;  %v2212_v33 = vpop.f32.mrb[111].mxu1 }
 0x401   : > { %5896 = vmatmul.mubr.msk.bf16.vlgmr.msra.gmra.mrb[112].mxu0 %vm339_vm1, %v6734_v1  ;;  %v2264_v27 = vmax.f32 %v2210_v25, 0.0  ;;  %v2213_v34 = vadd.f32 %v6935_v44, %v2212_v33  ;;  %5908 = vmatmul.mubr.msk.bf16.vlgmr.msra.gmra.mrb[116].mxu1 %vm339_vm1, %v6756_v15 }
 0x402   : > { %5900 = vmatpush3.bf16.msra.mxu0 %v2282_v22  ;;  %v2267_v35 = vmax.f32 %v2221_v32, 0.0  ;;  %5901 = vmatprep.mubr.msk.bf16.mxu0 %vm6500_vm0, %v6499_v0 }
 0x403   : > { %v2265_v36 = vmax.f32 %v2213_v34, 0.0  ;;  %5911 = vmatprep.subr.bf16.mxu0 %v6499_v0  ;;  %5919 = vmatprep.mubr.msk.bf16.mxu1 %vm6500_vm0, %v6499_v0 }
 0x404   : > { %v2285_v38 = vpack.c.bf16 %v2267_v35, %v2266_v63 }
 0x405   : > { %v2284_v28 = vpack.c.bf16 %v2265_v36, %v2264_v27  ;;  %v5837_v1 = vpop.f32.mrb[112].mxu1 }
 0x406   : > { %v2234_v42 = vadd.f32 %v5837_v1, %v6935_v44  ;;  %v2225_v45 = vpop.f32.mrb[113].mxu1  ;;  %5918 = vmatpush3.bf16.msra.mxu1 %v2285_v38 }
 0x407   : > { %v2226_v15 = vadd.f32 %v6935_v44, %v2225_v45  ;;  %v5838_v46 = vpop.f32.mrb[114].mxu1  ;;  %5929 = vmatprep.subr.bf16.mxu1 %v6499_v0 }
 0x408   : > { %v2270_v47 = vmax.f32 %v2234_v42, 0.0  ;;  %v2237_v48 = vadd.f32 %v5838_v46, %v6935_v44  ;;  %v2228_v49 = vpop.f32.mrb[115].mxu1 }
 0x409   : > { %5902 = vmatmul.mubr.msk.bf16.vlgmr.msra.gmra.mrb[116].mxu0 %vm339_vm1, %v6753_v14  ;;  %v2268_v50 = vmax.f32 %v2226_v15, 0.0  ;;  %v2229_v53 = vadd.f32 %v6935_v44, %v2228_v49  ;;  %5920 = vmatmul.mubr.msk.bf16.vlgmr.msra.gmra.mrb[120].mxu1 %vm339_vm1, %v6778_v29  ;;  %v6360_v14 = vld [vmem:[#allocation2 + $0x80] sm:$0xff]   ;;  %v6361_v29 = vld [vmem:[#allocation2 + $0x88] sm:$0xff]   ;;  %v6362_v44 = vld [vmem:[#allocation2 + $0x90] sm:$0xff]  }
 0x40a   : > { %v2271_v39 = vmax.f32 %v2237_v48, 0.0  ;;  %5912 = vmatpush3.bf16.msra.mxu0 %v2284_v28  ;;  %5913 = vmatprep.mubr.msk.bf16.mxu0 %vm6500_vm0, %v6499_v0 }
 0x40b   : > { %v2269_v54 = vmax.f32 %v2229_v53, 0.0  ;;  %5923 = vmatprep.subr.bf16.mxu0 %v6499_v0  ;;  %5931 = vmatprep.mubr.msk.bf16.mxu1 %vm6500_vm0, %v6499_v0 }
 0x40c   : > { %v2287_v55 = vpack.c.bf16 %v2271_v39, %v2270_v47 }
 0x40d   : > { %v2286_v56 = vpack.c.bf16 %v2269_v54, %v2268_v50 }
 0x40e   : > { %5930 = vmatpush3.bf16.msra.mxu1 %v2287_v55 }
 0x40f   : > { %6271 = vmatprep.subr.bf16.mxu1 %v6360_v14 }
 0x411   : > { %5914 = vmatmul.mubr.msk.bf16.vlgmr.msra.gmra.mrb[120].mxu0 %vm339_vm1, %v6775_v26  ;;  %5932 = vmatmul.mubr.msk.bf16.vlgmr.msra.gmra.mrb[124].mxu1 %vm339_vm1, %v6795_v41  ;;  %v6364_v26 = vld [vmem:[#allocation2 + $0xa0] sm:$0xff]   ;;  %v6366_v41 = vld [vmem:[#allocation2 + $0xb0] sm:$0xff]  }
 0x412   : > { %5924 = vmatpush3.bf16.msra.mxu0 %v2286_v56  ;;  %5925 = vmatprep.mubr.msk.bf16.mxu0 %vm6500_vm0, %v6499_v0  ;;  %v6365_v0 = vld [vmem:[#allocation2 + $0xa8] sm:$0xff]   ;;  %vm3218_vm0 = vcmp.eq.s32.totalorder %v3199_v10, %v7046_v59 }
 0x413   : > { %5935 = vmatprep.subr.bf16.mxu0 %v6360_v14  ;;  %6279 = vmatpush3.bf16.msra.mxu1 %v6360_v14 }
 0x414   : > { %6272 = vmatprep.subr.bf16.mxu1 %v6361_v29 }
 0x417   : > { %6280 = vmatpush3.bf16.msra.mxu1 %v6361_v29 }
 0x418   : > { %6273 = vmatprep.subr.bf16.mxu1 %v6362_v44 }
 0x419   : > { %5926 = vmatmul.mubr.msk.bf16.vlgmr.msra.gmra.mrb[124].mxu0 %vm339_vm1, %v6792_v37  ;;  %v6367_v37 = vld [vmem:[#allocation2 + $0xb8] sm:$0xff]   ;;  %vm3219_vm1 = vcmp.eq.s32.totalorder %v3200_v11, %v7046_v59 }
 0x41a   : > { %5936 = vmatpush3.bf16.msra.mxu0 %v6360_v14  ;;  %vm7103_vm6 = vmpackc.low %vm3219_vm1, %vm3218_vm0  ;;  %vm3273_vm1 = vcmp.eq.s32.totalorder %v3197_v51, %v7058_v4 }
 0x41b   : > { %5937 = vmatprep.subr.bf16.mxu0 %v6361_v29  ;;  %6281 = vmatpush3.bf16.msra.mxu1 %v6362_v44  ;;  %vm5183_vm0 = vmpackc.low %vm3272_vm14, %vm3271_vm13  ;;  %vm3277_vm13 = vcmp.eq.s32.totalorder %v3201_v12, %v7058_v4 }
 0x41c   : > { %6274 = vmatprep.subr.bf16.mxu1 %v6363_v30  ;;  %vm5185_vm4 = vmpackc.low %vm3274_vm3, %vm3273_vm1 }
 0x41e   : > { %5938 = vmatpush3.bf16.msra.mxu0 %v6361_v29 }
 0x41f   : > { %5939 = vmatprep.subr.bf16.mxu0 %v6362_v44  ;;  %6282 = vmatpush3.bf16.msra.mxu1 %v6363_v30 }
 0x420   : > { %6275 = vmatprep.subr.bf16.mxu1 %v6364_v26 }
 0x422   : > { %5940 = vmatpush3.bf16.msra.mxu0 %v6362_v44 }
 0x423   : > { %5941 = vmatprep.subr.bf16.mxu0 %v6363_v30  ;;  %6283 = vmatpush3.bf16.msra.mxu1 %v6364_v26 }
 0x424   : > { %6276 = vmatprep.subr.bf16.mxu1 %v6365_v0 }
 0x426   : > { %5942 = vmatpush3.bf16.msra.mxu0 %v6363_v30 }
 0x427   : > { %5943 = vmatprep.subr.bf16.mxu0 %v6364_v26  ;;  %6284 = vmatpush3.bf16.msra.mxu1 %v6365_v0 }
 0x428   : > { %6277 = vmatprep.subr.bf16.mxu1 %v6366_v41 }
 0x42a   : > { %5944 = vmatpush3.bf16.msra.mxu0 %v6364_v26 }
 0x42b   : > { %5945 = vmatprep.subr.bf16.mxu0 %v6365_v0  ;;  %6285 = vmatpush3.bf16.msra.mxu1 %v6366_v41 }
 0x42c   : > { %6278 = vmatprep.subr.bf16.mxu1 %v6367_v37 }
 0x42e   : > { %5946 = vmatpush3.bf16.msra.mxu0 %v6365_v0 }
 0x42f   : > { %5947 = vmatprep.subr.bf16.mxu0 %v6366_v41  ;;  %6286 = vmatpush3.bf16.msra.mxu1 %v6367_v37 }
 0x430   : > { %5983 = vmatprep.subr.msk.bf16.mxu1 %vm7061_vm5, %v6501_v6 }
 0x432   : > { %5948 = vmatpush3.bf16.msra.mxu0 %v6366_v41 }
 0x433   : > { %5949 = vmatprep.subr.bf16.mxu0 %v6367_v37 }
 0x436   : > { %5950 = vmatpush3.bf16.msra.mxu0 %v6367_v37 }
 0x437   : > { %6031 = vmatprep.subr.msk.bf16.mxu0 %vm7078_vm12, %v6501_v6 }
 0x48c   : > { %v2322_v19 = vpop.f32.mrb[76].mxu0 }
 0x48d   : > { %v5843_v21 = vpop.f32.mrb[77].mxu0 }
 0x48e   : > { %v2325_v13 = vpop.f32.mrb[78].mxu0 }
 0x48f   : > { %v2960_v22 = vpack.c.bf16 %v2325_v13, %v2322_v19  ;;  %v5844_v23 = vpop.f32.mrb[79].mxu0 }
 0x491   : > { %5951 = vmatprep.mubr.bf16.mxu0 %v2960_v22 }
 0x494   : > { %v2363_v24 = vpop.f32.mrb[80].mxu0 }
 0x495   : > { %v5849_v20 = vpop.f32.mrb[81].mxu0 }
 0x496   : > { %v2366_v25 = vpop.f32.mrb[82].mxu0 }
 0x497   : > { %v2961_v31 = vpack.c.bf16 %v2366_v25, %v2363_v24  ;;  %v5850_v63 = vpop.f32.mrb[83].mxu0 }
 0x499   : > { %5952 = vmatmul.mubr.bf16.vlgmr.msra.gmra.mrb[128].mxu0 %v2961_v31 }
 0x49a   : > { %6032 = vmatpush3.bf16.msk.msra.mxu0 %vm7078_vm12, %v6501_v6  ;;  %vm3275_vm12 = vcmp.eq.s32.totalorder %v3199_v10, %v7058_v4 }
 0x49b   : > { %6033 = vmatprep.subr.msk.bf16.mxu0 %vm5181_vm11, %v6501_v6  ;;  %vm5187_vm10 = vmpackc.low %vm3276_vm8, %vm3275_vm12 }
 0x49c   : > { %v2404_v32 = vpop.f32.mrb[84].mxu0 }
 0x49d   : > { %v5855_v33 = vpop.f32.mrb[85].mxu0 }
 0x49e   : > { %v2407_v27 = vpop.f32.mrb[86].mxu0  ;;  %6034 = vmatpush3.bf16.msk.msra.mxu0 %vm5181_vm11, %v6501_v6  ;;  %vm3278_vm11 = vcmp.eq.s32.totalorder %v3202_v52, %v7058_v4 }
 0x49f   : > { %v2962_v34 = vpack.c.bf16 %v2407_v27, %v2404_v32  ;;  %v5856_v35 = vpop.f32.mrb[87].mxu0  ;;  %6035 = vmatprep.subr.msk.bf16.mxu0 %vm5183_vm0, %v6501_v6  ;;  %vm5189_vm14 = vmpackc.low %vm3278_vm11, %vm3277_vm13  ;;  %vm4920_vm13 = vcmask 1042434   ;;  %vm4922_vm11 = vcmask 1043459  }
 0x4a1   : > { %5955 = vmatprep.mubr.bf16.mxu0 %v2962_v34 }
 0x4a2   : > { %6036 = vmatpush3.bf16.msk.msra.mxu0 %vm5183_vm0, %v6501_v6 }
 0x4a3   : > { %6037 = vmatprep.subr.msk.bf16.mxu0 %vm5185_vm4, %v6501_v6 }
 0x4a4   : > { %v2445_v36 = vpop.f32.mrb[88].mxu0 }
 0x4a5   : > { %v5861_v38 = vpop.f32.mrb[89].mxu0 }
 0x4a6   : > { %v2448_v28 = vpop.f32.mrb[90].mxu0  ;;  %6038 = vmatpush3.bf16.msk.msra.mxu0 %vm5185_vm4, %v6501_v6 }
 0x4a7   : > { %v2963_v1 = vpack.c.bf16 %v2448_v28, %v2445_v36  ;;  %v5862_v42 = vpop.f32.mrb[91].mxu0  ;;  %6039 = vmatprep.subr.msk.bf16.mxu0 %vm5187_vm10, %v6501_v6 }
 0x4a8   : > { %v3204_v42 = vadd.s32 104, %v7043_v43 }
 0x4a9   : > { %5956 = vmatmul.mubr.bf16.gmra.mrb[132].mxu0 %v2963_v1 }
 0x4aa   : > { %6040 = vmatpush3.bf16.msk.msra.mxu0 %vm5187_vm10, %v6501_v6  ;;  %vm4918_vm10 = vcmask 1041409  }
 0x4ab   : > { %6041 = vmatprep.subr.msk.bf16.mxu0 %vm5189_vm14, %v6501_v6 }
 0x4ac   : > { %v2486_v45 = vpop.f32.mrb[92].mxu0 }
 0x4ad   : > { %v5867_v15 = vpop.f32.mrb[93].mxu0 }
 0x4ae   : > { %v2489_v46 = vpop.f32.mrb[94].mxu0  ;;  %6042 = vmatpush3.bf16.msk.msra.mxu0 %vm5189_vm14, %v6501_v6  ;;  %vm4924_vm14 = vcmask 1044484  }
 0x4af   : > { %v2964_v47 = vpack.c.bf16 %v2489_v46, %v2486_v45  ;;  %v5868_v48 = vpop.f32.mrb[95].mxu0  ;;  %v3205_v46 = vadd.s32 112, %v7043_v43 }
 0x4b1   : > { %5959 = vmatprep.mubr.bf16.mxu0 %v2964_v47  ;;  %v3206_v47 = vadd.s32 120, %v7043_v43  ;;  %vm3224_vm1 = vcmp.eq.s32.totalorder %v3205_v46, %v7046_v59  ;;  %vm3281_vm4 = vcmp.eq.s32.totalorder %v3205_v46, %v7058_v4  ;;  %v6368_v43 = vld [vmem:[#allocation2 + $0xc0] sm:$0xff]  }
 0x4b3   : > { %vm3225_vm3 = vcmp.eq.s32.totalorder %v3206_v47, %v7046_v59  ;;  %vm3282_vm8 = vcmp.eq.s32.totalorder %v3206_v47, %v7058_v4 }
 0x4b4   : > { %v2527_v49 = vpop.f32.mrb[96].mxu0  ;;  %vm5177_vm12 = vmpackc.low %vm3225_vm3, %vm3224_vm1 }
 0x4b5   : > { %v5873_v50 = vpop.f32.mrb[97].mxu0 }
 0x4b6   : > { %v2530_v53 = vpop.f32.mrb[98].mxu0 }
 0x4b7   : > { %v2965_v39 = vpack.c.bf16 %v2530_v53, %v2527_v49  ;;  %v5874_v54 = vpop.f32.mrb[99].mxu0 }
 0x4b9   : > { %5960 = vmatmul.mubr.bf16.gmra.mrb[136].mxu0 %v2965_v39 }
 0x4bc   : > { %v2568_v55 = vpop.f32.mrb[100].mxu0 }
 0x4bd   : > { %v5879_v56 = vpop.f32.mrb[101].mxu0 }
 0x4be   : > { %v2571_v14 = vpop.f32.mrb[102].mxu0 }
 0x4bf   : > { %v2966_v29 = vpack.c.bf16 %v2571_v14, %v2568_v55  ;;  %v5880_v44 = vpop.f32.mrb[103].mxu0 }
 0x4c0   : > { %v6370_v44 = vld [vmem:[#allocation2 + $0xd0] sm:$0xff]  }
 0x4c1   : > { %5963 = vmatprep.mubr.bf16.mxu0 %v2966_v29  ;;  %v6369_v29 = vld [vmem:[#allocation2 + $0xc8] sm:$0xff]  }
 0x4c4   : > { %v2609_v30 = vpop.f32.mrb[104].mxu0 }
 0x4c5   : > { %v5885_v26 = vpop.f32.mrb[105].mxu0 }
 0x4c6   : > { %v2612_v0 = vpop.f32.mrb[106].mxu0 }
 0x4c7   : > { %v2967_v41 = vpack.c.bf16 %v2612_v0, %v2609_v30  ;;  %v5886_v37 = vpop.f32.mrb[107].mxu0  ;;  %v6371_v30 = vld [vmem:[#allocation2 + $0xd8] sm:$0xff]  }
 0x4c9   : > { %5964 = vmatmul.mubr.bf16.gmra.mrb[140].mxu0 %v2967_v41 }
 0x4cc   : > { %v2650_v40 = vpop.f32.mrb[108].mxu0 }
 0x4cd   : > { %v5891_v57 = vpop.f32.mrb[109].mxu0 }
 0x4ce   : > { %v2653_v58 = vpop.f32.mrb[110].mxu0 }
 0x4cf   : > { %v2968_v60 = vpack.c.bf16 %v2653_v58, %v2650_v40  ;;  %v5892_v61 = vpop.f32.mrb[111].mxu0  ;;  %v6372_v58 = vld [vmem:[#allocation2 + $0xe0] sm:$0xff]  }
 0x4d1   : > { %5967 = vmatprep.mubr.bf16.mxu1 %v2968_v60 }
 0x4d4   : > { %v2691_v62 = vpop.f32.mrb[112].mxu0  ;;  %v2773_v2 = vpop.f32.mrb[116].mxu1 }
 0x4d5   : > { %v5897_v51 = vpop.f32.mrb[113].mxu0  ;;  %v5909_v3 = vpop.f32.mrb[117].mxu1 }
 0x4d6   : > { %v2694_v8 = vpop.f32.mrb[114].mxu0  ;;  %v2776_v10 = vpop.f32.mrb[118].mxu1  ;;  %v6373_v51 = vld [vmem:[#allocation2 + $0xe8] sm:$0xff]  }
 0x4d7   : > { %v2969_v11 = vpack.c.bf16 %v2694_v8, %v2691_v62  ;;  %v5898_v12 = vpop.f32.mrb[115].mxu0  ;;  %v2971_v52 = vpack.c.bf16 %v2776_v10, %v2773_v2  ;;  %v5910_v19 = vpop.f32.mrb[119].mxu1 }
 0x4d9   : > { %5968 = vmatmul.mubr.bf16.vlgmr.msra.gmra.mrb[128].mxu1 %v2969_v11 }
 0x4da   : > { %5984 = vmatpush3.bf16.msk.msra.mxu1 %vm7061_vm5, %v6501_v6  ;;  %vm3222_vm5 = vcmp.eq.s32.totalorder %v3203_v16, %v7046_v59 }
 0x4db   : > { %5985 = vmatprep.subr.msk.bf16.mxu1 %vm7072_vm9, %v6501_v6 }
 0x4dc   : > { %v2732_v21 = vpop.f32.mrb[116].mxu0  ;;  %v2855_v13 = vpop.f32.mrb[120].mxu1 }
 0x4dd   : > { %v5903_v22 = vpop.f32.mrb[117].mxu0  ;;  %v5921_v23 = vpop.f32.mrb[121].mxu1 }
 0x4de   : > { %v2735_v24 = vpop.f32.mrb[118].mxu0  ;;  %v2858_v20 = vpop.f32.mrb[122].mxu1  ;;  %5986 = vmatpush3.bf16.msk.msra.mxu1 %vm7072_vm9, %v6501_v6  ;;  %vm3223_vm9 = vcmp.eq.s32.totalorder %v3204_v42, %v7046_v59 }
 0x4df   : > { %v2970_v25 = vpack.c.bf16 %v2735_v24, %v2732_v21  ;;  %v5904_v31 = vpop.f32.mrb[119].mxu0  ;;  %v2973_v63 = vpack.c.bf16 %v2858_v20, %v2855_v13  ;;  %v5922_v32 = vpop.f32.mrb[123].mxu1  ;;  %5987 = vmatprep.subr.msk.bf16.mxu1 %vm7090_vm15, %v6501_v6  ;;  %vm7170_vm0 = vmpackc.low %vm3223_vm9, %vm3222_vm5  ;;  %vm4926_vm5 = vcmask 1045509   ;;  %vm4928_vm9 = vcmask 1046534  }
 0x4e1   : > { %5971 = vmatprep.mubr.bf16.mxu1 %v2970_v25 }
 0x4e2   : > { %5972 = vmatmul.mubr.bf16.gmra.mrb[132].mxu1 %v2971_v52 }
 0x4e3   : > { %5988 = vmatpush3.bf16.msk.msra.mxu1 %vm7090_vm15, %v6501_v6  ;;  %vm3279_vm15 = vcmp.eq.s32.totalorder %v3203_v16, %v7058_v4 }
 0x4e4   : > { %v2814_v5 = vpop.f32.mrb[120].mxu0  ;;  %v2937_v33 = vpop.f32.mrb[124].mxu1  ;;  %5989 = vmatprep.subr.msk.bf16.mxu1 %vm7097_vm2, %v6501_v6 }
 0x4e5   : > { %v5915_v7 = vpop.f32.mrb[121].mxu0  ;;  %v5933_v27 = vpop.f32.mrb[125].mxu1 }
 0x4e6   : > { %v2817_v34 = vpop.f32.mrb[122].mxu0  ;;  %v2940_v35 = vpop.f32.mrb[126].mxu1 }
 0x4e7   : > { %v2972_v36 = vpack.c.bf16 %v2817_v34, %v2814_v5  ;;  %v5916_v38 = vpop.f32.mrb[123].mxu0  ;;  %v2975_v28 = vpack.c.bf16 %v2940_v35, %v2937_v33  ;;  %v5934_v1 = vpop.f32.mrb[127].mxu1  ;;  %5990 = vmatpush3.bf16.msk.msra.mxu1 %vm7097_vm2, %v6501_v6  ;;  %vm3280_vm2 = vcmp.eq.s32.totalorder %v3204_v42, %v7058_v4  ;;  %v7198_v4 = vld [vmem:[%s7456_s3 + $0x2] ss:$0 sm:$0xff] }
 0x4e8   : > { %5991 = vmatprep.subr.msk.bf16.mxu1 %vm7103_vm6, %v6501_v6 }
 0x4e9   : > { %5975 = vmatprep.mubr.bf16.mxu1 %v2972_v36 }
 0x4ea   : > { %5976 = vmatmul.mubr.bf16.gmra.mrb[136].mxu1 %v2973_v63 }
 0x4eb   : > { %5992 = vmatpush3.bf16.msk.msra.mxu1 %vm7103_vm6, %v6501_v6  ;;  %vm5191_vm6 = vmpackc.low %vm3280_vm2, %vm3279_vm15  ;;  %vm4930_vm15 = vcmask 1047559  }
 0x4ec   : > { %v2896_v45 = vpop.f32.mrb[124].mxu0  ;;  %5993 = vmatprep.subr.msk.bf16.mxu1 %vm7107_vm7, %v6501_v6  ;;  %6043 = vmatprep.subr.msk.bf16.mxu0 %vm5191_vm6, %v6501_v6 }
 0x4ed   : > { %v5927_v9 = vpop.f32.mrb[125].mxu0  ;;  %6044 = vmatpush3.bf16.msk.msra.mxu0 %vm5191_vm6, %v6501_v6 }
 0x4ee   : > { %v2899_v17 = vpop.f32.mrb[126].mxu0 }
 0x4ef   : > { %v2974_v48 = vpack.c.bf16 %v2899_v17, %v2896_v45  ;;  %v5928_v49 = vpop.f32.mrb[127].mxu0  ;;  %5994 = vmatpush3.bf16.msk.msra.mxu1 %vm7107_vm7, %v6501_v6  ;;  %vm5193_vm7 = vmpackc.low %vm3282_vm8, %vm3281_vm4 }
 0x4f0   : > { %5995 = vmatprep.subr.msk.bf16.mxu1 %vm7170_vm0, %v6501_v6  ;;  %6045 = vmatprep.subr.msk.bf16.mxu0 %vm5193_vm7, %v6501_v6 }
 0x4f1   : > { %5979 = vmatprep.mubr.bf16.mxu1 %v2974_v48  ;;  %6046 = vmatpush3.bf16.msk.msra.mxu0 %vm5193_vm7, %v6501_v6 }
 0x4f2   : > { %5980 = vmatmul.mubr.bf16.gmra.mrb[140].mxu1 %v2975_v28 }
 0x4f3   : > { %5996 = vmatpush3.bf16.msk.msra.mxu1 %vm7170_vm0, %v6501_v6 }
 0x4f4   : > { %5997 = vmatprep.subr.msk.bf16.mxu1 %vm5177_vm12, %v6501_v6 }
 0x4f7   : > { %5998 = vmatpush3.bf16.msk.msra.mxu1 %vm5177_vm12, %v6501_v6 }
 0x4f8   : > { %6079 = vmatprep.subr.bf16.mxu1 %v6368_v43 }
 0x56c   : > { %v5953_v59 = vpop.f32.mrb[128].mxu0 }
 0x56d   : > { %v3063_v18 = vpop.f32.mrb[129].mxu0  ;;  %v3072_v53 = vadd.f32 %v5953_v59, %v7198_v4 }
 0x56e   : > { %v5954_v50 = vpop.f32.mrb[130].mxu0  ;;  %v3064_v55 = vadd.f32 %v7198_v4, %v3063_v18 }
 0x56f   : > { %v3075_v39 = vadd.f32 %v5954_v50, %v7198_v4  ;;  %v3066_v54 = vpop.f32.mrb[131].mxu0 }
 0x570   : > { %v3067_v56 = vadd.f32 %v7198_v4, %v3066_v54 }
 0x571   : > { %v3324_v6 = vpack.c.bf16 %v3075_v39, %v3072_v53 }
 0x572   : > { %v3323_v14 = vpack.c.bf16 %v3067_v56, %v3064_v55 }
 0x574   : > { %5999 = vmatprep.mubr.bf16.mxu1 %v3323_v14  ;;  %6047 = vmatprep.mubr.bf16.mxu0 %v3323_v14 }
 0x575   : > { %6000 = vmatmul.mubr.bf16.vlgmr.msra.gmra.mrb[144].mxu1 %v3324_v6  ;;  %6048 = vmatmul.mubr.bf16.vlgmr.msra.gmra.mrb[144].mxu0 %v3324_v6 }
 0x576   : > { %6080 = vmatpush3.bf16.msra.mxu1 %v6368_v43 }
 0x577   : > { %6081 = vmatprep.subr.bf16.mxu1 %v6369_v29 }
 0x57a   : > { %6082 = vmatpush3.bf16.msra.mxu1 %v6369_v29 }
 0x57b   : > { %6083 = vmatprep.subr.bf16.mxu1 %v6370_v44 }
 0x57c   : > { %v5957_v26 = vpop.f32.mrb[132].mxu0 }
 0x57d   : > { %v3079_v0 = vpop.f32.mrb[133].mxu0  ;;  %v3088_v37 = vadd.f32 %v5957_v26, %v7198_v4 }
 0x57e   : > { %v5958_v41 = vpop.f32.mrb[134].mxu0  ;;  %6084 = vmatpush3.bf16.msra.mxu1 %v6370_v44  ;;  %v3080_v60 = vadd.f32 %v7198_v4, %v3079_v0 }
 0x57f   : > { %v3091_v40 = vadd.f32 %v5958_v41, %v7198_v4  ;;  %v3082_v57 = vpop.f32.mrb[135].mxu0  ;;  %6085 = vmatprep.subr.bf16.mxu1 %v6371_v30 }
 0x580   : > { %v3083_v61 = vadd.f32 %v7198_v4, %v3082_v57  ;;  %v6374_v57 = vld [vmem:[#allocation2 + $0xf0] sm:$0xff]  }
 0x581   : > { %v3326_v62 = vpack.c.bf16 %v3091_v40, %v3088_v37 }
 0x582   : > { %v3325_v2 = vpack.c.bf16 %v3083_v61, %v3080_v60  ;;  %6086 = vmatpush3.bf16.msra.mxu1 %v6371_v30 }
 0x583   : > { %6087 = vmatprep.subr.bf16.mxu1 %v6372_v58 }
 0x584   : > { %6003 = vmatprep.mubr.bf16.mxu1 %v3325_v2  ;;  %6051 = vmatprep.mubr.bf16.mxu0 %v3325_v2  ;;  %v6375_v2 = vld [vmem:[#allocation2 + $0xf8] sm:$0xff]  }
 0x585   : > { %6004 = vmatmul.mubr.bf16.gmra.mrb[148].mxu1 %v3326_v62  ;;  %6052 = vmatmul.mubr.bf16.gmra.mrb[148].mxu0 %v3326_v62 }
 0x586   : > { %6088 = vmatpush3.bf16.msra.mxu1 %v6372_v58 }
 0x587   : > { %6089 = vmatprep.subr.bf16.mxu1 %v6373_v51 }
 0x58a   : > { %6090 = vmatpush3.bf16.msra.mxu1 %v6373_v51  ;;  %v6376_v51 = vld [vmem:[#allocation2 + $0x100] sm:$0xff]  }
 0x58b   : > { %6091 = vmatprep.subr.bf16.mxu1 %v6374_v57  ;;  %6127 = vmatprep.subr.bf16.mxu0 %v6376_v51 }
 0x58c   : > { %v5961_v3 = vpop.f32.mrb[136].mxu0  ;;  %6128 = vmatpush3.bf16.msra.mxu0 %v6376_v51 }
 0x58d   : > { %v3095_v8 = vpop.f32.mrb[137].mxu0  ;;  %v3104_v11 = vadd.f32 %v5961_v3, %v7198_v4  ;;  %v6377_v3 = vld [vmem:[#allocation2 + $0x108] sm:$0xff]  }
 0x58e   : > { %v5962_v10 = vpop.f32.mrb[138].mxu0  ;;  %v3096_v19 = vadd.f32 %v7198_v4, %v3095_v8  ;;  %6092 = vmatpush3.bf16.msra.mxu1 %v6374_v57  ;;  %6129 = vmatprep.subr.bf16.mxu0 %v6377_v3  ;;  %v6378_v8 = vld [vmem:[#allocation2 + $0x110] sm:$0xff]  }
 0x58f   : > { %v3107_v12 = vadd.f32 %v5962_v10, %v7198_v4  ;;  %v3098_v52 = vpop.f32.mrb[139].mxu0  ;;  %6093 = vmatprep.subr.bf16.mxu1 %v6375_v2  ;;  %v6380_v10 = vld [vmem:[#allocation2 + $0x120] sm:$0xff]  }
 0x590   : > { %v3099_v21 = vadd.f32 %v7198_v4, %v3098_v52  ;;  %6130 = vmatpush3.bf16.msra.mxu0 %v6377_v3 }
 0x591   : > { %v3328_v13 = vpack.c.bf16 %v3107_v12, %v3104_v11  ;;  %6131 = vmatprep.subr.bf16.mxu0 %v6378_v8  ;;  %v6381_v11 = vld [vmem:[#allocation2 + $0x128] sm:$0xff]  }
 0x592   : > { %v3327_v22 = vpack.c.bf16 %v3099_v21, %v3096_v19  ;;  %6094 = vmatpush3.bf16.msra.mxu1 %v6375_v2 }
 0x594   : > { %6007 = vmatprep.mubr.bf16.mxu1 %v3327_v22  ;;  %6055 = vmatprep.mubr.bf16.mxu0 %v3327_v22 }
 0x595   : > { %6008 = vmatmul.mubr.bf16.gmra.mrb[152].mxu1 %v3328_v13  ;;  %6056 = vmatmul.mubr.bf16.gmra.mrb[152].mxu0 %v3328_v13 }
 0x596   : > { %6132 = vmatpush3.bf16.msra.mxu0 %v6378_v8 }
 0x59c   : > { %v5965_v23 = vpop.f32.mrb[140].mxu0 }
 0x59d   : > { %v3111_v24 = vpop.f32.mrb[141].mxu0  ;;  %v3120_v25 = vadd.f32 %v5965_v23, %v7198_v4 }
 0x59e   : > { %v5966_v20 = vpop.f32.mrb[142].mxu0  ;;  %v3112_v32 = vadd.f32 %v7198_v4, %v3111_v24 }
 0x59f   : > { %v3123_v31 = vadd.f32 %v5966_v20, %v7198_v4  ;;  %v3114_v63 = vpop.f32.mrb[143].mxu0 }
 0x5a0   : > { %v3115_v5 = vadd.f32 %v7198_v4, %v3114_v63 }
 0x5a1   : > { %v3330_v33 = vpack.c.bf16 %v3123_v31, %v3120_v25 }
 0x5a2   : > { %v3329_v7 = vpack.c.bf16 %v3115_v5, %v3112_v32 }
 0x5a4   : > { %6011 = vmatprep.mubr.bf16.mxu1 %v3329_v7  ;;  %6059 = vmatprep.mubr.bf16.mxu0 %v3329_v7 }
 0x5a5   : > { %6012 = vmatmul.mubr.bf16.gmra.mrb[156].mxu1 %v3330_v33  ;;  %6060 = vmatmul.mubr.bf16.gmra.mrb[156].mxu0 %v3330_v33 }
 0x5ac   : > { %v5969_v27 = vpop.f32.mrb[128].mxu1 }
 0x5ad   : > { %v3127_v34 = vpop.f32.mrb[129].mxu1  ;;  %v3136_v36 = vadd.f32 %v5969_v27, %v7198_v4 }
 0x5ae   : > { %v5970_v35 = vpop.f32.mrb[130].mxu1  ;;  %v3128_v1 = vadd.f32 %v7198_v4, %v3127_v34 }
 0x5af   : > { %v3139_v38 = vadd.f32 %v5970_v35, %v7198_v4  ;;  %v3130_v28 = vpop.f32.mrb[131].mxu1 }
 0x5b0   : > { %v3131_v16 = vadd.f32 %v7198_v4, %v3130_v28 }
 0x5b1   : > { %v3332_v42 = vpack.c.bf16 %v3139_v38, %v3136_v36 }
 0x5b2   : > { %v3331_v45 = vpack.c.bf16 %v3131_v16, %v3128_v1 }
 0x5b4   : > { %6015 = vmatprep.mubr.bf16.mxu1 %v3331_v45  ;;  %6063 = vmatprep.mubr.bf16.mxu0 %v3331_v45 }
 0x5b5   : > { %v5973_v9 = vpop.f32.mrb[132].mxu1  ;;  %6016 = vmatmul.mubr.bf16.gmra.mrb[160].mxu1 %v3332_v42  ;;  %6064 = vmatmul.mubr.bf16.gmra.mrb[160].mxu0 %v3332_v42 }
 0x5b6   : > { %v3143_v15 = vpop.f32.mrb[133].mxu1  ;;  %v3152_v46 = vadd.f32 %v5973_v9, %v7198_v4 }
 0x5b7   : > { %v5974_v17 = vpop.f32.mrb[134].mxu1  ;;  %v3144_v49 = vadd.f32 %v7198_v4, %v3143_v15 }
 0x5b8   : > { %v3155_v47 = vadd.f32 %v5974_v17, %v7198_v4  ;;  %v3146_v48 = vpop.f32.mrb[135].mxu1 }
 0x5b9   : > { %v3147_v43 = vadd.f32 %v7198_v4, %v3146_v48 }
 0x5ba   : > { %v3334_v59 = vpack.c.bf16 %v3155_v47, %v3152_v46 }
 0x5bb   : > { %v3333_v18 = vpack.c.bf16 %v3147_v43, %v3144_v49 }
 0x5bd   : > { %v5977_v50 = vpop.f32.mrb[136].mxu1  ;;  %6019 = vmatprep.mubr.bf16.mxu1 %v3333_v18  ;;  %6067 = vmatprep.mubr.bf16.mxu0 %v3333_v18 }
 0x5be   : > { %v3159_v53 = vpop.f32.mrb[137].mxu1  ;;  %6020 = vmatmul.mubr.bf16.gmra.mrb[164].mxu1 %v3334_v59  ;;  %6068 = vmatmul.mubr.bf16.gmra.mrb[164].mxu0 %v3334_v59  ;;  %v3168_v54 = vadd.f32 %v5977_v50, %v7198_v4 }
 0x5bf   : > { %v5978_v39 = vpop.f32.mrb[138].mxu1  ;;  %v3160_v6 = vadd.f32 %v7198_v4, %v3159_v53 }
 0x5c0   : > { %v3171_v55 = vadd.f32 %v5978_v39, %v7198_v4  ;;  %v3162_v56 = vpop.f32.mrb[139].mxu1 }
 0x5c1   : > { %v3163_v14 = vadd.f32 %v7198_v4, %v3162_v56 }
 0x5c2   : > { %v3336_v29 = vpack.c.bf16 %v3171_v55, %v3168_v54 }
 0x5c3   : > { %v3335_v44 = vpack.c.bf16 %v3163_v14, %v3160_v6 }
 0x5c5   : > { %v5981_v30 = vpop.f32.mrb[140].mxu1  ;;  %6023 = vmatprep.mubr.bf16.mxu1 %v3335_v44  ;;  %6071 = vmatprep.mubr.bf16.mxu0 %v3335_v44 }
 0x5c6   : > { %v3175_v26 = vpop.f32.mrb[141].mxu1  ;;  %6024 = vmatmul.mubr.bf16.gmra.mrb[168].mxu1 %v3336_v29  ;;  %6072 = vmatmul.mubr.bf16.gmra.mrb[168].mxu0 %v3336_v29  ;;  %v3184_v41 = vadd.f32 %v5981_v30, %v7198_v4 }
 0x5c7   : > { %v5982_v0 = vpop.f32.mrb[142].mxu1  ;;  %v3176_v58 = vadd.f32 %v7198_v4, %v3175_v26 }
 0x5c8   : > { %v3187_v37 = vadd.f32 %v5982_v0, %v7198_v4  ;;  %v3178_v40 = vpop.f32.mrb[143].mxu1 }
 0x5c9   : > { %v3179_v60 = vadd.f32 %v7198_v4, %v3178_v40  ;;  %v6379_v4 = vld [vmem:[#allocation2 + $0x118] sm:$0xff]  }
 0x5ca   : > { %v3338_v61 = vpack.c.bf16 %v3187_v37, %v3184_v41  ;;  %6133 = vmatprep.subr.bf16.mxu0 %v6379_v4 }
 0x5cb   : > { %v3337_v62 = vpack.c.bf16 %v3179_v60, %v3176_v58  ;;  %6134 = vmatpush3.bf16.msra.mxu0 %v6379_v4 }
 0x5cc   : > { %6135 = vmatprep.subr.bf16.mxu0 %v6380_v10 }
 0x5cd   : > { %6027 = vmatprep.mubr.bf16.mxu1 %v3337_v62  ;;  %6075 = vmatprep.mubr.bf16.mxu0 %v3337_v62 }
 0x5ce   : > { %6028 = vmatmul.mubr.bf16.gmra.mrb[172].mxu1 %v3338_v61  ;;  %6076 = vmatmul.mubr.bf16.gmra.mrb[172].mxu0 %v3338_v61 }
 0x5cf   : > { %6136 = vmatpush3.bf16.msra.mxu0 %v6380_v10 }
 0x5d0   : > { %6137 = vmatprep.subr.bf16.mxu0 %v6381_v11 }
 0x5d3   : > { %6138 = vmatpush3.bf16.msra.mxu0 %v6381_v11 }
 0x648   : > { %v6001_v12 = vpop.f32.mrb[144].mxu1  ;;  %v6049_v52 = vpop.f32.mrb[144].mxu0 }
 0x649   : > { %v3663_v19 = vmax.f32 %v6001_v12, %v6049_v52  ;;  %v3373_v21 = vpop.f32.mrb[145].mxu1  ;;  %v3534_v13 = vpop.f32.mrb[145].mxu0 }
 0x64a   : > { %v3661_v22 = vmax.f32 %v3373_v21, %v3534_v13  ;;  %v6002_v23 = vpop.f32.mrb[146].mxu1  ;;  %v6050_v24 = vpop.f32.mrb[146].mxu0 }
 0x64b   : > { %v3664_v20 = vmax.f32 %v6002_v23, %v6050_v24  ;;  %v3376_v25 = vpop.f32.mrb[147].mxu1  ;;  %v3537_v31 = vpop.f32.mrb[147].mxu0 }
 0x64c   : > { %v3662_v63 = vmax.f32 %v3376_v25, %v3537_v31 }
 0x64d   : > { %v3710_v32 = vpack.c.bf16 %v3664_v20, %v3663_v19 }
 0x64e   : > { %v3709_v5 = vpack.c.bf16 %v3662_v63, %v3661_v22 }
 0x650   : > { %6095 = vmatprep.mubr.bf16.mxu1 %v3709_v5 }
 0x651   : > { %6096 = vmatmul.mubr.bf16.vlgmr.msra.gmra.mrb[176].mxu1 %v3710_v32 }
 0x658   : > { %v6005_v33 = vpop.f32.mrb[148].mxu1  ;;  %v6053_v7 = vpop.f32.mrb[148].mxu0 }
 0x659   : > { %v3667_v27 = vmax.f32 %v6005_v33, %v6053_v7  ;;  %v3389_v34 = vpop.f32.mrb[149].mxu1  ;;  %v3550_v35 = vpop.f32.mrb[149].mxu0 }
 0x65a   : > { %v3665_v36 = vmax.f32 %v3389_v34, %v3550_v35  ;;  %v6006_v38 = vpop.f32.mrb[150].mxu1  ;;  %v6054_v28 = vpop.f32.mrb[150].mxu0 }
 0x65b   : > { %v3668_v1 = vmax.f32 %v6006_v38, %v6054_v28  ;;  %v3392_v16 = vpop.f32.mrb[151].mxu1  ;;  %v3553_v42 = vpop.f32.mrb[151].mxu0 }
 0x65c   : > { %v3666_v45 = vmax.f32 %v3392_v16, %v3553_v42 }
 0x65d   : > { %v3712_v9 = vpack.c.bf16 %v3668_v1, %v3667_v27 }
 0x65e   : > { %v3711_v15 = vpack.c.bf16 %v3666_v45, %v3665_v36 }
 0x660   : > { %6099 = vmatprep.mubr.bf16.mxu1 %v3711_v15 }
 0x661   : > { %6100 = vmatmul.mubr.bf16.gmra.mrb[180].mxu1 %v3712_v9 }
 0x668   : > { %v6009_v17 = vpop.f32.mrb[152].mxu1  ;;  %v6057_v46 = vpop.f32.mrb[152].mxu0 }
 0x669   : > { %v3671_v47 = vmax.f32 %v6009_v17, %v6057_v46  ;;  %v3405_v48 = vpop.f32.mrb[153].mxu1  ;;  %v3566_v49 = vpop.f32.mrb[153].mxu0 }
 0x66a   : > { %v3669_v43 = vmax.f32 %v3405_v48, %v3566_v49  ;;  %v6010_v59 = vpop.f32.mrb[154].mxu1  ;;  %v6058_v18 = vpop.f32.mrb[154].mxu0 }
 0x66b   : > { %v3672_v50 = vmax.f32 %v6010_v59, %v6058_v18  ;;  %v3408_v53 = vpop.f32.mrb[155].mxu1  ;;  %v3569_v39 = vpop.f32.mrb[155].mxu0 }
 0x66c   : > { %v3670_v54 = vmax.f32 %v3408_v53, %v3569_v39 }
 0x66d   : > { %v3714_v55 = vpack.c.bf16 %v3672_v50, %v3671_v47 }
 0x66e   : > { %v3713_v56 = vpack.c.bf16 %v3670_v54, %v3669_v43 }
 0x670   : > { %6103 = vmatprep.mubr.bf16.mxu1 %v3713_v56 }
 0x671   : > { %6104 = vmatmul.mubr.bf16.gmra.mrb[184].mxu1 %v3714_v55 }
 0x678   : > { %v6013_v6 = vpop.f32.mrb[156].mxu1  ;;  %v6061_v14 = vpop.f32.mrb[156].mxu0 }
 0x679   : > { %v3675_v29 = vmax.f32 %v6013_v6, %v6061_v14  ;;  %v3421_v44 = vpop.f32.mrb[157].mxu1  ;;  %v3582_v30 = vpop.f32.mrb[157].mxu0 }
 0x67a   : > { %v3673_v26 = vmax.f32 %v3421_v44, %v3582_v30  ;;  %v6014_v0 = vpop.f32.mrb[158].mxu1  ;;  %v6062_v41 = vpop.f32.mrb[158].mxu0 }
 0x67b   : > { %v3676_v37 = vmax.f32 %v6014_v0, %v6062_v41  ;;  %v3424_v40 = vpop.f32.mrb[159].mxu1  ;;  %v3585_v57 = vpop.f32.mrb[159].mxu0  ;;  %v6383_v41 = vld [vmem:[#allocation2 + $0x138] sm:$0xff]  }
 0x67c   : > { %v3674_v58 = vmax.f32 %v3424_v40, %v3585_v57  ;;  %v6385_v40 = vld [vmem:[#allocation2 + $0x148] sm:$0xff]   ;;  %v6386_v57 = vld [vmem:[#allocation2 + $0x150] sm:$0xff]  }
 0x67d   : > { %v3716_v60 = vpack.c.bf16 %v3676_v37, %v3675_v29  ;;  %v6384_v37 = vld [vmem:[#allocation2 + $0x140] sm:$0xff]  }
 0x67e   : > { %v3715_v61 = vpack.c.bf16 %v3674_v58, %v3673_v26  ;;  %v6382_v26 = vld [vmem:[#allocation2 + $0x130] sm:$0xff]   ;;  %6175 = vmatprep.subr.bf16.mxu1 %v6384_v37  ;;  %v6387_v58 = vld [vmem:[#allocation2 + $0x158] sm:$0xff]  }
 0x67f   : > { %6139 = vmatprep.subr.bf16.mxu0 %v6382_v26  ;;  %6176 = vmatpush3.bf16.msra.mxu1 %v6384_v37 }
 0x680   : > { %6107 = vmatprep.mubr.bf16.mxu1 %v3715_v61  ;;  %6140 = vmatpush3.bf16.msra.mxu0 %v6382_v26  ;;  %v6389_v61 = vld [vmem:[#allocation2 + $0x168] sm:$0xff]  }
 0x681   : > { %6108 = vmatmul.mubr.bf16.gmra.mrb[188].mxu1 %v3716_v60  ;;  %6141 = vmatprep.subr.bf16.mxu0 %v6383_v41  ;;  %v6388_v60 = vld [vmem:[#allocation2 + $0x160] sm:$0xff]  }
 0x682   : > { %6177 = vmatprep.subr.bf16.mxu1 %v6385_v40 }
 0x683   : > { %6178 = vmatpush3.bf16.msra.mxu1 %v6385_v40 }
 0x684   : > { %6142 = vmatpush3.bf16.msra.mxu0 %v6383_v41  ;;  %6179 = vmatprep.subr.bf16.mxu1 %v6386_v57 }
 0x687   : > { %6180 = vmatpush3.bf16.msra.mxu1 %v6386_v57 }
 0x688   : > { %v6017_v62 = vpop.f32.mrb[160].mxu1  ;;  %v6065_v2 = vpop.f32.mrb[160].mxu0  ;;  %6181 = vmatprep.subr.bf16.mxu1 %v6387_v58 }
 0x689   : > { %v3679_v51 = vmax.f32 %v6017_v62, %v6065_v2  ;;  %v3437_v3 = vpop.f32.mrb[161].mxu1  ;;  %v3598_v8 = vpop.f32.mrb[161].mxu0  ;;  %v7235_v62 = vld [vmem:[%s7456_s3 + $0x3] ss:$0 sm:$0xff] }
 0x68a   : > { %v3677_v4 = vmax.f32 %v3437_v3, %v3598_v8  ;;  %v6018_v10 = vpop.f32.mrb[162].mxu1  ;;  %v6066_v11 = vpop.f32.mrb[162].mxu0 }
 0x68b   : > { %v3680_v12 = vmax.f32 %v6018_v10, %v6066_v11  ;;  %v3440_v52 = vpop.f32.mrb[163].mxu1  ;;  %v3601_v19 = vpop.f32.mrb[163].mxu0  ;;  %6182 = vmatpush3.bf16.msra.mxu1 %v6387_v58 }
 0x68c   : > { %v3678_v21 = vmax.f32 %v3440_v52, %v3601_v19  ;;  %6183 = vmatprep.subr.bf16.mxu1 %v6388_v60 }
 0x68d   : > { %v3718_v13 = vpack.c.bf16 %v3680_v12, %v3679_v51 }
 0x68e   : > { %v3717_v22 = vpack.c.bf16 %v3678_v21, %v3677_v4 }
 0x68f   : > { %6184 = vmatpush3.bf16.msra.mxu1 %v6388_v60 }
 0x690   : > { %6111 = vmatprep.mubr.bf16.mxu1 %v3717_v22  ;;  %6185 = vmatprep.subr.bf16.mxu1 %v6389_v61 }
 0x691   : > { %v6021_v23 = vpop.f32.mrb[164].mxu1  ;;  %v6069_v24 = vpop.f32.mrb[164].mxu0  ;;  %6112 = vmatmul.mubr.bf16.gmra.mrb[192].mxu1 %v3718_v13 }
 0x692   : > { %v3683_v20 = vmax.f32 %v6021_v23, %v6069_v24  ;;  %v3453_v25 = vpop.f32.mrb[165].mxu1  ;;  %v3614_v31 = vpop.f32.mrb[165].mxu0 }
 0x693   : > { %v3681_v63 = vmax.f32 %v3453_v25, %v3614_v31  ;;  %v6022_v32 = vpop.f32.mrb[166].mxu1  ;;  %v6070_v5 = vpop.f32.mrb[166].mxu0  ;;  %6186 = vmatpush3.bf16.msra.mxu1 %v6389_v61 }
 0x694   : > { %v3684_v33 = vmax.f32 %v6022_v32, %v6070_v5  ;;  %v3456_v7 = vpop.f32.mrb[167].mxu1  ;;  %v3617_v27 = vpop.f32.mrb[167].mxu0 }
 0x695   : > { %v3682_v34 = vmax.f32 %v3456_v7, %v3617_v27 }
 0x696   : > { %v3720_v35 = vpack.c.bf16 %v3684_v33, %v3683_v20 }
 0x697   : > { %v3719_v36 = vpack.c.bf16 %v3682_v34, %v3681_v63 }
 0x699   : > { %v6025_v38 = vpop.f32.mrb[168].mxu1  ;;  %v6073_v28 = vpop.f32.mrb[168].mxu0  ;;  %6115 = vmatprep.mubr.bf16.mxu1 %v3719_v36 }
 0x69a   : > { %v3687_v1 = vmax.f32 %v6025_v38, %v6073_v28  ;;  %v3469_v16 = vpop.f32.mrb[169].mxu1  ;;  %v3630_v42 = vpop.f32.mrb[169].mxu0  ;;  %6116 = vmatmul.mubr.bf16.gmra.mrb[196].mxu1 %v3720_v35 }
 0x69b   : > { %v3685_v45 = vmax.f32 %v3469_v16, %v3630_v42  ;;  %v6026_v9 = vpop.f32.mrb[170].mxu1  ;;  %v6074_v15 = vpop.f32.mrb[170].mxu0 }
 0x69c   : > { %v3688_v17 = vmax.f32 %v6026_v9, %v6074_v15  ;;  %v3472_v46 = vpop.f32.mrb[171].mxu1  ;;  %v3633_v47 = vpop.f32.mrb[171].mxu0 }
 0x69d   : > { %v3686_v48 = vmax.f32 %v3472_v46, %v3633_v47 }
 0x69e   : > { %v3722_v49 = vpack.c.bf16 %v3688_v17, %v3687_v1 }
 0x69f   : > { %v3721_v43 = vpack.c.bf16 %v3686_v48, %v3685_v45 }
 0x6a1   : > { %v6029_v59 = vpop.f32.mrb[172].mxu1  ;;  %v6077_v18 = vpop.f32.mrb[172].mxu0  ;;  %6119 = vmatprep.mubr.bf16.mxu1 %v3721_v43 }
 0x6a2   : > { %v3691_v50 = vmax.f32 %v6029_v59, %v6077_v18  ;;  %v3485_v53 = vpop.f32.mrb[173].mxu1  ;;  %v3646_v39 = vpop.f32.mrb[173].mxu0  ;;  %6120 = vmatmul.mubr.bf16.gmra.mrb[200].mxu1 %v3722_v49 }
 0x6a3   : > { %v3689_v54 = vmax.f32 %v3485_v53, %v3646_v39  ;;  %v6030_v55 = vpop.f32.mrb[174].mxu1  ;;  %v6078_v56 = vpop.f32.mrb[174].mxu0 }
 0x6a4   : > { %v3692_v6 = vmax.f32 %v6030_v55, %v6078_v56  ;;  %v3488_v14 = vpop.f32.mrb[175].mxu1  ;;  %v3649_v29 = vpop.f32.mrb[175].mxu0 }
 0x6a5   : > { %v3690_v44 = vmax.f32 %v3488_v14, %v3649_v29 }
 0x6a6   : > { %v3724_v30 = vpack.c.bf16 %v3692_v6, %v3691_v50 }
 0x6a7   : > { %v3723_v0 = vpack.c.bf16 %v3690_v44, %v3689_v54 }
 0x6a9   : > { %6123 = vmatprep.mubr.bf16.mxu1 %v3723_v0 }
 0x6aa   : > { %6124 = vmatmul.mubr.bf16.gmra.mrb[204].mxu1 %v3724_v30 }
 0x724   : > { %v6097_v2 = vpop.f32.mrb[176].mxu1 }
 0x725   : > { %v3821_v51 = vadd.f32 %v6097_v2, %v7235_v62  ;;  %v3812_v3 = vpop.f32.mrb[177].mxu1 }
 0x726   : > { %v3813_v8 = vadd.f32 %v7235_v62, %v3812_v3  ;;  %v6098_v4 = vpop.f32.mrb[178].mxu1 }
 0x727   : > { %v3824_v10 = vadd.f32 %v6098_v4, %v7235_v62  ;;  %v3815_v11 = vpop.f32.mrb[179].mxu1  ;;  %v3941_v52 = vmax.f32 %v3821_v51, 0.0 }
 0x728   : > { %v3816_v12 = vadd.f32 %v7235_v62, %v3815_v11  ;;  %v3939_v21 = vmax.f32 %v3813_v8, 0.0 }
 0x729   : > { %v3942_v19 = vmax.f32 %v3824_v10, 0.0 }
 0x72a   : > { %v3940_v13 = vmax.f32 %v3816_v12, 0.0 }
 0x72b   : > { %v3988_v22 = vpack.c.bf16 %v3942_v19, %v3941_v52 }
 0x72c   : > { %v3987_v23 = vpack.c.bf16 %v3940_v13, %v3939_v21 }
 0x72e   : > { %6143 = vmatprep.mubr.bf16.mxu0 %v3987_v23 }
 0x72f   : > { %6144 = vmatmul.mubr.bf16.vlgmr.msra.gmra.mrb[176].mxu0 %v3988_v22 }
 0x734   : > { %v6101_v24 = vpop.f32.mrb[180].mxu1 }
 0x735   : > { %v3837_v20 = vadd.f32 %v6101_v24, %v7235_v62  ;;  %v3828_v25 = vpop.f32.mrb[181].mxu1 }
 0x736   : > { %v3829_v31 = vadd.f32 %v7235_v62, %v3828_v25  ;;  %v6102_v63 = vpop.f32.mrb[182].mxu1 }
 0x737   : > { %v3840_v32 = vadd.f32 %v6102_v63, %v7235_v62  ;;  %v3831_v5 = vpop.f32.mrb[183].mxu1  ;;  %v3945_v7 = vmax.f32 %v3837_v20, 0.0 }
 0x738   : > { %v3832_v33 = vadd.f32 %v7235_v62, %v3831_v5  ;;  %v3943_v34 = vmax.f32 %v3829_v31, 0.0 }
 0x739   : > { %v3946_v27 = vmax.f32 %v3840_v32, 0.0 }
 0x73a   : > { %v3944_v35 = vmax.f32 %v3832_v33, 0.0 }
 0x73b   : > { %v3990_v36 = vpack.c.bf16 %v3946_v27, %v3945_v7 }
 0x73c   : > { %v3989_v38 = vpack.c.bf16 %v3944_v35, %v3943_v34 }
 0x73e   : > { %6147 = vmatprep.mubr.bf16.mxu0 %v3989_v38 }
 0x73f   : > { %6148 = vmatmul.mubr.bf16.gmra.mrb[180].mxu0 %v3990_v36 }
 0x744   : > { %v6105_v28 = vpop.f32.mrb[184].mxu1 }
 0x745   : > { %v3853_v1 = vadd.f32 %v6105_v28, %v7235_v62  ;;  %v3844_v16 = vpop.f32.mrb[185].mxu1 }
 0x746   : > { %v3845_v42 = vadd.f32 %v7235_v62, %v3844_v16  ;;  %v6106_v45 = vpop.f32.mrb[186].mxu1 }
 0x747   : > { %v3856_v9 = vadd.f32 %v6106_v45, %v7235_v62  ;;  %v3847_v15 = vpop.f32.mrb[187].mxu1  ;;  %v3949_v46 = vmax.f32 %v3853_v1, 0.0 }
 0x748   : > { %v3848_v17 = vadd.f32 %v7235_v62, %v3847_v15  ;;  %v3947_v48 = vmax.f32 %v3845_v42, 0.0 }
 0x749   : > { %v3950_v47 = vmax.f32 %v3856_v9, 0.0 }
 0x74a   : > { %v3948_v49 = vmax.f32 %v3848_v17, 0.0 }
 0x74b   : > { %v3992_v43 = vpack.c.bf16 %v3950_v47, %v3949_v46 }
 0x74c   : > { %v3991_v59 = vpack.c.bf16 %v3948_v49, %v3947_v48 }
 0x74e   : > { %6151 = vmatprep.mubr.bf16.mxu0 %v3991_v59 }
 0x74f   : > { %6152 = vmatmul.mubr.bf16.gmra.mrb[184].mxu0 %v3992_v43 }
 0x754   : > { %v6109_v18 = vpop.f32.mrb[188].mxu1 }
 0x755   : > { %v3869_v50 = vadd.f32 %v6109_v18, %v7235_v62  ;;  %v3860_v53 = vpop.f32.mrb[189].mxu1 }
 0x756   : > { %v3861_v39 = vadd.f32 %v7235_v62, %v3860_v53  ;;  %v6110_v54 = vpop.f32.mrb[190].mxu1 }
 0x757   : > { %v3872_v55 = vadd.f32 %v6110_v54, %v7235_v62  ;;  %v3863_v56 = vpop.f32.mrb[191].mxu1  ;;  %v3953_v14 = vmax.f32 %v3869_v50, 0.0 }
 0x758   : > { %v3864_v6 = vadd.f32 %v7235_v62, %v3863_v56  ;;  %v3951_v44 = vmax.f32 %v3861_v39, 0.0  ;;  %v6390_v56 = vld [vmem:[#allocation2 + $0x170] sm:$0xff]  }
 0x759   : > { %v3954_v29 = vmax.f32 %v3872_v55, 0.0  ;;  %6187 = vmatprep.subr.bf16.mxu1 %v6390_v56 }
 0x75a   : > { %v3952_v30 = vmax.f32 %v3864_v6, 0.0  ;;  %6188 = vmatpush3.bf16.msra.mxu1 %v6390_v56 }
 0x75b   : > { %v3994_v26 = vpack.c.bf16 %v3954_v29, %v3953_v14  ;;  %v6391_v14 = vld [vmem:[#allocation2 + $0x178] sm:$0xff]   ;;  %v6392_v29 = vld [vmem:[#allocation2 + $0x180] sm:$0xff]  }
 0x75c   : > { %v3993_v0 = vpack.c.bf16 %v3952_v30, %v3951_v44  ;;  %6189 = vmatprep.subr.bf16.mxu1 %v6391_v14  ;;  %v6393_v44 = vld [vmem:[#allocation2 + $0x188] sm:$0xff]   ;;  %6223 = vmatprep.subr.bf16.mxu0 %v6392_v29  ;;  %v6395_v30 = vld [vmem:[#allocation2 + $0x198] sm:$0xff]  }
 0x75d   : > { %6224 = vmatpush3.bf16.msra.mxu0 %v6392_v29 }
 0x75e   : > { %6155 = vmatprep.mubr.bf16.mxu0 %v3993_v0  ;;  %6190 = vmatpush3.bf16.msra.mxu1 %v6391_v14  ;;  %v6397_v0 = vld [vmem:[#allocation2 + $0x1a8] sm:$0xff]  }
 0x75f   : > { %6156 = vmatmul.mubr.bf16.gmra.mrb[188].mxu0 %v3994_v26  ;;  %6225 = vmatprep.subr.bf16.mxu0 %v6393_v44  ;;  %v6396_v26 = vld [vmem:[#allocation2 + $0x1a0] sm:$0xff]  }
 0x761   : > { %6226 = vmatpush3.bf16.msra.mxu0 %v6393_v44 }
 0x764   : > { %v6113_v41 = vpop.f32.mrb[192].mxu1 }
 0x765   : > { %v3885_v37 = vadd.f32 %v6113_v41, %v7235_v62  ;;  %v3876_v40 = vpop.f32.mrb[193].mxu1  ;;  %v7272_v41 = vld [vmem:[%s7456_s3 + $0x4] ss:$0 sm:$0xff] }
 0x766   : > { %v3877_v57 = vadd.f32 %v7235_v62, %v3876_v40  ;;  %v6114_v58 = vpop.f32.mrb[194].mxu1 }
 0x767   : > { %v3888_v60 = vadd.f32 %v6114_v58, %v7235_v62  ;;  %v3879_v61 = vpop.f32.mrb[195].mxu1  ;;  %v3957_v51 = vmax.f32 %v3885_v37, 0.0 }
 0x768   : > { %v3880_v2 = vadd.f32 %v7235_v62, %v3879_v61  ;;  %v3955_v8 = vmax.f32 %v3877_v57, 0.0 }
 0x769   : > { %v3958_v3 = vmax.f32 %v3888_v60, 0.0 }
 0x76a   : > { %v3956_v4 = vmax.f32 %v3880_v2, 0.0 }
 0x76b   : > { %v3996_v10 = vpack.c.bf16 %v3958_v3, %v3957_v51 }
 0x76c   : > { %v3995_v11 = vpack.c.bf16 %v3956_v4, %v3955_v8 }
 0x76d   : > { %v6117_v12 = vpop.f32.mrb[196].mxu1 }
 0x76e   : > { %v3901_v52 = vadd.f32 %v6117_v12, %v7235_v62  ;;  %v3892_v19 = vpop.f32.mrb[197].mxu1  ;;  %6159 = vmatprep.mubr.bf16.mxu0 %v3995_v11 }
 0x76f   : > { %v3893_v21 = vadd.f32 %v7235_v62, %v3892_v19  ;;  %v6118_v13 = vpop.f32.mrb[198].mxu1  ;;  %6160 = vmatmul.mubr.bf16.gmra.mrb[192].mxu0 %v3996_v10 }
 0x770   : > { %v3904_v22 = vadd.f32 %v6118_v13, %v7235_v62  ;;  %v3895_v23 = vpop.f32.mrb[199].mxu1  ;;  %v3961_v20 = vmax.f32 %v3901_v52, 0.0 }
 0x771   : > { %v3896_v24 = vadd.f32 %v7235_v62, %v3895_v23  ;;  %v3959_v31 = vmax.f32 %v3893_v21, 0.0 }
 0x772   : > { %v3962_v25 = vmax.f32 %v3904_v22, 0.0 }
 0x773   : > { %v3960_v63 = vmax.f32 %v3896_v24, 0.0 }
 0x774   : > { %v3998_v32 = vpack.c.bf16 %v3962_v25, %v3961_v20 }
 0x775   : > { %v3997_v5 = vpack.c.bf16 %v3960_v63, %v3959_v31  ;;  %v6121_v33 = vpop.f32.mrb[200].mxu1 }
 0x776   : > { %v3917_v7 = vadd.f32 %v6121_v33, %v7235_v62  ;;  %v3908_v27 = vpop.f32.mrb[201].mxu1 }
 0x777   : > { %v3909_v34 = vadd.f32 %v7235_v62, %v3908_v27  ;;  %v6122_v35 = vpop.f32.mrb[202].mxu1  ;;  %6163 = vmatprep.mubr.bf16.mxu0 %v3997_v5 }
 0x778   : > { %v3920_v36 = vadd.f32 %v6122_v35, %v7235_v62  ;;  %v3911_v38 = vpop.f32.mrb[203].mxu1  ;;  %6164 = vmatmul.mubr.bf16.gmra.mrb[196].mxu0 %v3998_v32  ;;  %v3965_v1 = vmax.f32 %v3917_v7, 0.0 }
 0x779   : > { %v3912_v28 = vadd.f32 %v7235_v62, %v3911_v38  ;;  %v3963_v42 = vmax.f32 %v3909_v34, 0.0 }
 0x77a   : > { %v3966_v16 = vmax.f32 %v3920_v36, 0.0 }
 0x77b   : > { %v3964_v45 = vmax.f32 %v3912_v28, 0.0 }
 0x77c   : > { %v4000_v9 = vpack.c.bf16 %v3966_v16, %v3965_v1 }
 0x77d   : > { %v3999_v15 = vpack.c.bf16 %v3964_v45, %v3963_v42  ;;  %v6125_v17 = vpop.f32.mrb[204].mxu1 }
 0x77e   : > { %v3933_v46 = vadd.f32 %v6125_v17, %v7235_v62  ;;  %v3924_v47 = vpop.f32.mrb[205].mxu1 }
 0x77f   : > { %v3925_v48 = vadd.f32 %v7235_v62, %v3924_v47  ;;  %v6126_v49 = vpop.f32.mrb[206].mxu1  ;;  %6167 = vmatprep.mubr.bf16.mxu0 %v3999_v15 }
 0x780   : > { %v3936_v43 = vadd.f32 %v6126_v49, %v7235_v62  ;;  %v3927_v59 = vpop.f32.mrb[207].mxu1  ;;  %6168 = vmatmul.mubr.bf16.gmra.mrb[200].mxu0 %v4000_v9  ;;  %v3969_v50 = vmax.f32 %v3933_v46, 0.0 }
 0x781   : > { %v3928_v18 = vadd.f32 %v7235_v62, %v3927_v59  ;;  %v3967_v39 = vmax.f32 %v3925_v48, 0.0  ;;  %v6394_v62 = vld [vmem:[#allocation2 + $0x190] sm:$0xff]  }
 0x782   : > { %v3970_v53 = vmax.f32 %v3936_v43, 0.0  ;;  %6227 = vmatprep.subr.bf16.mxu0 %v6394_v62 }
 0x783   : > { %v3968_v54 = vmax.f32 %v3928_v18, 0.0  ;;  %6228 = vmatpush3.bf16.msra.mxu0 %v6394_v62 }
 0x784   : > { %v4002_v55 = vpack.c.bf16 %v3970_v53, %v3969_v50  ;;  %6229 = vmatprep.subr.bf16.mxu0 %v6395_v30 }
 0x785   : > { %v4001_v6 = vpack.c.bf16 %v3968_v54, %v3967_v39 }
 0x787   : > { %6171 = vmatprep.mubr.bf16.mxu0 %v4001_v6  ;;  %6230 = vmatpush3.bf16.msra.mxu0 %v6395_v30 }
 0x788   : > { %6172 = vmatmul.mubr.bf16.gmra.mrb[204].mxu0 %v4002_v55  ;;  %6231 = vmatprep.subr.bf16.mxu0 %v6396_v26 }
 0x78b   : > { %6232 = vmatpush3.bf16.msra.mxu0 %v6396_v26 }
 0x78c   : > { %6233 = vmatprep.subr.bf16.mxu0 %v6397_v0 }
 0x78f   : > { %6234 = vmatpush3.bf16.msra.mxu0 %v6397_v0 }
 0x802   : > { %v6145_v37 = vpop.f32.mrb[176].mxu0 }
 0x803   : > { %v4099_v40 = vadd.f32 %v6145_v37, %v7272_v41  ;;  %v4090_v57 = vpop.f32.mrb[177].mxu0 }
 0x804   : > { %v4091_v58 = vadd.f32 %v7272_v41, %v4090_v57  ;;  %v6146_v60 = vpop.f32.mrb[178].mxu0 }
 0x805   : > { %v4102_v61 = vadd.f32 %v6146_v60, %v7272_v41  ;;  %v4093_v2 = vpop.f32.mrb[179].mxu0  ;;  %v4219_v3 = vmax.f32 %v4099_v40, 0.0 }
 0x806   : > { %v4094_v51 = vadd.f32 %v7272_v41, %v4093_v2  ;;  %v4217_v4 = vmax.f32 %v4091_v58, 0.0 }
 0x807   : > { %v4220_v8 = vmax.f32 %v4102_v61, 0.0 }
 0x808   : > { %v4218_v10 = vmax.f32 %v4094_v51, 0.0 }
 0x809   : > { %v4266_v11 = vpack.c.bf16 %v4220_v8, %v4219_v3 }
 0x80a   : > { %v4265_v12 = vpack.c.bf16 %v4218_v10, %v4217_v4 }
 0x80c   : > { %6191 = vmatprep.mubr.bf16.mxu1 %v4265_v12 }
 0x80d   : > { %6192 = vmatmul.mubr.bf16.vlgmr.msra.gmra.mrb[208].mxu1 %v4266_v11 }
 0x812   : > { %v6149_v52 = vpop.f32.mrb[180].mxu0 }
 0x813   : > { %v4115_v19 = vadd.f32 %v6149_v52, %v7272_v41  ;;  %v4106_v21 = vpop.f32.mrb[181].mxu0 }
 0x814   : > { %v4107_v13 = vadd.f32 %v7272_v41, %v4106_v21  ;;  %v6150_v22 = vpop.f32.mrb[182].mxu0 }
 0x815   : > { %v4118_v23 = vadd.f32 %v6150_v22, %v7272_v41  ;;  %v4109_v24 = vpop.f32.mrb[183].mxu0  ;;  %v4223_v25 = vmax.f32 %v4115_v19, 0.0 }
 0x816   : > { %v4110_v20 = vadd.f32 %v7272_v41, %v4109_v24  ;;  %v4221_v63 = vmax.f32 %v4107_v13, 0.0 }
 0x817   : > { %v4224_v31 = vmax.f32 %v4118_v23, 0.0 }
 0x818   : > { %v4222_v32 = vmax.f32 %v4110_v20, 0.0 }
 0x819   : > { %v4268_v5 = vpack.c.bf16 %v4224_v31, %v4223_v25 }
 0x81a   : > { %v4267_v33 = vpack.c.bf16 %v4222_v32, %v4221_v63 }
 0x81c   : > { %6195 = vmatprep.mubr.bf16.mxu1 %v4267_v33 }
 0x81d   : > { %6196 = vmatmul.mubr.bf16.gmra.mrb[212].mxu1 %v4268_v5 }
 0x822   : > { %v6153_v7 = vpop.f32.mrb[184].mxu0 }
 0x823   : > { %v4131_v27 = vadd.f32 %v6153_v7, %v7272_v41  ;;  %v4122_v34 = vpop.f32.mrb[185].mxu0 }
 0x824   : > { %v4123_v35 = vadd.f32 %v7272_v41, %v4122_v34  ;;  %v6154_v36 = vpop.f32.mrb[186].mxu0 }
 0x825   : > { %v4134_v38 = vadd.f32 %v6154_v36, %v7272_v41  ;;  %v4125_v28 = vpop.f32.mrb[187].mxu0  ;;  %v4227_v16 = vmax.f32 %v4131_v27, 0.0 }
 0x826   : > { %v4126_v1 = vadd.f32 %v7272_v41, %v4125_v28  ;;  %v4225_v45 = vmax.f32 %v4123_v35, 0.0 }
 0x827   : > { %v4228_v42 = vmax.f32 %v4134_v38, 0.0 }
 0x828   : > { %v4226_v9 = vmax.f32 %v4126_v1, 0.0 }
 0x829   : > { %v4270_v15 = vpack.c.bf16 %v4228_v42, %v4227_v16 }
 0x82a   : > { %v4269_v17 = vpack.c.bf16 %v4226_v9, %v4225_v45 }
 0x82c   : > { %6199 = vmatprep.mubr.bf16.mxu1 %v4269_v17 }
 0x82d   : > { %6200 = vmatmul.mubr.bf16.gmra.mrb[216].mxu1 %v4270_v15 }
 0x832   : > { %v6157_v46 = vpop.f32.mrb[188].mxu0 }
 0x833   : > { %v4147_v47 = vadd.f32 %v6157_v46, %v7272_v41  ;;  %v4138_v48 = vpop.f32.mrb[189].mxu0 }
 0x834   : > { %v4139_v49 = vadd.f32 %v7272_v41, %v4138_v48  ;;  %v6158_v43 = vpop.f32.mrb[190].mxu0 }
 0x835   : > { %v4150_v59 = vadd.f32 %v6158_v43, %v7272_v41  ;;  %v4141_v18 = vpop.f32.mrb[191].mxu0  ;;  %v4231_v53 = vmax.f32 %v4147_v47, 0.0 }
 0x836   : > { %v4142_v50 = vadd.f32 %v7272_v41, %v4141_v18  ;;  %v4229_v54 = vmax.f32 %v4139_v49, 0.0  ;;  %v6398_v18 = vld [vmem:[#allocation2 + $0x1b0] sm:$0xff]  }
 0x837   : > { %v4232_v39 = vmax.f32 %v4150_v59, 0.0  ;;  %6235 = vmatprep.subr.bf16.mxu0 %v6398_v18 }
 0x838   : > { %v4230_v55 = vmax.f32 %v4142_v50, 0.0  ;;  %6236 = vmatpush3.bf16.msra.mxu0 %v6398_v18 }
 0x839   : > { %v4272_v56 = vpack.c.bf16 %v4232_v39, %v4231_v53  ;;  %v6399_v53 = vld [vmem:[#allocation2 + $0x1b8] sm:$0xff]   ;;  %v7309_v39 = vld [vmem:[%s7456_s3 + $0x5] ss:$0 sm:$0xff] }
 0x83a   : > { %v4271_v6 = vpack.c.bf16 %v4230_v55, %v4229_v54  ;;  %6237 = vmatprep.subr.bf16.mxu0 %v6399_v53 }
 0x83c   : > { %6203 = vmatprep.mubr.bf16.mxu1 %v4271_v6  ;;  %6238 = vmatpush3.bf16.msra.mxu0 %v6399_v53 }
 0x83d   : > { %6204 = vmatmul.mubr.bf16.gmra.mrb[220].mxu1 %v4272_v56 }
 0x842   : > { %v6161_v14 = vpop.f32.mrb[192].mxu0 }
 0x843   : > { %v4163_v29 = vadd.f32 %v6161_v14, %v7272_v41  ;;  %v4154_v44 = vpop.f32.mrb[193].mxu0 }
 0x844   : > { %v4155_v62 = vadd.f32 %v7272_v41, %v4154_v44  ;;  %v6162_v30 = vpop.f32.mrb[194].mxu0 }
 0x845   : > { %v4166_v26 = vadd.f32 %v6162_v30, %v7272_v41  ;;  %v4157_v0 = vpop.f32.mrb[195].mxu0  ;;  %v4235_v40 = vmax.f32 %v4163_v29, 0.0 }
 0x846   : > { %v4158_v37 = vadd.f32 %v7272_v41, %v4157_v0  ;;  %v4233_v58 = vmax.f32 %v4155_v62, 0.0 }
 0x847   : > { %v4236_v57 = vmax.f32 %v4166_v26, 0.0 }
 0x848   : > { %v4234_v60 = vmax.f32 %v4158_v37, 0.0 }
 0x849   : > { %v4274_v61 = vpack.c.bf16 %v4236_v57, %v4235_v40 }
 0x84a   : > { %v4273_v2 = vpack.c.bf16 %v4234_v60, %v4233_v58 }
 0x84b   : > { %v6165_v51 = vpop.f32.mrb[196].mxu0 }
 0x84c   : > { %v4179_v3 = vadd.f32 %v6165_v51, %v7272_v41  ;;  %v4170_v8 = vpop.f32.mrb[197].mxu0  ;;  %6207 = vmatprep.mubr.bf16.mxu1 %v4273_v2 }
 0x84d   : > { %v4171_v4 = vadd.f32 %v7272_v41, %v4170_v8  ;;  %v6166_v10 = vpop.f32.mrb[198].mxu0  ;;  %6208 = vmatmul.mubr.bf16.gmra.mrb[224].mxu1 %v4274_v61 }
 0x84e   : > { %v4182_v11 = vadd.f32 %v6166_v10, %v7272_v41  ;;  %v4173_v12 = vpop.f32.mrb[199].mxu0  ;;  %v4239_v19 = vmax.f32 %v4179_v3, 0.0 }
 0x84f   : > { %v4174_v52 = vadd.f32 %v7272_v41, %v4173_v12  ;;  %v4237_v13 = vmax.f32 %v4171_v4, 0.0 }
 0x850   : > { %v4240_v21 = vmax.f32 %v4182_v11, 0.0 }
 0x851   : > { %v4238_v22 = vmax.f32 %v4174_v52, 0.0 }
 0x852   : > { %v4276_v23 = vpack.c.bf16 %v4240_v21, %v4239_v19 }
 0x853   : > { %v4275_v24 = vpack.c.bf16 %v4238_v22, %v4237_v13  ;;  %v6169_v20 = vpop.f32.mrb[200].mxu0 }
 0x854   : > { %v4195_v25 = vadd.f32 %v6169_v20, %v7272_v41  ;;  %v4186_v31 = vpop.f32.mrb[201].mxu0 }
 0x855   : > { %v4187_v63 = vadd.f32 %v7272_v41, %v4186_v31  ;;  %v6170_v32 = vpop.f32.mrb[202].mxu0  ;;  %6211 = vmatprep.mubr.bf16.mxu1 %v4275_v24 }
 0x856   : > { %v4198_v5 = vadd.f32 %v6170_v32, %v7272_v41  ;;  %v4189_v33 = vpop.f32.mrb[203].mxu0  ;;  %6212 = vmatmul.mubr.bf16.gmra.mrb[228].mxu1 %v4276_v23  ;;  %v4243_v27 = vmax.f32 %v4195_v25, 0.0 }
 0x857   : > { %v4190_v7 = vadd.f32 %v7272_v41, %v4189_v33  ;;  %v4241_v35 = vmax.f32 %v4187_v63, 0.0 }
 0x858   : > { %v4244_v34 = vmax.f32 %v4198_v5, 0.0 }
 0x859   : > { %v4242_v36 = vmax.f32 %v4190_v7, 0.0 }
 0x85a   : > { %v4278_v38 = vpack.c.bf16 %v4244_v34, %v4243_v27 }
 0x85b   : > { %v4277_v28 = vpack.c.bf16 %v4242_v36, %v4241_v35  ;;  %v6173_v1 = vpop.f32.mrb[204].mxu0 }
 0x85c   : > { %v4211_v16 = vadd.f32 %v6173_v1, %v7272_v41  ;;  %v4202_v42 = vpop.f32.mrb[205].mxu0 }
 0x85d   : > { %v4203_v45 = vadd.f32 %v7272_v41, %v4202_v42  ;;  %v6174_v9 = vpop.f32.mrb[206].mxu0  ;;  %6215 = vmatprep.mubr.bf16.mxu1 %v4277_v28 }
 0x85e   : > { %v4214_v15 = vadd.f32 %v6174_v9, %v7272_v41  ;;  %v4205_v17 = vpop.f32.mrb[207].mxu0  ;;  %6216 = vmatmul.mubr.bf16.gmra.mrb[232].mxu1 %v4278_v38  ;;  %v4247_v47 = vmax.f32 %v4211_v16, 0.0 }
 0x85f   : > { %v4206_v46 = vadd.f32 %v7272_v41, %v4205_v17  ;;  %v4245_v49 = vmax.f32 %v4203_v45, 0.0 }
 0x860   : > { %v4248_v48 = vmax.f32 %v4214_v15, 0.0 }
 0x861   : > { %v4246_v43 = vmax.f32 %v4206_v46, 0.0 }
 0x862   : > { %v4280_v59 = vpack.c.bf16 %v4248_v48, %v4247_v47 }
 0x863   : > { %v4279_v50 = vpack.c.bf16 %v4246_v43, %v4245_v49 }
 0x865   : > { %6219 = vmatprep.mubr.bf16.mxu1 %v4279_v50 }
 0x866   : > { %6220 = vmatmul.mubr.bf16.gmra.mrb[236].mxu1 %v4280_v59 }
 0x8e0   : > { %v6193_v41 = vpop.f32.mrb[208].mxu1 }
 0x8e1   : > { %v4377_v54 = vadd.f32 %v6193_v41, %v7309_v39  ;;  %v4368_v55 = vpop.f32.mrb[209].mxu1 }
 0x8e2   : > { %v4369_v56 = vadd.f32 %v7309_v39, %v4368_v55  ;;  %v6194_v6 = vpop.f32.mrb[210].mxu1 }
 0x8e3   : > { %v4380_v14 = vadd.f32 %v6194_v6, %v7309_v39  ;;  %v4371_v29 = vpop.f32.mrb[211].mxu1  ;;  %v4497_v62 = vmax.f32 %v4377_v54, 0.0 }
 0x8e4   : > { %v4372_v44 = vadd.f32 %v7309_v39, %v4371_v29  ;;  %v4495_v26 = vmax.f32 %v4369_v56, 0.0 }
 0x8e5   : > { %v4498_v30 = vmax.f32 %v4380_v14, 0.0 }
 0x8e6   : > { %v4496_v0 = vmax.f32 %v4372_v44, 0.0 }
 0x8e7   : > { %v4544_v37 = vpack.c.bf16 %v4498_v30, %v4497_v62 }
 0x8e8   : > { %v4543_v40 = vpack.c.bf16 %v4496_v0, %v4495_v26 }
 0x8ea   : > { %6239 = vmatprep.mubr.bf16.mxu0 %v4543_v40 }
 0x8eb   : > { %6240 = vmatmul.mubr.bf16.vlgmr.msra.gmra.mrb[208].mxu0 %v4544_v37 }
 0x8f0   : > { %v6197_v57 = vpop.f32.mrb[212].mxu1 }
 0x8f1   : > { %v4393_v58 = vadd.f32 %v6197_v57, %v7309_v39  ;;  %v4384_v60 = vpop.f32.mrb[213].mxu1 }
 0x8f2   : > { %v4385_v61 = vadd.f32 %v7309_v39, %v4384_v60  ;;  %v6198_v2 = vpop.f32.mrb[214].mxu1 }
 0x8f3   : > { %v4396_v51 = vadd.f32 %v6198_v2, %v7309_v39  ;;  %v4387_v3 = vpop.f32.mrb[215].mxu1  ;;  %v4501_v4 = vmax.f32 %v4393_v58, 0.0 }
 0x8f4   : > { %v4388_v8 = vadd.f32 %v7309_v39, %v4387_v3  ;;  %v4499_v11 = vmax.f32 %v4385_v61, 0.0 }
 0x8f5   : > { %v4502_v10 = vmax.f32 %v4396_v51, 0.0 }
 0x8f6   : > { %v4500_v12 = vmax.f32 %v4388_v8, 0.0 }
 0x8f7   : > { %v4546_v52 = vpack.c.bf16 %v4502_v10, %v4501_v4 }
 0x8f8   : > { %v4545_v19 = vpack.c.bf16 %v4500_v12, %v4499_v11 }
 0x8fa   : > { %6243 = vmatprep.mubr.bf16.mxu0 %v4545_v19 }
 0x8fb   : > { %6244 = vmatmul.mubr.bf16.gmra.mrb[212].mxu0 %v4546_v52 }
 0x900   : > { %v6201_v21 = vpop.f32.mrb[216].mxu1 }
 0x901   : > { %v4409_v13 = vadd.f32 %v6201_v21, %v7309_v39  ;;  %v4400_v22 = vpop.f32.mrb[217].mxu1 }
 0x902   : > { %v4401_v23 = vadd.f32 %v7309_v39, %v4400_v22  ;;  %v6202_v24 = vpop.f32.mrb[218].mxu1 }
 0x903   : > { %v4412_v20 = vadd.f32 %v6202_v24, %v7309_v39  ;;  %v4403_v25 = vpop.f32.mrb[219].mxu1  ;;  %v4505_v63 = vmax.f32 %v4409_v13, 0.0 }
 0x904   : > { %v4404_v31 = vadd.f32 %v7309_v39, %v4403_v25  ;;  %v4503_v5 = vmax.f32 %v4401_v23, 0.0 }
 0x905   : > { %v4506_v32 = vmax.f32 %v4412_v20, 0.0 }
 0x906   : > { %v4504_v33 = vmax.f32 %v4404_v31, 0.0 }
 0x907   : > { %v4548_v7 = vpack.c.bf16 %v4506_v32, %v4505_v63 }
 0x908   : > { %v4547_v27 = vpack.c.bf16 %v4504_v33, %v4503_v5 }
 0x90a   : > { %6247 = vmatprep.mubr.bf16.mxu0 %v4547_v27 }
 0x90b   : > { %6248 = vmatmul.mubr.bf16.gmra.mrb[216].mxu0 %v4548_v7 }
 0x910   : > { %v6205_v34 = vpop.f32.mrb[220].mxu1 }
 0x911   : > { %v4425_v35 = vadd.f32 %v6205_v34, %v7309_v39  ;;  %v4416_v36 = vpop.f32.mrb[221].mxu1 }
 0x912   : > { %v4417_v38 = vadd.f32 %v7309_v39, %v4416_v36  ;;  %v6206_v28 = vpop.f32.mrb[222].mxu1 }
 0x913   : > { %v4428_v1 = vadd.f32 %v6206_v28, %v7309_v39  ;;  %v4419_v16 = vpop.f32.mrb[223].mxu1  ;;  %v4509_v45 = vmax.f32 %v4425_v35, 0.0 }
 0x914   : > { %v4420_v42 = vadd.f32 %v7309_v39, %v4419_v16  ;;  %v4507_v15 = vmax.f32 %v4417_v38, 0.0 }
 0x915   : > { %v4510_v9 = vmax.f32 %v4428_v1, 0.0 }
 0x916   : > { %v4508_v17 = vmax.f32 %v4420_v42, 0.0 }
 0x917   : > { %v4550_v46 = vpack.c.bf16 %v4510_v9, %v4509_v45  ;;  %v7346_v45 = vld [vmem:[%s7456_s3 + $0x6] ss:$0 sm:$0xff] }
 0x918   : > { %v4549_v47 = vpack.c.bf16 %v4508_v17, %v4507_v15 }
 0x91a   : > { %6251 = vmatprep.mubr.bf16.mxu0 %v4549_v47 }
 0x91b   : > { %6252 = vmatmul.mubr.bf16.gmra.mrb[220].mxu0 %v4550_v46 }
 0x920   : > { %v6209_v48 = vpop.f32.mrb[224].mxu1 }
 0x921   : > { %v4441_v49 = vadd.f32 %v6209_v48, %v7309_v39  ;;  %v4432_v43 = vpop.f32.mrb[225].mxu1 }
 0x922   : > { %v4433_v59 = vadd.f32 %v7309_v39, %v4432_v43  ;;  %v6210_v18 = vpop.f32.mrb[226].mxu1 }
 0x923   : > { %v4444_v50 = vadd.f32 %v6210_v18, %v7309_v39  ;;  %v4435_v53 = vpop.f32.mrb[227].mxu1  ;;  %v4513_v54 = vmax.f32 %v4441_v49, 0.0 }
 0x924   : > { %v4436_v41 = vadd.f32 %v7309_v39, %v4435_v53  ;;  %v4511_v56 = vmax.f32 %v4433_v59, 0.0 }
 0x925   : > { %v4514_v55 = vmax.f32 %v4444_v50, 0.0 }
 0x926   : > { %v4512_v6 = vmax.f32 %v4436_v41, 0.0 }
 0x927   : > { %v4552_v14 = vpack.c.bf16 %v4514_v55, %v4513_v54 }
 0x928   : > { %v4551_v29 = vpack.c.bf16 %v4512_v6, %v4511_v56 }
 0x929   : > { %v6213_v44 = vpop.f32.mrb[228].mxu1 }
 0x92a   : > { %v4457_v62 = vadd.f32 %v6213_v44, %v7309_v39  ;;  %v4448_v30 = vpop.f32.mrb[229].mxu1  ;;  %6255 = vmatprep.mubr.bf16.mxu0 %v4551_v29 }
 0x92b   : > { %v4449_v26 = vadd.f32 %v7309_v39, %v4448_v30  ;;  %v6214_v0 = vpop.f32.mrb[230].mxu1  ;;  %6256 = vmatmul.mubr.bf16.gmra.mrb[224].mxu0 %v4552_v14 }
 0x92c   : > { %v4460_v37 = vadd.f32 %v6214_v0, %v7309_v39  ;;  %v4451_v40 = vpop.f32.mrb[231].mxu1  ;;  %v4517_v58 = vmax.f32 %v4457_v62, 0.0 }
 0x92d   : > { %v4452_v57 = vadd.f32 %v7309_v39, %v4451_v40  ;;  %v4515_v61 = vmax.f32 %v4449_v26, 0.0 }
 0x92e   : > { %v4518_v60 = vmax.f32 %v4460_v37, 0.0 }
 0x92f   : > { %v4516_v2 = vmax.f32 %v4452_v57, 0.0 }
 0x930   : > { %v4554_v51 = vpack.c.bf16 %v4518_v60, %v4517_v58 }
 0x931   : > { %v4553_v3 = vpack.c.bf16 %v4516_v2, %v4515_v61  ;;  %v6217_v8 = vpop.f32.mrb[232].mxu1 }
 0x932   : > { %v4473_v4 = vadd.f32 %v6217_v8, %v7309_v39  ;;  %v4464_v10 = vpop.f32.mrb[233].mxu1 }
 0x933   : > { %v4465_v11 = vadd.f32 %v7309_v39, %v4464_v10  ;;  %v6218_v12 = vpop.f32.mrb[234].mxu1  ;;  %6259 = vmatprep.mubr.bf16.mxu0 %v4553_v3 }
 0x934   : > { %v4476_v52 = vadd.f32 %v6218_v12, %v7309_v39  ;;  %v4467_v19 = vpop.f32.mrb[235].mxu1  ;;  %6260 = vmatmul.mubr.bf16.gmra.mrb[228].mxu0 %v4554_v51  ;;  %v4521_v13 = vmax.f32 %v4473_v4, 0.0 }
 0x935   : > { %v4468_v21 = vadd.f32 %v7309_v39, %v4467_v19  ;;  %v4519_v23 = vmax.f32 %v4465_v11, 0.0 }
 0x936   : > { %v4522_v22 = vmax.f32 %v4476_v52, 0.0 }
 0x937   : > { %v4520_v24 = vmax.f32 %v4468_v21, 0.0 }
 0x938   : > { %v4556_v20 = vpack.c.bf16 %v4522_v22, %v4521_v13 }
 0x939   : > { %v4555_v25 = vpack.c.bf16 %v4520_v24, %v4519_v23  ;;  %v6221_v31 = vpop.f32.mrb[236].mxu1 }
 0x93a   : > { %v4489_v63 = vadd.f32 %v6221_v31, %v7309_v39  ;;  %v4480_v32 = vpop.f32.mrb[237].mxu1 }
 0x93b   : > { %v4481_v5 = vadd.f32 %v7309_v39, %v4480_v32  ;;  %v6222_v33 = vpop.f32.mrb[238].mxu1  ;;  %6263 = vmatprep.mubr.bf16.mxu0 %v4555_v25 }
 0x93c   : > { %v4492_v7 = vadd.f32 %v6222_v33, %v7309_v39  ;;  %v4483_v27 = vpop.f32.mrb[239].mxu1  ;;  %6264 = vmatmul.mubr.bf16.gmra.mrb[232].mxu0 %v4556_v20  ;;  %v4525_v35 = vmax.f32 %v4489_v63, 0.0 }
 0x93d   : > { %v4484_v34 = vadd.f32 %v7309_v39, %v4483_v27  ;;  %v4523_v38 = vmax.f32 %v4481_v5, 0.0 }
 0x93e   : > { %v4526_v36 = vmax.f32 %v4492_v7, 0.0 }
 0x93f   : > { %v4524_v28 = vmax.f32 %v4484_v34, 0.0 }
 0x940   : > { %v4558_v1 = vpack.c.bf16 %v4526_v36, %v4525_v35 }
 0x941   : > { %v4557_v16 = vpack.c.bf16 %v4524_v28, %v4523_v38 }
 0x943   : > { %6267 = vmatprep.mubr.bf16.mxu0 %v4557_v16 }
 0x944   : > { %6268 = vmatmul.mubr.bf16.gmra.mrb[236].mxu0 %v4558_v1 }
 0x9be   : > { %v6241_v42 = vpop.f32.mrb[208].mxu0 }
 0x9bf   : > { %v4646_v9 = vpop.f32.mrb[209].mxu0  ;;  %v4655_v17 = vadd.f32 %v6241_v42, %v7346_v45 }
 0x9c0   : > { %v6242_v15 = vpop.f32.mrb[210].mxu0  ;;  %v4647_v47 = vadd.f32 %v7346_v45, %v4646_v9 }
 0x9c1   : > { %v4658_v39 = vadd.f32 %v6242_v15, %v7346_v45  ;;  %v4649_v46 = vpop.f32.mrb[211].mxu0 }
 0x9c2   : > { %v4650_v48 = vadd.f32 %v7346_v45, %v4649_v46 }
 0x9c3   : > { %v4780_v49 = vadd.f32 %v4658_v39, %v4655_v17 }
 0x9c4   : > { %v4773_v43 = vadd.f32 %v4650_v48, %v4647_v47 }
 0x9c5   : > { %v4781_v59 = vrot.slane %v4780_v49, 4 }
 0x9c6   : > { %v4774_v18 = vrot.slane %v4773_v43, 4 }
 0x9c7   : > { %v4782_v50 = vadd.f32 %v4781_v59, %v4780_v49 }
 0x9c8   : > { %v4775_v53 = vadd.f32 %v4774_v18, %v4773_v43 }
 0x9c9   : > { %v4783_v41 = vrot.slane %v4782_v50, 2 }
 0x9ca   : > { %v4776_v54 = vrot.slane %v4775_v53, 2 }
 0x9cb   : > { %v4784_v55 = vadd.f32 %v4783_v41, %v4782_v50 }
 0x9cc   : > { %v4777_v56 = vadd.f32 %v4776_v54, %v4775_v53 }
 0x9cd   : > { %v4785_v6 = vrot.slane %v4784_v55, 1 }
 0x9ce   : > { %v4778_v14 = vrot.slane %v4777_v56, 1  ;;  %v6245_v29 = vpop.f32.mrb[212].mxu0 }
 0x9cf   : > { %v4786_v44 = vadd.f32 %v4785_v6, %v4784_v55  ;;  %v4662_v62 = vpop.f32.mrb[213].mxu0  ;;  %v4671_v37 = vadd.f32 %v6245_v29, %v7346_v45 }
 0x9d0   : > { %v4779_v30 = vadd.f32 %v4778_v14, %v4777_v56  ;;  %v6246_v26 = vpop.f32.mrb[214].mxu0  ;;  %v4663_v60 = vadd.f32 %v7346_v45, %v4662_v62 }
 0x9d1   : > { %v4887_v0 = vmul.f32 0.0625, %v4786_v44  ;;  %v4674_v40 = vadd.f32 %v6246_v26, %v7346_v45  ;;  %v4665_v57 = vpop.f32.mrb[215].mxu0 }
 0x9d2   : > { %v4886_v58 = vmul.f32 0.0625, %v4779_v30  ;;  %v4666_v61 = vadd.f32 %v7346_v45, %v4665_v57 }
 0x9d3   : > { %v4794_v2 = vadd.f32 %v4674_v40, %v4671_v37 }
 0x9d4   : > { %v4919_v51 = vsel %vm4918_vm10, %v4887_v0, %v4886_v58  ;;  %v4787_v3 = vadd.f32 %v4666_v61, %v4663_v60 }
 0x9d5   : > { %v4795_v8 = vrot.slane %v4794_v2, 4 }
 0x9d6   : > { %v4788_v4 = vrot.slane %v4787_v3, 4 }
 0x9d7   : > { %v4796_v10 = vadd.f32 %v4795_v8, %v4794_v2 }
 0x9d8   : > { %v4789_v11 = vadd.f32 %v4788_v4, %v4787_v3 }
 0x9d9   : > { %v4797_v12 = vrot.slane %v4796_v10, 2 }
 0x9da   : > { %v4790_v52 = vrot.slane %v4789_v11, 2 }
 0x9db   : > { %v4798_v19 = vadd.f32 %v4797_v12, %v4796_v10 }
 0x9dc   : > { %v4791_v21 = vadd.f32 %v4790_v52, %v4789_v11 }
 0x9dd   : > { %v4799_v13 = vrot.slane %v4798_v19, 1 }
 0x9de   : > { %v4792_v22 = vrot.slane %v4791_v21, 1  ;;  %v6249_v23 = vpop.f32.mrb[216].mxu0 }
 0x9df   : > { %v4800_v24 = vadd.f32 %v4799_v13, %v4798_v19  ;;  %v4678_v20 = vpop.f32.mrb[217].mxu0  ;;  %v4687_v63 = vadd.f32 %v6249_v23, %v7346_v45 }
 0x9e0   : > { %v4793_v25 = vadd.f32 %v4792_v22, %v4791_v21  ;;  %v6250_v31 = vpop.f32.mrb[218].mxu0  ;;  %v4679_v7 = vadd.f32 %v7346_v45, %v4678_v20 }
 0x9e1   : > { %v4690_v32 = vadd.f32 %v6250_v31, %v7346_v45  ;;  %v4681_v5 = vpop.f32.mrb[219].mxu0  ;;  %v4889_v34 = vmul.f32 0.0625, %v4800_v24 }
 0x9e2   : > { %v4888_v33 = vmul.f32 0.0625, %v4793_v25  ;;  %v4682_v27 = vadd.f32 %v7346_v45, %v4681_v5 }
 0x9e3   : > { %v4808_v35 = vadd.f32 %v4690_v32, %v4687_v63 }
 0x9e4   : > { %v4921_v36 = vsel %vm4920_vm13, %v4888_v33, %v4919_v51  ;;  %v4801_v38 = vadd.f32 %v4682_v27, %v4679_v7 }
 0x9e5   : > { %v4809_v28 = vrot.slane %v4808_v35, 4  ;;  %v4923_v1 = vsel %vm4922_vm11, %v4889_v34, %v4921_v36 }
 0x9e6   : > { %v4802_v16 = vrot.slane %v4801_v38, 4 }
 0x9e7   : > { %v4810_v42 = vadd.f32 %v4809_v28, %v4808_v35 }
 0x9e8   : > { %v4803_v9 = vadd.f32 %v4802_v16, %v4801_v38 }
 0x9e9   : > { %v4811_v15 = vrot.slane %v4810_v42, 2 }
 0x9ea   : > { %v4804_v17 = vrot.slane %v4803_v9, 2 }
 0x9eb   : > { %v4812_v39 = vadd.f32 %v4811_v15, %v4810_v42 }
 0x9ec   : > { %v4805_v46 = vadd.f32 %v4804_v17, %v4803_v9 }
 0x9ed   : > { %v4813_v47 = vrot.slane %v4812_v39, 1 }
 0x9ee   : > { %v4806_v48 = vrot.slane %v4805_v46, 1  ;;  %v6253_v49 = vpop.f32.mrb[220].mxu0 }
 0x9ef   : > { %v4814_v43 = vadd.f32 %v4813_v47, %v4812_v39  ;;  %v4694_v59 = vpop.f32.mrb[221].mxu0  ;;  %v4703_v53 = vadd.f32 %v6253_v49, %v7346_v45 }
 0x9f0   : > { %v4807_v18 = vadd.f32 %v4806_v48, %v4805_v46  ;;  %v6254_v50 = vpop.f32.mrb[222].mxu0  ;;  %v4695_v56 = vadd.f32 %v7346_v45, %v4694_v59 }
 0x9f1   : > { %v4706_v41 = vadd.f32 %v6254_v50, %v7346_v45  ;;  %v4697_v54 = vpop.f32.mrb[223].mxu0  ;;  %v4891_v14 = vmul.f32 0.0625, %v4814_v43 }
 0x9f2   : > { %v4890_v55 = vmul.f32 0.0625, %v4807_v18  ;;  %v4698_v6 = vadd.f32 %v7346_v45, %v4697_v54 }
 0x9f3   : > { %v4822_v29 = vadd.f32 %v4706_v41, %v4703_v53 }
 0x9f4   : > { %v4925_v44 = vsel %vm4924_vm14, %v4890_v55, %v4923_v1  ;;  %v4815_v62 = vadd.f32 %v4698_v6, %v4695_v56 }
 0x9f5   : > { %v4823_v30 = vrot.slane %v4822_v29, 4  ;;  %v4927_v26 = vsel %vm4926_vm5, %v4891_v14, %v4925_v44 }
 0x9f6   : > { %v4816_v0 = vrot.slane %v4815_v62, 4 }
 0x9f7   : > { %v4824_v37 = vadd.f32 %v4823_v30, %v4822_v29 }
 0x9f8   : > { %v4817_v40 = vadd.f32 %v4816_v0, %v4815_v62 }
 0x9f9   : > { %v4825_v57 = vrot.slane %v4824_v37, 2 }
 0x9fa   : > { %v4818_v58 = vrot.slane %v4817_v40, 2 }
 0x9fb   : > { %v4826_v60 = vadd.f32 %v4825_v57, %v4824_v37 }
 0x9fc   : > { %v4819_v61 = vadd.f32 %v4818_v58, %v4817_v40 }
 0x9fd   : > { %v4827_v2 = vrot.slane %v4826_v60, 1 }
 0x9fe   : > { %v4820_v51 = vrot.slane %v4819_v61, 1  ;;  %v6257_v3 = vpop.f32.mrb[224].mxu0 }
 0x9ff   : > { %v4828_v8 = vadd.f32 %v4827_v2, %v4826_v60  ;;  %v4710_v4 = vpop.f32.mrb[225].mxu0  ;;  %v4719_v12 = vadd.f32 %v6257_v3, %v7346_v45 }
 0xa00   : > { %v4821_v10 = vadd.f32 %v4820_v51, %v4819_v61  ;;  %v6258_v11 = vpop.f32.mrb[226].mxu0  ;;  %v4711_v13 = vadd.f32 %v7346_v45, %v4710_v4 }
 0xa01   : > { %v4722_v52 = vadd.f32 %v6258_v11, %v7346_v45  ;;  %v4713_v19 = vpop.f32.mrb[227].mxu0  ;;  %v4893_v23 = vmul.f32 0.0625, %v4828_v8 }
 0xa02   : > { %v4892_v21 = vmul.f32 0.0625, %v4821_v10  ;;  %v4714_v22 = vadd.f32 %v7346_v45, %v4713_v19 }
 0xa03   : > { %v4836_v24 = vadd.f32 %v4722_v52, %v4719_v12 }
 0xa04   : > { %v4929_v20 = vsel %vm4928_vm9, %v4892_v21, %v4927_v26  ;;  %v4829_v25 = vadd.f32 %v4714_v22, %v4711_v13 }
 0xa05   : > { %v4931_v31 = vsel %vm4930_vm15, %v4893_v23, %v4929_v20  ;;  %v4837_v63 = vrot.slane %v4836_v24, 4 }
 0xa06   : > { %v4830_v32 = vrot.slane %v4829_v25, 4  ;;  %4941 = vst [vmem:[%s7378_s7] sm:$0xff] %v4931_v31 }
 0xa07   : > { %v4838_v5 = vadd.f32 %v4837_v63, %v4836_v24  ;;  %v6261_v33 = vpop.f32.mrb[228].mxu0 }
 0xa08   : > { %v4831_v7 = vadd.f32 %v4830_v32, %v4829_v25  ;;  %v4726_v27 = vpop.f32.mrb[229].mxu0  ;;  %v4735_v38 = vadd.f32 %v6261_v33, %v7346_v45 }
 0xa09   : > { %v4839_v34 = vrot.slane %v4838_v5, 2  ;;  %v6262_v35 = vpop.f32.mrb[230].mxu0  ;;  %v4727_v42 = vadd.f32 %v7346_v45, %v4726_v27 }
 0xa0a   : > { %v4832_v36 = vrot.slane %v4831_v7, 2  ;;  %v4738_v28 = vadd.f32 %v6262_v35, %v7346_v45  ;;  %v4729_v1 = vpop.f32.mrb[231].mxu0 }
 0xa0b   : > { %v4840_v16 = vadd.f32 %v4839_v34, %v4838_v5  ;;  %v4730_v9 = vadd.f32 %v7346_v45, %v4729_v1 }
 0xa0c   : > { %v4833_v15 = vadd.f32 %v4832_v36, %v4831_v7  ;;  %v4850_v17 = vadd.f32 %v4738_v28, %v4735_v38 }
 0xa0d   : > { %v4841_v39 = vrot.slane %v4840_v16, 1  ;;  %v4843_v46 = vadd.f32 %v4730_v9, %v4727_v42 }
 0xa0e   : > { %v4834_v47 = vrot.slane %v4833_v15, 1  ;;  %v4851_v48 = vrot.slane %v4850_v17, 4 }
 0xa0f   : > { %v4842_v49 = vadd.f32 %v4841_v39, %v4840_v16  ;;  %v4844_v43 = vrot.slane %v4843_v46, 4  ;;  %v6265_v59 = vpop.f32.mrb[232].mxu0 }
 0xa10   : > { %v4835_v18 = vadd.f32 %v4834_v47, %v4833_v15  ;;  %v4852_v50 = vadd.f32 %v4851_v48, %v4850_v17  ;;  %v4742_v53 = vpop.f32.mrb[233].mxu0  ;;  %v4751_v14 = vadd.f32 %v6265_v59, %v7346_v45 }
 0xa11   : > { %v4895_v41 = vmul.f32 0.0625, %v4842_v49  ;;  %v4845_v54 = vadd.f32 %v4844_v43, %v4843_v46  ;;  %v6266_v55 = vpop.f32.mrb[234].mxu0  ;;  %v4743_v30 = vadd.f32 %v7346_v45, %v4742_v53 }
 0xa12   : > { %v4894_v56 = vmul.f32 0.0625, %v4835_v18  ;;  %v4853_v6 = vrot.slane %v4852_v50, 2  ;;  %v4754_v29 = vadd.f32 %v6266_v55, %v7346_v45  ;;  %v4745_v44 = vpop.f32.mrb[235].mxu0 }
 0xa13   : > { %v4846_v62 = vrot.slane %v4845_v54, 2  ;;  %v4746_v26 = vadd.f32 %v7346_v45, %v4745_v44 }
 0xa14   : > { %v4932_v0 = vsel %vm4918_vm10, %v4895_v41, %v4894_v56  ;;  %v4854_v37 = vadd.f32 %v4853_v6, %v4852_v50  ;;  %v4864_v40 = vadd.f32 %v4754_v29, %v4751_v14 }
 0xa15   : > { %v4847_v57 = vadd.f32 %v4846_v62, %v4845_v54  ;;  %v4857_v58 = vadd.f32 %v4746_v26, %v4743_v30 }
 0xa16   : > { %v4855_v60 = vrot.slane %v4854_v37, 1  ;;  %v4865_v61 = vrot.slane %v4864_v40, 4 }
 0xa17   : > { %v4848_v2 = vrot.slane %v4847_v57, 1  ;;  %v4858_v51 = vrot.slane %v4857_v58, 4  ;;  %v6269_v3 = vpop.f32.mrb[236].mxu0 }
 0xa18   : > { %v4856_v8 = vadd.f32 %v4855_v60, %v4854_v37  ;;  %v4866_v4 = vadd.f32 %v4865_v61, %v4864_v40  ;;  %v4758_v10 = vpop.f32.mrb[237].mxu0  ;;  %v4767_v21 = vadd.f32 %v6269_v3, %v7346_v45 }
 0xa19   : > { %v4849_v11 = vadd.f32 %v4848_v2, %v4847_v57  ;;  %v4859_v12 = vadd.f32 %v4858_v51, %v4857_v58  ;;  %v6270_v52 = vpop.f32.mrb[238].mxu0  ;;  %v4759_v20 = vadd.f32 %v7346_v45, %v4758_v10 }
 0xa1a   : > { %v4867_v19 = vrot.slane %v4866_v4, 2  ;;  %v4770_v13 = vadd.f32 %v6270_v52, %v7346_v45  ;;  %v4761_v22 = vpop.f32.mrb[239].mxu0  ;;  %v4897_v31 = vmul.f32 0.0625, %v4856_v8 }
 0xa1b   : > { %v4896_v23 = vmul.f32 0.0625, %v4849_v11  ;;  %v4860_v24 = vrot.slane %v4859_v12, 2  ;;  %v4762_v25 = vadd.f32 %v7346_v45, %v4761_v22 }
 0xa1c   : > { %v4868_v63 = vadd.f32 %v4867_v19, %v4866_v4  ;;  %v4878_v32 = vadd.f32 %v4770_v13, %v4767_v21 }
 0xa1d   : > { %v4933_v5 = vsel %vm4920_vm13, %v4896_v23, %v4932_v0  ;;  %v4861_v33 = vadd.f32 %v4860_v24, %v4859_v12  ;;  %v4871_v7 = vadd.f32 %v4762_v25, %v4759_v20 }
 0xa1e   : > { %v4869_v27 = vrot.slane %v4868_v63, 1  ;;  %v4934_v34 = vsel %vm4922_vm11, %v4897_v31, %v4933_v5  ;;  %v4879_v35 = vrot.slane %v4878_v32, 4 }
 0xa1f   : > { %v4862_v36 = vrot.slane %v4861_v33, 1  ;;  %v4872_v38 = vrot.slane %v4871_v7, 4 }
 0xa20   : > { %v4870_v28 = vadd.f32 %v4869_v27, %v4868_v63  ;;  %v4880_v1 = vadd.f32 %v4879_v35, %v4878_v32 }
 0xa21   : > { %v4863_v16 = vadd.f32 %v4862_v36, %v4861_v33  ;;  %v4873_v42 = vadd.f32 %v4872_v38, %v4871_v7 }
 0xa22   : > { %v4881_v45 = vrot.slane %v4880_v1, 2  ;;  %v4899_v17 = vmul.f32 0.0625, %v4870_v28 }
 0xa23   : > { %v4898_v9 = vmul.f32 0.0625, %v4863_v16  ;;  %v4874_v15 = vrot.slane %v4873_v42, 2 }
 0xa24   : > { %v4882_v39 = vadd.f32 %v4881_v45, %v4880_v1 }
 0xa25   : > { %v4935_v46 = vsel %vm4924_vm14, %v4898_v9, %v4934_v34  ;;  %v4875_v47 = vadd.f32 %v4874_v15, %v4873_v42 }
 0xa26   : > { %v4883_v48 = vrot.slane %v4882_v39, 1  ;;  %v4936_v49 = vsel %vm4926_vm5, %v4899_v17, %v4935_v46 }
 0xa27   : > { %v4876_v43 = vrot.slane %v4875_v47, 1 }
 0xa28   : > { %v4884_v59 = vadd.f32 %v4883_v48, %v4882_v39 }
 0xa29   : > { %v4877_v18 = vadd.f32 %v4876_v43, %v4875_v47 }
 0xa2a   : > { %v4901_v53 = vmul.f32 0.0625, %v4884_v59 }
 0xa2b   : > { %v4900_v50 = vmul.f32 0.0625, %v4877_v18 }
 0xa2d   : > { %v4937_v41 = vsel %vm4928_vm9, %v4900_v50, %v4936_v49 }
 0xa2e   : > { %v4938_v54 = vsel %vm4930_vm15, %v4901_v53, %v4937_v41 }
 0xa2f   : > { %4942 = vst [vmem:[%s7378_s7 + $0x8] sm:$0xff] %v4938_v54 }
 0xa30   : > { %6441 = shalt.err (!%p6438_p7)
}
 0xa31   : > { %s6442_s23 = scalar_lea.hbm %s7403_s12, 256  ;;  %s6446_s29 = scalar_lea.hbm %s7457_s4, 512 }
 0xa32   : > { %p6443_p8 = scmp.ne.s32.totalorder %s7403_s12, %s6442_s23  ;;  %p6447_p1 = scmp.lt.u32.totalorder %s7403_s12, %s7457_s4 }
 0xa33   : > { %p6448_p0 = scmp.lt.u32.totalorder %s6446_s29, %s6442_s23  ;;  %p6450_p6 = scmp.lt.u32.totalorder %s6442_s23, %s7403_s12 }
 0xa34   : > { %p6444_p11 = pnand %p6443_p8, %p7484_p9 }
 0xa35   : > { %p6449_p5 = por %p6448_p0, %p6447_p1 }
 0xa36   : > { %p6445_p13 = pneg %p6444_p11 }
 0xa37   : > { %p6451_p10 = por %p6450_p6, %p6449_p5 }
 0xa39   : > { %p6452_p12 = pnand %p6451_p10, %p6445_p13 }
 0xa3b   : > { %6455 = shalt.err (!%p6452_p12)
}
 0xa3c   : > { %s6503_s6 = smov 128   ;;  %s6504_s7 = smov 8  }
 0xa3d   : > { %6291 = dma.vmem_to_hbm [thread:$0]  (%p7484_p9), %s7405_s9, 256, %s7403_s12, %s7412_s19, %s6503_s6, %s6503_s6, %s6504_s7  }
 0xa3e PF: > { %p6303_p2 = scmp.ge.s32.totalorder %s6494_s18, 2  ;;  %s4972_s8 = sand.u32 1, %s6482_s15  }
 0xa3f   : > { %p7485_p3 = scmp.ne.s32.totalorder %s7462_s26, 0  ;;  %s4973_s10 = scalar_lea.sflag [#allocation4], %s4972_s8 }
 0xa41   : > { %p6298_p4 = pnand %p6303_p2, %p7485_p3 }
 0xa43   : > { %6477 = dma.done.wait (!%p6298_p4), %s4973_s10, 256  }
 0xa44   : > { %6479 = vsyncadd (!%p6298_p4), %s4973_s10, 4294967040  ;;  %p15_p7 = scmp.ge.s32.totalorder %s6555_s21, 4   ;;  %s7486_s15 = smov %s6486_s16 }
 0xa45   : > { %s7487_s16 = smov %s6490_s17  ;;  %s7488_s17 = smov %s6566_s24 }
 0xa46   : > { %s7489_s18 = smov %s6555_s21  ;;  %17 = sbr.rel (!%p15_p7) target bundleno = 4 (0x4), region = 79 }
 0xa4d   :  { %4978 = vsyncpa [#allocation3], 1 }
 0xa4e   :  { %4980 = vsyncpa [#allocation3 + $0x1], 1 }
 0xa4f   :  { %4981 = vsyncpa [#allocation4], 1 }
 0xa50   :  { %4983 = vsyncpa [#allocation4 + $0x1], 1 }

</bundles_post_ra>
